<compile_context>
chip_gen: v6e
topology: v6e:2x2x1
jax: 0.10.0
libtpu: 0.0.40
codegen_flags: <defaults>
</compile_context>

<pallas_src>
import math
import functools

import jax
import jax.numpy as jnp
from jax.experimental import pallas as pl
from jax.experimental.pallas import tpu as pltpu

NEG_INF = -1e9  # large-negative additive mask (numerically equivalent to -inf after softmax)


# ----------------------------- in-kernel helpers (traced inside kernels) -----------------------------

def _bf16(x):
    return x.astype(jnp.bfloat16)


def _layernorm(z, g, b, eps=1e-5):
    # LayerNorm over last dim, f32 math (eps matches nn.LayerNorm default)
    mu = jnp.mean(z, axis=-1, keepdims=True)
    var = jnp.mean(jnp.square(z - mu), axis=-1, keepdims=True)
    return (z - mu) * jax.lax.rsqrt(var + eps) * g + b


def _mha(q2, k2, v2, bias2, wo_bf, bo, *, nhead, dh):
    """Multi-head attention core for one batch element, fully VMEM-resident.

    q2: (tq, E) f32, k2/v2: (tk, E) f32/bf16, bias2: f32 broadcastable to (tq, tk),
    wo_bf: (E, E) bf16, bo: (1, E) f32.  Returns (tq, E) f32 (output projection included).
    Heads are batched into one einsum / one softmax; the output projection is a single
    full-contraction (tq,E)x(E,E) matmul.
    """
    scale = 1.0 / math.sqrt(dh)
    qh = jnp.stack([_bf16(q2[:, h * dh:(h + 1) * dh]) for h in range(nhead)], axis=0)  # (H,tq,dh)
    kh = jnp.stack([_bf16(k2[:, h * dh:(h + 1) * dh]) for h in range(nhead)], axis=0)  # (H,tk,dh)
    vh = jnp.stack([_bf16(v2[:, h * dh:(h + 1) * dh]) for h in range(nhead)], axis=0)  # (H,tk,dh)

    s = jnp.einsum("htd,hsd->hts", qh, kh, preferred_element_type=jnp.float32) * scale
    s = s + bias2[None, :, :]                                    # bias added once for all heads
    m = jnp.max(s, axis=-1, keepdims=True)
    p = jnp.exp(s - m)
    p = p * pl.reciprocal(jnp.sum(p, axis=-1, keepdims=True), approx=True)
    ctx = jnp.einsum("hts,hsd->htd", _bf16(p), vh, preferred_element_type=jnp.float32)  # (H,tq,dh)

    # merge heads back to a contiguous (tq, E) lane layout, then ONE output projection
    ctx2 = jnp.concatenate([ctx[h] for h in range(nhead)], axis=-1)                      # (tq, E)
    return jnp.dot(_bf16(ctx2), wo_bf, preferred_element_type=jnp.float32) + bo


def _ffn(z, w1_bf, b1, w2_bf, b2):
    h = jnp.dot(_bf16(z), w1_bf, preferred_element_type=jnp.float32) + b1
    h = jnp.maximum(h, 0.0)
    return jnp.dot(_bf16(h), w2_bf, preferred_element_type=jnp.float32) + b2


# ----------------------------- fused Pallas kernels -----------------------------

def _encoder_layer_kernel(x_ref, mask_ref, kpm_ref,
                          wqkv_ref, bqkv_ref, wo_ref, bo_ref,
                          ln1g_ref, ln1b_ref,
                          w1_ref, b1_ref, w2_ref, b2_ref,
                          ln2g_ref, ln2b_ref,
                          eng_ref, enb_ref,
                          o_ref, *, nhead, fuse_final_norm):
    _, s, e = x_ref.shape
    dh = e // nhead
    x2 = x_ref[...].reshape(s, e)

    # fused QKV projection (single packed matmul, bf16 weights)
    qkv = jnp.dot(_bf16(x2), wqkv_ref[...], preferred_element_type=jnp.float32) + bqkv_ref[...]

    # additive attention bias built in-kernel: (s, s)
    bias = mask_ref[...] + kpm_ref[...].reshape(1, s)

    attn = _mha(qkv[:, :e], qkv[:, e:2 * e], qkv[:, 2 * e:], bias,
                wo_ref[...], bo_ref[...], nhead=nhead, dh=dh)

    # post-norm encoder layer (norm_first=False, ReLU), dropout = identity
    z = _layernorm(x2 + attn, ln1g_ref[...], ln1b_ref[...])
    ff = _ffn(z, w1_ref[...], b1_ref[...], w2_ref[...], b2_ref[...])
    z = _layernorm(z + ff, ln2g_ref[...], ln2b_ref[...])
    if fuse_final_norm:
        # fold nn.Transformer's final encoder LayerNorm into the last layer (no extra pallas_call)
        z = _layernorm(z, eng_ref[...], enb_ref[...])
    o_ref[...] = z.reshape(1, s, e).astype(o_ref.dtype)


def _decoder_layer_kernel(y_ref, mem_ref, tgt_mask_ref, tgt_kpm_ref, mem_kpm_ref,
                          sa_wqkv_ref, sa_bqkv_ref, sa_wo_ref, sa_bo_ref,
                          ln1g_ref, ln1b_ref,
                          ca_wq_ref, ca_bq_ref, ca_wkv_ref, ca_bkv_ref,
                          ca_wo_ref, ca_bo_ref,
                          ln2g_ref, ln2b_ref,
                          w1_ref, b1_ref, w2_ref, b2_ref,
                          ln3g_ref, ln3b_ref,
                          o_ref, *, nhead):
    _, t, e = y_ref.shape
    s = mem_ref.shape[1]
    dh = e // nhead
    y2 = y_ref[...].reshape(t, e)
    m2 = mem_ref[...].reshape(s, e)          # bf16 encoder memory, used directly as MXU operand

    # --- masked self-attention ---
    qkv = jnp.dot(_bf16(y2), sa_wqkv_ref[...], preferred_element_type=jnp.float32) + sa_bqkv_ref[...]
    sa_bias = tgt_mask_ref[...] + tgt_kpm_ref[...].reshape(1, t)
    sa = _mha(qkv[:, :e], qkv[:, e:2 * e], qkv[:, 2 * e:], sa_bias,
              sa_wo_ref[...], sa_bo_ref[...], nhead=nhead, dh=dh)
    z = _layernorm(y2 + sa, ln1g_ref[...], ln1b_ref[...])

    # --- cross-attention over encoder memory ---
    q2 = jnp.dot(_bf16(z), ca_wq_ref[...], preferred_element_type=jnp.float32) + ca_bq_ref[...]
    kv = jnp.dot(m2, ca_wkv_ref[...], preferred_element_type=jnp.float32) + ca_bkv_ref[...]
    ca_bias = mem_kpm_ref[...].reshape(1, s)  # broadcasts over query rows inside _mha
    ca = _mha(q2, kv[:, :e], kv[:, e:], ca_bias,
              ca_wo_ref[...], ca_bo_ref[...], nhead=nhead, dh=dh)
    z = _layernorm(z + ca, ln2g_ref[...], ln2b_ref[...])

    # --- feed-forward ---
    ff = _ffn(z, w1_ref[...], b1_ref[...], w2_ref[...], b2_ref[...])
    z = _layernorm(z + ff, ln3g_ref[...], ln3b_ref[...])
    o_ref[...] = z.reshape(1, t, e).astype(o_ref.dtype)


def _norm_generator_kernel(y_ref, g_ref, b_ref, w_ref, bw_ref, o_ref):
    # final decoder LayerNorm fused with a (rows, vocab)-tiled generator Linear(E -> V)
    z = _layernorm(y_ref[...], g_ref[...], b_ref[...])
    o_ref[...] = jnp.dot(_bf16(z), w_ref[...], preferred_element_type=jnp.float32) + bw_ref[...]


# ----------------------------- kernel wrappers -----------------------------

def _row(v):
    return v.reshape(1, -1)


def _full_spec(shape):
    # whole-array block, constant index (single-axis batch grid)
    n = len(shape)
    return pl.BlockSpec(shape, lambda b, _n=n: (0,) * _n)


def encoder_layer(x, src_mask, src_kpm3, p, nhead, *, final_norm=None):
    nb, s, e = x.shape
    f = p["w1"].shape[1]
    fuse = final_norm is not None
    if fuse:
        eng, enb = final_norm
        out_dtype = jnp.bfloat16     # memory is only consumed as a bf16 MXU operand downstream
    else:
        eng = jnp.ones((e,), jnp.float32)
        enb = jnp.zeros((e,), jnp.float32)
        out_dtype = jnp.float32
    kern = functools.partial(_encoder_layer_kernel, nhead=nhead, fuse_final_norm=fuse)

    per_b = pl.BlockSpec((1, s, e), lambda b: (b, 0, 0))
    return pl.pallas_call(
        kern,
        out_shape=jax.ShapeDtypeStruct((nb, s, e), out_dtype),
        grid_spec=pltpu.PrefetchScalarGridSpec(
            num_scalar_prefetch=0,
            grid=(nb,),
            in_specs=[
                per_b,                                          # x
                _full_spec((s, s)),                             # src_mask
                pl.BlockSpec((1, 1, s), lambda b: (b, 0, 0)),   # key-padding bias (N,1,S)
                _full_spec((e, 3 * e)), _full_spec((1, 3 * e)),  # wqkv, bqkv
                _full_spec((e, e)), _full_spec((1, e)),          # wo, bo
                _full_spec((1, e)), _full_spec((1, e)),          # ln1 g,b
                _full_spec((e, f)), _full_spec((1, f)),          # w1, b1
                _full_spec((f, e)), _full_spec((1, e)),          # w2, b2
                _full_spec((1, e)), _full_spec((1, e)),          # ln2 g,b
                _full_spec((1, e)), _full_spec((1, e)),          # final encoder norm g,b
            ],
            out_specs=per_b),
        compiler_params=pltpu.CompilerParams(dimension_semantics=("parallel",)),
    )(x, src_mask, src_kpm3,
      p["wqkv"], _row(p["bqkv"]), p["wo"], _row(p["bo"]),
      _row(p["ln1_g"]), _row(p["ln1_b"]),
      p["w1"], _row(p["b1"]), p["w2"], _row(p["b2"]),
      _row(p["ln2_g"]), _row(p["ln2_b"]),
      _row(eng), _row(enb))


def decoder_layer(y, memory, tgt_mask, tgt_kpm3, mem_kpm3, p, nhead):
    nb, t, e = y.shape
    s = memory.shape[1]
    f = p["w1"].shape[1]
    kern = functools.partial(_decoder_layer_kernel, nhead=nhead)

    per_b_y = pl.BlockSpec((1, t, e), lambda b: (b, 0, 0))
    per_b_m = pl.BlockSpec((1, s, e), lambda b: (b, 0, 0))
    return pl.pallas_call(
        kern,
        out_shape=jax.ShapeDtypeStruct((nb, t, e), jnp.float32),
        grid_spec=pltpu.PrefetchScalarGridSpec(
            num_scalar_prefetch=0,
            grid=(nb,),
            in_specs=[
                per_b_y,                                         # y
                per_b_m,                                         # memory (bf16)
                _full_spec((t, t)),                              # tgt_mask
                pl.BlockSpec((1, 1, t), lambda b: (b, 0, 0)),    # tgt key-padding bias
                pl.BlockSpec((1, 1, s), lambda b: (b, 0, 0)),    # memory key-padding bias
                _full_spec((e, 3 * e)), _full_spec((1, 3 * e)),  # sa_wqkv, sa_bqkv
                _full_spec((e, e)), _full_spec((1, e)),          # sa_wo, sa_bo
                _full_spec((1, e)), _full_spec((1, e)),          # ln1 g,b
                _full_spec((e, e)), _full_spec((1, e)),          # ca_wq, ca_bq
                _full_spec((e, 2 * e)), _full_spec((1, 2 * e)),  # ca_wkv, ca_bkv
                _full_spec((e, e)), _full_spec((1, e)),          # ca_wo, ca_bo
                _full_spec((1, e)), _full_spec((1, e)),          # ln2 g,b
                _full_spec((e, f)), _full_spec((1, f)),          # w1, b1
                _full_spec((f, e)), _full_spec((1, e)),          # w2, b2
                _full_spec((1, e)), _full_spec((1, e)),          # ln3 g,b
            ],
            out_specs=per_b_y),
        compiler_params=pltpu.CompilerParams(dimension_semantics=("parallel",)),
    )(y, memory, tgt_mask, tgt_kpm3, mem_kpm3,
      p["sa_wqkv"], _row(p["sa_bqkv"]), p["sa_wo"], _row(p["sa_bo"]),
      _row(p["ln1_g"]), _row(p["ln1_b"]),
      p["ca_wq"], _row(p["ca_bq"]), p["ca_wkv"], _row(p["ca_bkv"]),
      p["ca_wo"], _row(p["ca_bo"]),
      _row(p["ln2_g"]), _row(p["ln2_b"]),
      p["w1"], _row(p["b1"]), p["w2"], _row(p["b2"]),
      _row(p["ln3_g"]), _row(p["ln3_b"]))


def _pick_tile(total, preferred):
    if total <= preferred:
        return total
    for t in (preferred, preferred // 2, 256, 128):
        if t > 0 and total % t == 0:
            return t
    return total


def norm_generator(y, g, b, w_bf16, bw):
    # final decoder LayerNorm fused with the generator, tiled over (rows, vocab)
    nb, t, e = y.shape
    v = w_bf16.shape[1]
    rows = nb * t
    y2 = y.reshape(rows, e)
    tm = _pick_tile(rows, 256)
    tn = _pick_tile(v, 1024)        # lane-dense vocab tiles (multiple of 256 at production sizes)
    grid = (rows // tm, v // tn)
    out = pl.pallas_call(
        _norm_generator_kernel,
        out_shape=jax.ShapeDtypeStruct((rows, v), jnp.float32),
        grid_spec=pltpu.PrefetchScalarGridSpec(
            num_scalar_prefetch=0,
            grid=grid,
            in_specs=[
                pl.BlockSpec((tm, e), lambda i, j: (i, 0)),   # decoder output rows
                pl.BlockSpec((1, e), lambda i, j: (0, 0)),    # dec_norm gamma
                pl.BlockSpec((1, e), lambda i, j: (0, 0)),    # dec_norm beta
                pl.BlockSpec((e, tn), lambda i, j: (0, j)),   # generator weight (bf16, streamed)
                pl.BlockSpec((1, tn), lambda i, j: (0, j)),   # generator bias
            ],
            out_specs=pl.BlockSpec((tm, tn), lambda i, j: (i, j))),
        compiler_params=pltpu.CompilerParams(
            dimension_semantics=("parallel", "parallel")),
    )(y2, _row(g), _row(b), w_bf16, _row(bw))
    return out.reshape(nb, t, v)


# ----------------------------- full forward -----------------------------

def seq2seq_transformer_forward(params, src, tgt, src_mask, tgt_mask,
                                src_padding_mask, tgt_padding_mask,
                                memory_key_padding_mask, *, nhead):
    e = params["src_emb"].shape[1]
    s_len = src.shape[0]
    t_len = tgt.shape[0]

    # TokenEmbedding (* sqrt(emb_size)) + sinusoidal PositionalEncoding (dropout = identity).
    # Embedding gather stays in plain JAX (no clean tiny-Pallas equivalent for gather).
    src_emb = jnp.take(params["src_emb"], src, axis=0) * math.sqrt(e)   # (S, N, E)
    src_emb = src_emb + params["pe"][:s_len, None, :]
    tgt_emb = jnp.take(params["tgt_emb"], tgt, axis=0) * math.sqrt(e)   # (T, N, E)
    tgt_emb = tgt_emb + params["pe"][:t_len, None, :]

    # work batch-first internally so all in-kernel reshapes touch only leading (major) dims
    x = src_emb.transpose(1, 0, 2)          # (N, S, E)
    y = tgt_emb.transpose(1, 0, 2)          # (N, T, E)

    # key-padding masks as additive biases, with a singleton middle dim so per-batch blocks are
    # (1, 1, L) (keeps the last two block dims equal to the full array dims)
    src_kpm = jnp.where(src_padding_mask, NEG_INF, 0.0).astype(jnp.float32)[:, None, :]        # (N,1,S)
    tgt_kpm = jnp.where(tgt_padding_mask, NEG_INF, 0.0).astype(jnp.float32)[:, None, :]        # (N,1,T)
    mem_kpm = jnp.where(memory_key_padding_mask, NEG_INF, 0.0).astype(jnp.float32)[:, None, :]  # (N,1,S)
    src_mask = src_mask.astype(jnp.float32)
    tgt_mask = tgt_mask.astype(jnp.float32)

    # encoder stack; nn.Transformer's final encoder LayerNorm is fused into the last layer,
    # which also emits the memory in bf16 (it is only consumed as a bf16 MXU operand).
    n_enc = len(params["enc_layers"])
    for i, lp in enumerate(params["enc_layers"]):
        fn = (params["enc_norm_g"], params["enc_norm_b"]) if i == n_enc - 1 else None
        x = encoder_layer(x, src_mask, src_kpm, lp, nhead, final_norm=fn)
    memory = x                               # (N, S, E) bf16

    # decoder stack; final decoder LayerNorm fused with the generator
    for lp in params["dec_layers"]:
        y = decoder_layer(y, memory, tgt_mask, tgt_kpm, mem_kpm, lp, nhead)
    logits = norm_generator(y, params["dec_norm_g"], params["dec_norm_b"],
                            params["gen_w"], params["gen_b"])            # (N, T, V)
    return logits.transpose(1, 0, 2)                                      # (T, N, V)


# ----------------------------- deterministic init -----------------------------

def _init_linear(key, fin, fout, scale=0.05):
    # matmul weights stored in bf16 (MXU operand dtype); biases stay f32
    w = (jax.random.normal(key, (fin, fout), jnp.float32) * scale).astype(jnp.bfloat16)
    b = jnp.zeros((fout,), jnp.float32)
    return w, b


def _init_enc_layer(key, e, f):
    ks = jax.random.split(key, 4)
    wqkv, bqkv = _init_linear(ks[0], e, 3 * e)
    wo, bo = _init_linear(ks[1], e, e)
    w1, b1 = _init_linear(ks[2], e, f)
    w2, b2 = _init_linear(ks[3], f, e)
    return dict(wqkv=wqkv, bqkv=bqkv, wo=wo, bo=bo, w1=w1, b1=b1, w2=w2, b2=b2,
                ln1_g=jnp.ones(e, jnp.float32), ln1_b=jnp.zeros(e, jnp.float32),
                ln2_g=jnp.ones(e, jnp.float32), ln2_b=jnp.zeros(e, jnp.float32))


def _init_dec_layer(key, e, f):
    ks = jax.random.split(key, 7)
    sa_wqkv, sa_bqkv = _init_linear(ks[0], e, 3 * e)
    sa_wo, sa_bo = _init_linear(ks[1], e, e)
    ca_wq, ca_bq = _init_linear(ks[2], e, e)
    ca_wkv, ca_bkv = _init_linear(ks[3], e, 2 * e)
    ca_wo, ca_bo = _init_linear(ks[4], e, e)
    w1, b1 = _init_linear(ks[5], e, f)
    w2, b2 = _init_linear(ks[6], f, e)
    return dict(sa_wqkv=sa_wqkv, sa_bqkv=sa_bqkv, sa_wo=sa_wo, sa_bo=sa_bo,
                ca_wq=ca_wq, ca_bq=ca_bq, ca_wkv=ca_wkv, ca_bkv=ca_bkv,
                ca_wo=ca_wo, ca_bo=ca_bo,
                w1=w1, b1=b1, w2=w2, b2=b2,
                ln1_g=jnp.ones(e, jnp.float32), ln1_b=jnp.zeros(e, jnp.float32),
                ln2_g=jnp.ones(e, jnp.float32), ln2_b=jnp.zeros(e, jnp.float32),
                ln3_g=jnp.ones(e, jnp.float32), ln3_b=jnp.zeros(e, jnp.float32))


def init_params(key, *, num_encoder_layer, num_decoder_layer, emb_size, max_len,
                src_vocab_size, tgt_vocab_size, dim_feedforward):
    ks = jax.random.split(key, 6)
    params = {}
    params["src_emb"] = jax.random.normal(ks[0], (src_vocab_size, emb_size), jnp.float32) * 0.1
    params["tgt_emb"] = jax.random.normal(ks[1], (tgt_vocab_size, emb_size), jnp.float32) * 0.1

    # sinusoidal positional encoding table
    pos = jnp.arange(max_len, dtype=jnp.float32)[:, None]
    div = jnp.exp(jnp.arange(0, emb_size, 2, dtype=jnp.float32)
                  * (-math.log(10000.0) / emb_size))
    pe = jnp.zeros((max_len, emb_size), jnp.float32)
    pe = pe.at[:, 0::2].set(jnp.sin(pos * div))
    pe = pe.at[:, 1::2].set(jnp.cos(pos * div))
    params["pe"] = pe

    enc_keys = jax.random.split(ks[2], num_encoder_layer)
    params["enc_layers"] = [_init_enc_layer(k, emb_size, dim_feedforward) for k in enc_keys]
    dec_keys = jax.random.split(ks[3], num_decoder_layer)
    params["dec_layers"] = [_init_dec_layer(k, emb_size, dim_feedforward) for k in dec_keys]

    params["enc_norm_g"] = jnp.ones(emb_size, jnp.float32)
    params["enc_norm_b"] = jnp.zeros(emb_size, jnp.float32)
    params["dec_norm_g"] = jnp.ones(emb_size, jnp.float32)
    params["dec_norm_b"] = jnp.zeros(emb_size, jnp.float32)

    params["gen_w"], params["gen_b"] = _init_linear(ks[4], emb_size, tgt_vocab_size)
    return params


# ----------------------------- main -----------------------------

if __name__ == "__main__":
    emb_size, nhead, dim_feedforward = 32, 4, 64
    num_encoder_layer, num_decoder_layer = 2, 2
    src_vocab_size, tgt_vocab_size, max_len = 50, 60, 32
    S, T, N = 8, 8, 2  # src len, tgt len, batch

    root = jax.random.PRNGKey(0)
    kp, ks, kt = jax.random.split(root, 3)

    params = init_params(
        kp,
        num_encoder_layer=num_encoder_layer, num_decoder_layer=num_decoder_layer,
        emb_size=emb_size, max_len=max_len,
        src_vocab_size=src_vocab_size, tgt_vocab_size=tgt_vocab_size,
        dim_feedforward=dim_feedforward,
    )

    src = jax.random.randint(ks, (S, N), 0, src_vocab_size, dtype=jnp.int32)
    tgt = jax.random.randint(kt, (T, N), 0, tgt_vocab_size, dtype=jnp.int32)

    src_mask = jnp.zeros((S, S), jnp.float32)
    tgt_mask = jnp.where(jnp.triu(jnp.ones((T, T), jnp.bool_), k=1), NEG_INF, 0.0).astype(jnp.float32)
    src_padding_mask = jnp.zeros((N, S), jnp.bool_).at[1, S - 2:].set(True)
    tgt_padding_mask = jnp.zeros((N, T), jnp.bool_).at[1, T - 1:].set(True)
    memory_key_padding_mask = src_padding_mask

    fwd = jax.jit(functools.partial(seq2seq_transformer_forward, nhead=nhead))
    out = fwd(params, src, tgt, src_mask, tgt_mask,
              src_padding_mask, tgt_padding_mask, memory_key_padding_mask)
    out = jax.block_until_ready(out)

    assert out.shape == (T, N, tgt_vocab_size)
    assert bool(jnp.all(jnp.isfinite(out)))
    print("KERNEL_OK")
</pallas_src>

<mosaic_0001>
module attributes {stable_mosaic.version = 11 : i64} {
  func.func @_encoder_layer_kernel(%arg0: i32, %arg1: memref<1x8x32xf32, #tpu.memory_space<vmem>>, %arg2: memref<8x8xf32, #tpu.memory_space<vmem>>, %arg3: memref<1x1x8xf32, #tpu.memory_space<vmem>>, %arg4: memref<32x96xbf16, #tpu.memory_space<vmem>>, %arg5: memref<1x96xf32, #tpu.memory_space<vmem>>, %arg6: memref<32x32xbf16, #tpu.memory_space<vmem>>, %arg7: memref<1x32xf32, #tpu.memory_space<vmem>>, %arg8: memref<1x32xf32, #tpu.memory_space<vmem>>, %arg9: memref<1x32xf32, #tpu.memory_space<vmem>>, %arg10: memref<32x64xbf16, #tpu.memory_space<vmem>>, %arg11: memref<1x64xf32, #tpu.memory_space<vmem>>, %arg12: memref<64x32xbf16, #tpu.memory_space<vmem>>, %arg13: memref<1x32xf32, #tpu.memory_space<vmem>>, %arg14: memref<1x32xf32, #tpu.memory_space<vmem>>, %arg15: memref<1x32xf32, #tpu.memory_space<vmem>>, %arg16: memref<1x32xf32, #tpu.memory_space<vmem>>, %arg17: memref<1x32xf32, #tpu.memory_space<vmem>>, %arg18: memref<1x8x32xf32, #tpu.memory_space<vmem>>) attributes {dimension_semantics = [#tpu.dimension_semantics<parallel>], iteration_bounds = array<i64: 2>, scalar_prefetch = 0 : i64, scratch_operands = 0 : i64, tpu.core_type = #tpu.core_type<tc>, window_params = [{transform_indices = @transform_0, window_bounds = array<i64: 1, 8, 32>}, {pipeline_mode = #tpu.pipeline_mode<synchronous>, transform_indices = @transform_1, window_bounds = array<i64: 8, 8>}, {transform_indices = @transform_2, window_bounds = array<i64: 1, 1, 8>}, {pipeline_mode = #tpu.pipeline_mode<synchronous>, transform_indices = @transform_3, window_bounds = array<i64: 32, 96>}, {pipeline_mode = #tpu.pipeline_mode<synchronous>, transform_indices = @transform_4, window_bounds = array<i64: 1, 96>}, {pipeline_mode = #tpu.pipeline_mode<synchronous>, transform_indices = @transform_5, window_bounds = array<i64: 32, 32>}, {pipeline_mode = #tpu.pipeline_mode<synchronous>, transform_indices = @transform_6, window_bounds = array<i64: 1, 32>}, {pipeline_mode = #tpu.pipeline_mode<synchronous>, transform_indices = @transform_7, window_bounds = array<i64: 1, 32>}, {pipeline_mode = #tpu.pipeline_mode<synchronous>, transform_indices = @transform_8, window_bounds = array<i64: 1, 32>}, {pipeline_mode = #tpu.pipeline_mode<synchronous>, transform_indices = @transform_9, window_bounds = array<i64: 32, 64>}, {pipeline_mode = #tpu.pipeline_mode<synchronous>, transform_indices = @transform_10, window_bounds = array<i64: 1, 64>}, {pipeline_mode = #tpu.pipeline_mode<synchronous>, transform_indices = @transform_11, window_bounds = array<i64: 64, 32>}, {pipeline_mode = #tpu.pipeline_mode<synchronous>, transform_indices = @transform_12, window_bounds = array<i64: 1, 32>}, {pipeline_mode = #tpu.pipeline_mode<synchronous>, transform_indices = @transform_13, window_bounds = array<i64: 1, 32>}, {pipeline_mode = #tpu.pipeline_mode<synchronous>, transform_indices = @transform_14, window_bounds = array<i64: 1, 32>}, {pipeline_mode = #tpu.pipeline_mode<synchronous>, transform_indices = @transform_15, window_bounds = array<i64: 1, 32>}, {pipeline_mode = #tpu.pipeline_mode<synchronous>, transform_indices = @transform_16, window_bounds = array<i64: 1, 32>}, {transform_indices = @transform_17, window_bounds = array<i64: 1, 8, 32>}]} {
    %c0 = arith.constant 0 : index
    %c0_0 = arith.constant 0 : index
    %c0_1 = arith.constant 0 : index
    %0 = vector.load %arg1[%c0, %c0_0, %c0_1] : memref<1x8x32xf32, #tpu.memory_space<vmem>>, vector<1x8x32xf32>
    %1 = vector.shape_cast %0 : vector<1x8x32xf32> to vector<8x32xf32>
    %2 = arith.truncf %1 : vector<8x32xf32> to vector<8x32xbf16>
    %c0_2 = arith.constant 0 : index
    %c0_3 = arith.constant 0 : index
    %3 = vector.load %arg4[%c0_2, %c0_3] : memref<32x96xbf16, #tpu.memory_space<vmem>>, vector<32x96xbf16>
    %cst = arith.constant dense<0.000000e+00> : vector<8x96xf32>
    %4 = tpu.matmul %2, %3, %cst {dimension_numbers = #tpu.dot_dimension_numbers<[1], [0], [0], [1], [0, 0, 1, 1], [], []>} : vector<8x32xbf16>, vector<32x96xbf16>, vector<8x96xf32> -> vector<8x96xf32>
    %c0_4 = arith.constant 0 : index
    %c0_5 = arith.constant 0 : index
    %5 = vector.load %arg5[%c0_4, %c0_5] : memref<1x96xf32, #tpu.memory_space<vmem>>, vector<1x96xf32>
    %6 = vector.broadcast %5 : vector<1x96xf32> to vector<8x96xf32>
    %7 = arith.addf %4, %6 : vector<8x96xf32>
    %c0_6 = arith.constant 0 : index
    %c0_7 = arith.constant 0 : index
    %8 = vector.load %arg2[%c0_6, %c0_7] : memref<8x8xf32, #tpu.memory_space<vmem>>, vector<8x8xf32>
    %c0_8 = arith.constant 0 : index
    %c0_9 = arith.constant 0 : index
    %c0_10 = arith.constant 0 : index
    %9 = vector.load %arg3[%c0_8, %c0_9, %c0_10] : memref<1x1x8xf32, #tpu.memory_space<vmem>>, vector<1x1x8xf32>
    %10 = vector.shape_cast %9 : vector<1x1x8xf32> to vector<1x8xf32>
    %11 = vector.broadcast %10 : vector<1x8xf32> to vector<8x8xf32>
    %12 = arith.addf %8, %11 : vector<8x8xf32>
    %13 = vector.extract_strided_slice %7 {offsets = [0, 0], sizes = [8, 32], strides = [1, 1]} : vector<8x96xf32> to vector<8x32xf32>
    %14 = vector.extract_strided_slice %7 {offsets = [0, 32], sizes = [8, 32], strides = [1, 1]} : vector<8x96xf32> to vector<8x32xf32>
    %15 = vector.extract_strided_slice %7 {offsets = [0, 64], sizes = [8, 32], strides = [1, 1]} : vector<8x96xf32> to vector<8x32xf32>
    %c0_11 = arith.constant 0 : index
    %c0_12 = arith.constant 0 : index
    %16 = vector.load %arg6[%c0_11, %c0_12] : memref<32x32xbf16, #tpu.memory_space<vmem>>, vector<32x32xbf16>
    %c0_13 = arith.constant 0 : index
    %c0_14 = arith.constant 0 : index
    %17 = vector.load %arg7[%c0_13, %c0_14] : memref<1x32xf32, #tpu.memory_space<vmem>>, vector<1x32xf32>
    %18 = vector.extract_strided_slice %13 {offsets = [0, 0], sizes = [8, 8], strides = [1, 1]} : vector<8x32xf32> to vector<8x8xf32>
    %19 = arith.truncf %18 : vector<8x8xf32> to vector<8x8xbf16>
    %20 = vector.extract_strided_slice %13 {offsets = [0, 8], sizes = [8, 8], strides = [1, 1]} : vector<8x32xf32> to vector<8x8xf32>
    %21 = arith.truncf %20 : vector<8x8xf32> to vector<8x8xbf16>
    %22 = vector.extract_strided_slice %13 {offsets = [0, 16], sizes = [8, 8], strides = [1, 1]} : vector<8x32xf32> to vector<8x8xf32>
    %23 = arith.truncf %22 : vector<8x8xf32> to vector<8x8xbf16>
    %24 = vector.extract_strided_slice %13 {offsets = [0, 24], sizes = [8, 8], strides = [1, 1]} : vector<8x32xf32> to vector<8x8xf32>
    %25 = arith.truncf %24 : vector<8x8xf32> to vector<8x8xbf16>
    %26 = vector.shape_cast %19 : vector<8x8xbf16> to vector<1x8x8xbf16>
    %27 = vector.shape_cast %21 : vector<8x8xbf16> to vector<1x8x8xbf16>
    %28 = vector.shape_cast %23 : vector<8x8xbf16> to vector<1x8x8xbf16>
    %29 = vector.shape_cast %25 : vector<8x8xbf16> to vector<1x8x8xbf16>
    %30 = tpu.concatenate %26, %27, %28, %29 in 0 : vector<1x8x8xbf16>, vector<1x8x8xbf16>, vector<1x8x8xbf16>, vector<1x8x8xbf16> -> vector<4x8x8xbf16>
    %31 = vector.extract_strided_slice %14 {offsets = [0, 0], sizes = [8, 8], strides = [1, 1]} : vector<8x32xf32> to vector<8x8xf32>
    %32 = arith.truncf %31 : vector<8x8xf32> to vector<8x8xbf16>
    %33 = vector.extract_strided_slice %14 {offsets = [0, 8], sizes = [8, 8], strides = [1, 1]} : vector<8x32xf32> to vector<8x8xf32>
    %34 = arith.truncf %33 : vector<8x8xf32> to vector<8x8xbf16>
    %35 = vector.extract_strided_slice %14 {offsets = [0, 16], sizes = [8, 8], strides = [1, 1]} : vector<8x32xf32> to vector<8x8xf32>
    %36 = arith.truncf %35 : vector<8x8xf32> to vector<8x8xbf16>
    %37 = vector.extract_strided_slice %14 {offsets = [0, 24], sizes = [8, 8], strides = [1, 1]} : vector<8x32xf32> to vector<8x8xf32>
    %38 = arith.truncf %37 : vector<8x8xf32> to vector<8x8xbf16>
    %39 = vector.shape_cast %32 : vector<8x8xbf16> to vector<1x8x8xbf16>
    %40 = vector.shape_cast %34 : vector<8x8xbf16> to vector<1x8x8xbf16>
    %41 = vector.shape_cast %36 : vector<8x8xbf16> to vector<1x8x8xbf16>
    %42 = vector.shape_cast %38 : vector<8x8xbf16> to vector<1x8x8xbf16>
    %43 = tpu.concatenate %39, %40, %41, %42 in 0 : vector<1x8x8xbf16>, vector<1x8x8xbf16>, vector<1x8x8xbf16>, vector<1x8x8xbf16> -> vector<4x8x8xbf16>
    %44 = vector.extract_strided_slice %15 {offsets = [0, 0], sizes = [8, 8], strides = [1, 1]} : vector<8x32xf32> to vector<8x8xf32>
    %45 = arith.truncf %44 : vector<8x8xf32> to vector<8x8xbf16>
    %46 = vector.extract_strided_slice %15 {offsets = [0, 8], sizes = [8, 8], strides = [1, 1]} : vector<8x32xf32> to vector<8x8xf32>
    %47 = arith.truncf %46 : vector<8x8xf32> to vector<8x8xbf16>
    %48 = vector.extract_strided_slice %15 {offsets = [0, 16], sizes = [8, 8], strides = [1, 1]} : vector<8x32xf32> to vector<8x8xf32>
    %49 = arith.truncf %48 : vector<8x8xf32> to vector<8x8xbf16>
    %50 = vector.extract_strided_slice %15 {offsets = [0, 24], sizes = [8, 8], strides = [1, 1]} : vector<8x32xf32> to vector<8x8xf32>
    %51 = arith.truncf %50 : vector<8x8xf32> to vector<8x8xbf16>
    %52 = vector.shape_cast %45 : vector<8x8xbf16> to vector<1x8x8xbf16>
    %53 = vector.shape_cast %47 : vector<8x8xbf16> to vector<1x8x8xbf16>
    %54 = vector.shape_cast %49 : vector<8x8xbf16> to vector<1x8x8xbf16>
    %55 = vector.shape_cast %51 : vector<8x8xbf16> to vector<1x8x8xbf16>
    %56 = tpu.concatenate %52, %53, %54, %55 in 0 : vector<1x8x8xbf16>, vector<1x8x8xbf16>, vector<1x8x8xbf16>, vector<1x8x8xbf16> -> vector<4x8x8xbf16>
    "tpu.trace_start"() <{level = 10 : i32, message = "htd,hsd->hts"}> : () -> ()
    %cst_15 = arith.constant dense<0.000000e+00> : vector<4x8x8xf32>
    %57 = tpu.matmul %30, %43, %cst_15 {dimension_numbers = #tpu.dot_dimension_numbers<[2], [2], [1], [1], [0, 0, 0, 1, 1, 1], [0], [0]>} : vector<4x8x8xbf16>, vector<4x8x8xbf16>, vector<4x8x8xf32> -> vector<4x8x8xf32>
    "tpu.trace_stop"() : () -> ()
    %cst_16 = arith.constant 0.353553385 : f32
    %58 = vector.broadcast %cst_16 : f32 to vector<4x8x8xf32>
    %59 = arith.mulf %57, %58 : vector<4x8x8xf32>
    %60 = vector.shape_cast %12 : vector<8x8xf32> to vector<1x8x8xf32>
    %61 = vector.broadcast %60 : vector<1x8x8xf32> to vector<4x8x8xf32>
    %62 = arith.addf %59, %61 : vector<4x8x8xf32>
    %cst_17 = arith.constant dense<0xFF800000> : vector<4x8xf32>
    %63 = vector.multi_reduction <maximumf>, %62, %cst_17 [2] : vector<4x8x8xf32> to vector<4x8xf32>
    %64 = vector.shape_cast %63 : vector<4x8xf32> to vector<4x8x1xf32>
    %65 = vector.broadcast %64 : vector<4x8x1xf32> to vector<4x8x8xf32>
    %66 = arith.subf %62, %65 : vector<4x8x8xf32>
    %67 = math.exp %66 : vector<4x8x8xf32>
    %cst_18 = arith.constant dense<0.000000e+00> : vector<4x8xf32>
    %68 = vector.multi_reduction <add>, %67, %cst_18 [2] : vector<4x8x8xf32> to vector<4x8xf32>
    %69 = vector.shape_cast %68 : vector<4x8xf32> to vector<4x8x1xf32>
    %70 = tpu.reciprocal %69 {approx = true} : vector<4x8x1xf32> -> vector<4x8x1xf32>
    %71 = vector.broadcast %70 : vector<4x8x1xf32> to vector<4x8x8xf32>
    %72 = arith.mulf %67, %71 : vector<4x8x8xf32>
    %73 = arith.truncf %72 : vector<4x8x8xf32> to vector<4x8x8xbf16>
    "tpu.trace_start"() <{level = 10 : i32, message = "hts,hsd->htd"}> : () -> ()
    %cst_19 = arith.constant dense<0.000000e+00> : vector<4x8x8xf32>
    %74 = tpu.matmul %73, %56, %cst_19 {dimension_numbers = #tpu.dot_dimension_numbers<[2], [1], [1], [2], [0, 0, 0, 1, 1, 2], [0], [0]>} : vector<4x8x8xbf16>, vector<4x8x8xbf16>, vector<4x8x8xf32> -> vector<4x8x8xf32>
    "tpu.trace_stop"() : () -> ()
    %75 = vector.extract_strided_slice %74 {offsets = [0, 0, 0], sizes = [1, 8, 8], strides = [1, 1, 1]} : vector<4x8x8xf32> to vector<1x8x8xf32>
    %76 = vector.shape_cast %75 : vector<1x8x8xf32> to vector<8x8xf32>
    %77 = vector.extract_strided_slice %74 {offsets = [1, 0, 0], sizes = [1, 8, 8], strides = [1, 1, 1]} : vector<4x8x8xf32> to vector<1x8x8xf32>
    %78 = vector.shape_cast %77 : vector<1x8x8xf32> to vector<8x8xf32>
    %79 = vector.extract_strided_slice %74 {offsets = [2, 0, 0], sizes = [1, 8, 8], strides = [1, 1, 1]} : vector<4x8x8xf32> to vector<1x8x8xf32>
    %80 = vector.shape_cast %79 : vector<1x8x8xf32> to vector<8x8xf32>
    %81 = vector.extract_strided_slice %74 {offsets = [3, 0, 0], sizes = [1, 8, 8], strides = [1, 1, 1]} : vector<4x8x8xf32> to vector<1x8x8xf32>
    %82 = vector.shape_cast %81 : vector<1x8x8xf32> to vector<8x8xf32>
    %83 = tpu.concatenate %76, %78, %80, %82 in 1 : vector<8x8xf32>, vector<8x8xf32>, vector<8x8xf32>, vector<8x8xf32> -> vector<8x32xf32>
    %84 = arith.truncf %83 : vector<8x32xf32> to vector<8x32xbf16>
    %cst_20 = arith.constant dense<0.000000e+00> : vector<8x32xf32>
    %85 = tpu.matmul %84, %16, %cst_20 {dimension_numbers = #tpu.dot_dimension_numbers<[1], [0], [0], [1], [0, 0, 1, 1], [], []>} : vector<8x32xbf16>, vector<32x32xbf16>, vector<8x32xf32> -> vector<8x32xf32>
    %86 = vector.broadcast %17 : vector<1x32xf32> to vector<8x32xf32>
    %87 = arith.addf %85, %86 : vector<8x32xf32>
    %88 = arith.addf %1, %87 : vector<8x32xf32>
    %c0_21 = arith.constant 0 : index
    %c0_22 = arith.constant 0 : index
    %89 = vector.load %arg8[%c0_21, %c0_22] : memref<1x32xf32, #tpu.memory_space<vmem>>, vector<1x32xf32>
    %c0_23 = arith.constant 0 : index
    %c0_24 = arith.constant 0 : index
    %90 = vector.load %arg9[%c0_23, %c0_24] : memref<1x32xf32, #tpu.memory_space<vmem>>, vector<1x32xf32>
    %cst_25 = arith.constant dense<0.000000e+00> : vector<8xf32>
    %91 = vector.multi_reduction <add>, %88, %cst_25 [1] : vector<8x32xf32> to vector<8xf32>
    %92 = vector.shape_cast %91 : vector<8xf32> to vector<8x1xf32>
    %cst_26 = arith.constant 3.200000e+01 : f32
    %93 = vector.broadcast %cst_26 : f32 to vector<8x1xf32>
    %94 = arith.divf %92, %93 : vector<8x1xf32>
    %95 = vector.broadcast %94 : vector<8x1xf32> to vector<8x32xf32>
    %96 = arith.subf %88, %95 : vector<8x32xf32>
    %97 = arith.mulf %96, %96 : vector<8x32xf32>
    %cst_27 = arith.constant dense<0.000000e+00> : vector<8xf32>
    %98 = vector.multi_reduction <add>, %97, %cst_27 [1] : vector<8x32xf32> to vector<8xf32>
    %99 = vector.shape_cast %98 : vector<8xf32> to vector<8x1xf32>
    %cst_28 = arith.constant 3.200000e+01 : f32
    %100 = vector.broadcast %cst_28 : f32 to vector<8x1xf32>
    %101 = arith.divf %99, %100 : vector<8x1xf32>
    %102 = vector.broadcast %94 : vector<8x1xf32> to vector<8x32xf32>
    %103 = arith.subf %88, %102 : vector<8x32xf32>
    %cst_29 = arith.constant 9.99999974E-6 : f32
    %104 = vector.broadcast %cst_29 : f32 to vector<8x1xf32>
    %105 = arith.addf %101, %104 : vector<8x1xf32>
    %106 = math.rsqrt %105 : vector<8x1xf32>
    %107 = vector.broadcast %106 : vector<8x1xf32> to vector<8x32xf32>
    %108 = arith.mulf %103, %107 : vector<8x32xf32>
    %109 = vector.broadcast %89 : vector<1x32xf32> to vector<8x32xf32>
    %110 = arith.mulf %108, %109 : vector<8x32xf32>
    %111 = vector.broadcast %90 : vector<1x32xf32> to vector<8x32xf32>
    %112 = arith.addf %110, %111 : vector<8x32xf32>
    %c0_30 = arith.constant 0 : index
    %c0_31 = arith.constant 0 : index
    %113 = vector.load %arg10[%c0_30, %c0_31] : memref<32x64xbf16, #tpu.memory_space<vmem>>, vector<32x64xbf16>
    %c0_32 = arith.constant 0 : index
    %c0_33 = arith.constant 0 : index
    %114 = vector.load %arg11[%c0_32, %c0_33] : memref<1x64xf32, #tpu.memory_space<vmem>>, vector<1x64xf32>
    %c0_34 = arith.constant 0 : index
    %c0_35 = arith.constant 0 : index
    %115 = vector.load %arg12[%c0_34, %c0_35] : memref<64x32xbf16, #tpu.memory_space<vmem>>, vector<64x32xbf16>
    %c0_36 = arith.constant 0 : index
    %c0_37 = arith.constant 0 : index
    %116 = vector.load %arg13[%c0_36, %c0_37] : memref<1x32xf32, #tpu.memory_space<vmem>>, vector<1x32xf32>
    %117 = arith.truncf %112 : vector<8x32xf32> to vector<8x32xbf16>
    %cst_38 = arith.constant dense<0.000000e+00> : vector<8x64xf32>
    %118 = tpu.matmul %117, %113, %cst_38 {dimension_numbers = #tpu.dot_dimension_numbers<[1], [0], [0], [1], [0, 0, 1, 1], [], []>} : vector<8x32xbf16>, vector<32x64xbf16>, vector<8x64xf32> -> vector<8x64xf32>
    %119 = vector.broadcast %114 : vector<1x64xf32> to vector<8x64xf32>
    %120 = arith.addf %118, %119 : vector<8x64xf32>
    %cst_39 = arith.constant 0.000000e+00 : f32
    %121 = vector.broadcast %cst_39 : f32 to vector<8x64xf32>
    %122 = arith.maximumf %120, %121 : vector<8x64xf32>
    %123 = arith.truncf %122 : vector<8x64xf32> to vector<8x64xbf16>
    %cst_40 = arith.constant dense<0.000000e+00> : vector<8x32xf32>
    %124 = tpu.matmul %123, %115, %cst_40 {dimension_numbers = #tpu.dot_dimension_numbers<[1], [0], [0], [1], [0, 0, 1, 1], [], []>} : vector<8x64xbf16>, vector<64x32xbf16>, vector<8x32xf32> -> vector<8x32xf32>
    %125 = vector.broadcast %116 : vector<1x32xf32> to vector<8x32xf32>
    %126 = arith.addf %124, %125 : vector<8x32xf32>
    %127 = arith.addf %112, %126 : vector<8x32xf32>
    %c0_41 = arith.constant 0 : index
    %c0_42 = arith.constant 0 : index
    %128 = vector.load %arg14[%c0_41, %c0_42] : memref<1x32xf32, #tpu.memory_space<vmem>>, vector<1x32xf32>
    %c0_43 = arith.constant 0 : index
    %c0_44 = arith.constant 0 : index
    %129 = vector.load %arg15[%c0_43, %c0_44] : memref<1x32xf32, #tpu.memory_space<vmem>>, vector<1x32xf32>
    %cst_45 = arith.constant dense<0.000000e+00> : vector<8xf32>
    %130 = vector.multi_reduction <add>, %127, %cst_45 [1] : vector<8x32xf32> to vector<8xf32>
    %131 = vector.shape_cast %130 : vector<8xf32> to vector<8x1xf32>
    %cst_46 = arith.constant 3.200000e+01 : f32
    %132 = vector.broadcast %cst_46 : f32 to vector<8x1xf32>
    %133 = arith.divf %131, %132 : vector<8x1xf32>
    %134 = vector.broadcast %133 : vector<8x1xf32> to vector<8x32xf32>
    %135 = arith.subf %127, %134 : vector<8x32xf32>
    %136 = arith.mulf %135, %135 : vector<8x32xf32>
    %cst_47 = arith.constant dense<0.000000e+00> : vector<8xf32>
    %137 = vector.multi_reduction <add>, %136, %cst_47 [1] : vector<8x32xf32> to vector<8xf32>
    %138 = vector.shape_cast %137 : vector<8xf32> to vector<8x1xf32>
    %cst_48 = arith.constant 3.200000e+01 : f32
    %139 = vector.broadcast %cst_48 : f32 to vector<8x1xf32>
    %140 = arith.divf %138, %139 : vector<8x1xf32>
    %141 = vector.broadcast %133 : vector<8x1xf32> to vector<8x32xf32>
    %142 = arith.subf %127, %141 : vector<8x32xf32>
    %cst_49 = arith.constant 9.99999974E-6 : f32
    %143 = vector.broadcast %cst_49 : f32 to vector<8x1xf32>
    %144 = arith.addf %140, %143 : vector<8x1xf32>
    %145 = math.rsqrt %144 : vector<8x1xf32>
    %146 = vector.broadcast %145 : vector<8x1xf32> to vector<8x32xf32>
    %147 = arith.mulf %142, %146 : vector<8x32xf32>
    %148 = vector.broadcast %128 : vector<1x32xf32> to vector<8x32xf32>
    %149 = arith.mulf %147, %148 : vector<8x32xf32>
    %150 = vector.broadcast %129 : vector<1x32xf32> to vector<8x32xf32>
    %151 = arith.addf %149, %150 : vector<8x32xf32>
    %152 = vector.shape_cast %151 : vector<8x32xf32> to vector<1x8x32xf32>
    %c0_50 = arith.constant 0 : index
    %c0_51 = arith.constant 0 : index
    %c0_52 = arith.constant 0 : index
    %153 = vector.load %arg18[%c0_50, %c0_51, %c0_52] : memref<1x8x32xf32, #tpu.memory_space<vmem>>, vector<1x8x32xf32>
    tpu.vector_store %arg18[%c0_50, %c0_51, %c0_52], %152 {strides = array<i32>} : memref<1x8x32xf32, #tpu.memory_space<vmem>>, vector<1x8x32xf32>,
    return
  }
  func.func @transform_0(%arg0: i32) -> (i32, i32, i32) {
    %c0_i32 = arith.constant 0 : i32
    %c0_i32_0 = arith.constant 0 : i32
    %c0_i32_1 = arith.constant 0 : i32
    return %arg0, %c0_i32, %c0_i32_0 : i32, i32, i32
  }
  func.func @transform_1(%arg0: i32) -> (i32, i32) {
    %c0_i32 = arith.constant 0 : i32
    %c0_i32_0 = arith.constant 0 : i32
    %c0_i32_1 = arith.constant 0 : i32
    return %c0_i32, %c0_i32_0 : i32, i32
  }
  func.func @transform_2(%arg0: i32) -> (i32, i32, i32) {
    %c0_i32 = arith.constant 0 : i32
    %c0_i32_0 = arith.constant 0 : i32
    %c0_i32_1 = arith.constant 0 : i32
    return %arg0, %c0_i32, %c0_i32_0 : i32, i32, i32
  }
  func.func @transform_3(%arg0: i32) -> (i32, i32) {
    %c0_i32 = arith.constant 0 : i32
    %c0_i32_0 = arith.constant 0 : i32
    %c0_i32_1 = arith.constant 0 : i32
    return %c0_i32, %c0_i32_0 : i32, i32
  }
  func.func @transform_4(%arg0: i32) -> (i32, i32) {
    %c0_i32 = arith.constant 0 : i32
    %c0_i32_0 = arith.constant 0 : i32
    %c0_i32_1 = arith.constant 0 : i32
    return %c0_i32, %c0_i32_0 : i32, i32
  }
  func.func @transform_5(%arg0: i32) -> (i32, i32) {
    %c0_i32 = arith.constant 0 : i32
    %c0_i32_0 = arith.constant 0 : i32
    %c0_i32_1 = arith.constant 0 : i32
    return %c0_i32, %c0_i32_0 : i32, i32
  }
  func.func @transform_6(%arg0: i32) -> (i32, i32) {
    %c0_i32 = arith.constant 0 : i32
    %c0_i32_0 = arith.constant 0 : i32
    %c0_i32_1 = arith.constant 0 : i32
    return %c0_i32, %c0_i32_0 : i32, i32
  }
  func.func @transform_7(%arg0: i32) -> (i32, i32) {
    %c0_i32 = arith.constant 0 : i32
    %c0_i32_0 = arith.constant 0 : i32
    %c0_i32_1 = arith.constant 0 : i32
    return %c0_i32, %c0_i32_0 : i32, i32
  }
  func.func @transform_8(%arg0: i32) -> (i32, i32) {
    %c0_i32 = arith.constant 0 : i32
    %c0_i32_0 = arith.constant 0 : i32
    %c0_i32_1 = arith.constant 0 : i32
    return %c0_i32, %c0_i32_0 : i32, i32
  }
  func.func @transform_9(%arg0: i32) -> (i32, i32) {
    %c0_i32 = arith.constant 0 : i32
    %c0_i32_0 = arith.constant 0 : i32
    %c0_i32_1 = arith.constant 0 : i32
    return %c0_i32, %c0_i32_0 : i32, i32
  }
  func.func @transform_10(%arg0: i32) -> (i32, i32) {
    %c0_i32 = arith.constant 0 : i32
    %c0_i32_0 = arith.constant 0 : i32
    %c0_i32_1 = arith.constant 0 : i32
    return %c0_i32, %c0_i32_0 : i32, i32
  }
  func.func @transform_11(%arg0: i32) -> (i32, i32) {
    %c0_i32 = arith.constant 0 : i32
    %c0_i32_0 = arith.constant 0 : i32
    %c0_i32_1 = arith.constant 0 : i32
    return %c0_i32, %c0_i32_0 : i32, i32
  }
  func.func @transform_12(%arg0: i32) -> (i32, i32) {
    %c0_i32 = arith.constant 0 : i32
    %c0_i32_0 = arith.constant 0 : i32
    %c0_i32_1 = arith.constant 0 : i32
    return %c0_i32, %c0_i32_0 : i32, i32
  }
  func.func @transform_13(%arg0: i32) -> (i32, i32) {
    %c0_i32 = arith.constant 0 : i32
    %c0_i32_0 = arith.constant 0 : i32
    %c0_i32_1 = arith.constant 0 : i32
    return %c0_i32, %c0_i32_0 : i32, i32
  }
  func.func @transform_14(%arg0: i32) -> (i32, i32) {
    %c0_i32 = arith.constant 0 : i32
    %c0_i32_0 = arith.constant 0 : i32
    %c0_i32_1 = arith.constant 0 : i32
    return %c0_i32, %c0_i32_0 : i32, i32
  }
  func.func @transform_15(%arg0: i32) -> (i32, i32) {
    %c0_i32 = arith.constant 0 : i32
    %c0_i32_0 = arith.constant 0 : i32
    %c0_i32_1 = arith.constant 0 : i32
    return %c0_i32, %c0_i32_0 : i32, i32
  }
  func.func @transform_16(%arg0: i32) -> (i32, i32) {
    %c0_i32 = arith.constant 0 : i32
    %c0_i32_0 = arith.constant 0 : i32
    %c0_i32_1 = arith.constant 0 : i32
    return %c0_i32, %c0_i32_0 : i32, i32
  }
  func.func @transform_17(%arg0: i32) -> (i32, i32, i32) {
    %c0_i32 = arith.constant 0 : i32
    %c0_i32_0 = arith.constant 0 : i32
    %c0_i32_1 = arith.constant 0 : i32
    return %arg0, %c0_i32, %c0_i32_0 : i32, i32, i32
  }
}

module attributes {stable_mosaic.version = 11 : i64} {
  func.func @_decoder_layer_kernel(%arg0: i32, %arg1: memref<1x8x32xf32, #tpu.memory_space<vmem>>, %arg2: memref<1x8x32xbf16, #tpu.memory_space<vmem>>, %arg3: memref<8x8xf32, #tpu.memory_space<vmem>>, %arg4: memref<1x1x8xf32, #tpu.memory_space<vmem>>, %arg5: memref<1x1x8xf32, #tpu.memory_space<vmem>>, %arg6: memref<32x96xbf16, #tpu.memory_space<vmem>>, %arg7: memref<1x96xf32, #tpu.memory_space<vmem>>, %arg8: memref<32x32xbf16, #tpu.memory_space<vmem>>, %arg9: memref<1x32xf32, #tpu.memory_space<vmem>>, %arg10: memref<1x32xf32, #tpu.memory_space<vmem>>, %arg11: memref<1x32xf32, #tpu.memory_space<vmem>>, %arg12: memref<32x32xbf16, #tpu.memory_space<vmem>>, %arg13: memref<1x32xf32, #tpu.memory_space<vmem>>, %arg14: memref<32x64xbf16, #tpu.memory_space<vmem>>, %arg15: memref<1x64xf32, #tpu.memory_space<vmem>>, %arg16: memref<32x32xbf16, #tpu.memory_space<vmem>>, %arg17: memref<1x32xf32, #tpu.memory_space<vmem>>, %arg18: memref<1x32xf32, #tpu.memory_space<vmem>>, %arg19: memref<1x32xf32, #tpu.memory_space<vmem>>, %arg20: memref<32x64xbf16, #tpu.memory_space<vmem>>, %arg21: memref<1x64xf32, #tpu.memory_space<vmem>>, %arg22: memref<64x32xbf16, #tpu.memory_space<vmem>>, %arg23: memref<1x32xf32, #tpu.memory_space<vmem>>, %arg24: memref<1x32xf32, #tpu.memory_space<vmem>>, %arg25: memref<1x32xf32, #tpu.memory_space<vmem>>, %arg26: memref<1x8x32xf32, #tpu.memory_space<vmem>>) attributes {dimension_semantics = [#tpu.dimension_semantics<parallel>], iteration_bounds = array<i64: 2>, scalar_prefetch = 0 : i64, scratch_operands = 0 : i64, tpu.core_type = #tpu.core_type<tc>, window_params = [{transform_indices = @transform_0, window_bounds = array<i64: 1, 8, 32>}, {transform_indices = @transform_1, window_bounds = array<i64: 1, 8, 32>}, {pipeline_mode = #tpu.pipeline_mode<synchronous>, transform_indices = @transform_2, window_bounds = array<i64: 8, 8>}, {transform_indices = @transform_3, window_bounds = array<i64: 1, 1, 8>}, {transform_indices = @transform_4, window_bounds = array<i64: 1, 1, 8>}, {pipeline_mode = #tpu.pipeline_mode<synchronous>, transform_indices = @transform_5, window_bounds = array<i64: 32, 96>}, {pipeline_mode = #tpu.pipeline_mode<synchronous>, transform_indices = @transform_6, window_bounds = array<i64: 1, 96>}, {pipeline_mode = #tpu.pipeline_mode<synchronous>, transform_indices = @transform_7, window_bounds = array<i64: 32, 32>}, {pipeline_mode = #tpu.pipeline_mode<synchronous>, transform_indices = @transform_8, window_bounds = array<i64: 1, 32>}, {pipeline_mode = #tpu.pipeline_mode<synchronous>, transform_indices = @transform_9, window_bounds = array<i64: 1, 32>}, {pipeline_mode = #tpu.pipeline_mode<synchronous>, transform_indices = @transform_10, window_bounds = array<i64: 1, 32>}, {pipeline_mode = #tpu.pipeline_mode<synchronous>, transform_indices = @transform_11, window_bounds = array<i64: 32, 32>}, {pipeline_mode = #tpu.pipeline_mode<synchronous>, transform_indices = @transform_12, window_bounds = array<i64: 1, 32>}, {pipeline_mode = #tpu.pipeline_mode<synchronous>, transform_indices = @transform_13, window_bounds = array<i64: 32, 64>}, {pipeline_mode = #tpu.pipeline_mode<synchronous>, transform_indices = @transform_14, window_bounds = array<i64: 1, 64>}, {pipeline_mode = #tpu.pipeline_mode<synchronous>, transform_indices = @transform_15, window_bounds = array<i64: 32, 32>}, {pipeline_mode = #tpu.pipeline_mode<synchronous>, transform_indices = @transform_16, window_bounds = array<i64: 1, 32>}, {pipeline_mode = #tpu.pipeline_mode<synchronous>, transform_indices = @transform_17, window_bounds = array<i64: 1, 32>}, {pipeline_mode = #tpu.pipeline_mode<synchronous>, transform_indices = @transform_18, window_bounds = array<i64: 1, 32>}, {pipeline_mode = #tpu.pipeline_mode<synchronous>, transform_indices = @transform_19, window_bounds = array<i64: 32, 64>}, {pipeline_mode = #tpu.pipeline_mode<synchronous>, transform_indices = @transform_20, window_bounds = array<i64: 1, 64>}, {pipeline_mode = #tpu.pipeline_mode<synchronous>, transform_indices = @transform_21, window_bounds = array<i64: 64, 32>}, {pipeline_mode = #tpu.pipeline_mode<synchronous>, transform_indices = @transform_22, window_bounds = array<i64: 1, 32>}, {pipeline_mode = #tpu.pipeline_mode<synchronous>, transform_indices = @transform_23, window_bounds = array<i64: 1, 32>}, {pipeline_mode = #tpu.pipeline_mode<synchronous>, transform_indices = @transform_24, window_bounds = array<i64: 1, 32>}, {transform_indices = @transform_25, window_bounds = array<i64: 1, 8, 32>}]} {
    %c0 = arith.constant 0 : index
    %c0_0 = arith.constant 0 : index
    %c0_1 = arith.constant 0 : index
    %0 = vector.load %arg1[%c0, %c0_0, %c0_1] : memref<1x8x32xf32, #tpu.memory_space<vmem>>, vector<1x8x32xf32>
    %1 = vector.shape_cast %0 : vector<1x8x32xf32> to vector<8x32xf32>
    %c0_2 = arith.constant 0 : index
    %c0_3 = arith.constant 0 : index
    %c0_4 = arith.constant 0 : index
    %2 = vector.load %arg2[%c0_2, %c0_3, %c0_4] : memref<1x8x32xbf16, #tpu.memory_space<vmem>>, vector<1x8x32xbf16>
    %3 = vector.shape_cast %2 : vector<1x8x32xbf16> to vector<8x32xbf16>
    %4 = arith.truncf %1 : vector<8x32xf32> to vector<8x32xbf16>
    %c0_5 = arith.constant 0 : index
    %c0_6 = arith.constant 0 : index
    %5 = vector.load %arg6[%c0_5, %c0_6] : memref<32x96xbf16, #tpu.memory_space<vmem>>, vector<32x96xbf16>
    %cst = arith.constant dense<0.000000e+00> : vector<8x96xf32>
    %6 = tpu.matmul %4, %5, %cst {dimension_numbers = #tpu.dot_dimension_numbers<[1], [0], [0], [1], [0, 0, 1, 1], [], []>} : vector<8x32xbf16>, vector<32x96xbf16>, vector<8x96xf32> -> vector<8x96xf32>
    %c0_7 = arith.constant 0 : index
    %c0_8 = arith.constant 0 : index
    %7 = vector.load %arg7[%c0_7, %c0_8] : memref<1x96xf32, #tpu.memory_space<vmem>>, vector<1x96xf32>
    %8 = vector.broadcast %7 : vector<1x96xf32> to vector<8x96xf32>
    %9 = arith.addf %6, %8 : vector<8x96xf32>
    %c0_9 = arith.constant 0 : index
    %c0_10 = arith.constant 0 : index
    %10 = vector.load %arg3[%c0_9, %c0_10] : memref<8x8xf32, #tpu.memory_space<vmem>>, vector<8x8xf32>
    %c0_11 = arith.constant 0 : index
    %c0_12 = arith.constant 0 : index
    %c0_13 = arith.constant 0 : index
    %11 = vector.load %arg4[%c0_11, %c0_12, %c0_13] : memref<1x1x8xf32, #tpu.memory_space<vmem>>, vector<1x1x8xf32>
    %12 = vector.shape_cast %11 : vector<1x1x8xf32> to vector<1x8xf32>
    %13 = vector.broadcast %12 : vector<1x8xf32> to vector<8x8xf32>
    %14 = arith.addf %10, %13 : vector<8x8xf32>
    %15 = vector.extract_strided_slice %9 {offsets = [0, 0], sizes = [8, 32], strides = [1, 1]} : vector<8x96xf32> to vector<8x32xf32>
    %16 = vector.extract_strided_slice %9 {offsets = [0, 32], sizes = [8, 32], strides = [1, 1]} : vector<8x96xf32> to vector<8x32xf32>
    %17 = vector.extract_strided_slice %9 {offsets = [0, 64], sizes = [8, 32], strides = [1, 1]} : vector<8x96xf32> to vector<8x32xf32>
    %c0_14 = arith.constant 0 : index
    %c0_15 = arith.constant 0 : index
    %18 = vector.load %arg8[%c0_14, %c0_15] : memref<32x32xbf16, #tpu.memory_space<vmem>>, vector<32x32xbf16>
    %c0_16 = arith.constant 0 : index
    %c0_17 = arith.constant 0 : index
    %19 = vector.load %arg9[%c0_16, %c0_17] : memref<1x32xf32, #tpu.memory_space<vmem>>, vector<1x32xf32>
    %20 = vector.extract_strided_slice %15 {offsets = [0, 0], sizes = [8, 8], strides = [1, 1]} : vector<8x32xf32> to vector<8x8xf32>
    %21 = arith.truncf %20 : vector<8x8xf32> to vector<8x8xbf16>
    %22 = vector.extract_strided_slice %15 {offsets = [0, 8], sizes = [8, 8], strides = [1, 1]} : vector<8x32xf32> to vector<8x8xf32>
    %23 = arith.truncf %22 : vector<8x8xf32> to vector<8x8xbf16>
    %24 = vector.extract_strided_slice %15 {offsets = [0, 16], sizes = [8, 8], strides = [1, 1]} : vector<8x32xf32> to vector<8x8xf32>
    %25 = arith.truncf %24 : vector<8x8xf32> to vector<8x8xbf16>
    %26 = vector.extract_strided_slice %15 {offsets = [0, 24], sizes = [8, 8], strides = [1, 1]} : vector<8x32xf32> to vector<8x8xf32>
    %27 = arith.truncf %26 : vector<8x8xf32> to vector<8x8xbf16>
    %28 = vector.shape_cast %21 : vector<8x8xbf16> to vector<1x8x8xbf16>
    %29 = vector.shape_cast %23 : vector<8x8xbf16> to vector<1x8x8xbf16>
    %30 = vector.shape_cast %25 : vector<8x8xbf16> to vector<1x8x8xbf16>
    %31 = vector.shape_cast %27 : vector<8x8xbf16> to vector<1x8x8xbf16>
    %32 = tpu.concatenate %28, %29, %30, %31 in 0 : vector<1x8x8xbf16>, vector<1x8x8xbf16>, vector<1x8x8xbf16>, vector<1x8x8xbf16> -> vector<4x8x8xbf16>
    %33 = vector.extract_strided_slice %16 {offsets = [0, 0], sizes = [8, 8], strides = [1, 1]} : vector<8x32xf32> to vector<8x8xf32>
    %34 = arith.truncf %33 : vector<8x8xf32> to vector<8x8xbf16>
    %35 = vector.extract_strided_slice %16 {offsets = [0, 8], sizes = [8, 8], strides = [1, 1]} : vector<8x32xf32> to vector<8x8xf32>
    %36 = arith.truncf %35 : vector<8x8xf32> to vector<8x8xbf16>
    %37 = vector.extract_strided_slice %16 {offsets = [0, 16], sizes = [8, 8], strides = [1, 1]} : vector<8x32xf32> to vector<8x8xf32>
    %38 = arith.truncf %37 : vector<8x8xf32> to vector<8x8xbf16>
    %39 = vector.extract_strided_slice %16 {offsets = [0, 24], sizes = [8, 8], strides = [1, 1]} : vector<8x32xf32> to vector<8x8xf32>
    %40 = arith.truncf %39 : vector<8x8xf32> to vector<8x8xbf16>
    %41 = vector.shape_cast %34 : vector<8x8xbf16> to vector<1x8x8xbf16>
    %42 = vector.shape_cast %36 : vector<8x8xbf16> to vector<1x8x8xbf16>
    %43 = vector.shape_cast %38 : vector<8x8xbf16> to vector<1x8x8xbf16>
    %44 = vector.shape_cast %40 : vector<8x8xbf16> to vector<1x8x8xbf16>
    %45 = tpu.concatenate %41, %42, %43, %44 in 0 : vector<1x8x8xbf16>, vector<1x8x8xbf16>, vector<1x8x8xbf16>, vector<1x8x8xbf16> -> vector<4x8x8xbf16>
    %46 = vector.extract_strided_slice %17 {offsets = [0, 0], sizes = [8, 8], strides = [1, 1]} : vector<8x32xf32> to vector<8x8xf32>
    %47 = arith.truncf %46 : vector<8x8xf32> to vector<8x8xbf16>
    %48 = vector.extract_strided_slice %17 {offsets = [0, 8], sizes = [8, 8], strides = [1, 1]} : vector<8x32xf32> to vector<8x8xf32>
    %49 = arith.truncf %48 : vector<8x8xf32> to vector<8x8xbf16>
    %50 = vector.extract_strided_slice %17 {offsets = [0, 16], sizes = [8, 8], strides = [1, 1]} : vector<8x32xf32> to vector<8x8xf32>
    %51 = arith.truncf %50 : vector<8x8xf32> to vector<8x8xbf16>
    %52 = vector.extract_strided_slice %17 {offsets = [0, 24], sizes = [8, 8], strides = [1, 1]} : vector<8x32xf32> to vector<8x8xf32>
    %53 = arith.truncf %52 : vector<8x8xf32> to vector<8x8xbf16>
    %54 = vector.shape_cast %47 : vector<8x8xbf16> to vector<1x8x8xbf16>
    %55 = vector.shape_cast %49 : vector<8x8xbf16> to vector<1x8x8xbf16>
    %56 = vector.shape_cast %51 : vector<8x8xbf16> to vector<1x8x8xbf16>
    %57 = vector.shape_cast %53 : vector<8x8xbf16> to vector<1x8x8xbf16>
    %58 = tpu.concatenate %54, %55, %56, %57 in 0 : vector<1x8x8xbf16>, vector<1x8x8xbf16>, vector<1x8x8xbf16>, vector<1x8x8xbf16> -> vector<4x8x8xbf16>
    "tpu.trace_start"() <{level = 10 : i32, message = "htd,hsd->hts"}> : () -> ()
    %cst_18 = arith.constant dense<0.000000e+00> : vector<4x8x8xf32>
    %59 = tpu.matmul %32, %45, %cst_18 {dimension_numbers = #tpu.dot_dimension_numbers<[2], [2], [1], [1], [0, 0, 0, 1, 1, 1], [0], [0]>} : vector<4x8x8xbf16>, vector<4x8x8xbf16>, vector<4x8x8xf32> -> vector<4x8x8xf32>
    "tpu.trace_stop"() : () -> ()
    %cst_19 = arith.constant 0.353553385 : f32
    %60 = vector.broadcast %cst_19 : f32 to vector<4x8x8xf32>
    %61 = arith.mulf %59, %60 : vector<4x8x8xf32>
    %62 = vector.shape_cast %14 : vector<8x8xf32> to vector<1x8x8xf32>
    %63 = vector.broadcast %62 : vector<1x8x8xf32> to vector<4x8x8xf32>
    %64 = arith.addf %61, %63 : vector<4x8x8xf32>
    %cst_20 = arith.constant dense<0xFF800000> : vector<4x8xf32>
    %65 = vector.multi_reduction <maximumf>, %64, %cst_20 [2] : vector<4x8x8xf32> to vector<4x8xf32>
    %66 = vector.shape_cast %65 : vector<4x8xf32> to vector<4x8x1xf32>
    %67 = vector.broadcast %66 : vector<4x8x1xf32> to vector<4x8x8xf32>
    %68 = arith.subf %64, %67 : vector<4x8x8xf32>
    %69 = math.exp %68 : vector<4x8x8xf32>
    %cst_21 = arith.constant dense<0.000000e+00> : vector<4x8xf32>
    %70 = vector.multi_reduction <add>, %69, %cst_21 [2] : vector<4x8x8xf32> to vector<4x8xf32>
    %71 = vector.shape_cast %70 : vector<4x8xf32> to vector<4x8x1xf32>
    %72 = tpu.reciprocal %71 {approx = true} : vector<4x8x1xf32> -> vector<4x8x1xf32>
    %73 = vector.broadcast %72 : vector<4x8x1xf32> to vector<4x8x8xf32>
    %74 = arith.mulf %69, %73 : vector<4x8x8xf32>
    %75 = arith.truncf %74 : vector<4x8x8xf32> to vector<4x8x8xbf16>
    "tpu.trace_start"() <{level = 10 : i32, message = "hts,hsd->htd"}> : () -> ()
    %cst_22 = arith.constant dense<0.000000e+00> : vector<4x8x8xf32>
    %76 = tpu.matmul %75, %58, %cst_22 {dimension_numbers = #tpu.dot_dimension_numbers<[2], [1], [1], [2], [0, 0, 0, 1, 1, 2], [0], [0]>} : vector<4x8x8xbf16>, vector<4x8x8xbf16>, vector<4x8x8xf32> -> vector<4x8x8xf32>
    "tpu.trace_stop"() : () -> ()
    %77 = vector.extract_strided_slice %76 {offsets = [0, 0, 0], sizes = [1, 8, 8], strides = [1, 1, 1]} : vector<4x8x8xf32> to vector<1x8x8xf32>
    %78 = vector.shape_cast %77 : vector<1x8x8xf32> to vector<8x8xf32>
    %79 = vector.extract_strided_slice %76 {offsets = [1, 0, 0], sizes = [1, 8, 8], strides = [1, 1, 1]} : vector<4x8x8xf32> to vector<1x8x8xf32>
    %80 = vector.shape_cast %79 : vector<1x8x8xf32> to vector<8x8xf32>
    %81 = vector.extract_strided_slice %76 {offsets = [2, 0, 0], sizes = [1, 8, 8], strides = [1, 1, 1]} : vector<4x8x8xf32> to vector<1x8x8xf32>
    %82 = vector.shape_cast %81 : vector<1x8x8xf32> to vector<8x8xf32>
    %83 = vector.extract_strided_slice %76 {offsets = [3, 0, 0], sizes = [1, 8, 8], strides = [1, 1, 1]} : vector<4x8x8xf32> to vector<1x8x8xf32>
    %84 = vector.shape_cast %83 : vector<1x8x8xf32> to vector<8x8xf32>
    %85 = tpu.concatenate %78, %80, %82, %84 in 1 : vector<8x8xf32>, vector<8x8xf32>, vector<8x8xf32>, vector<8x8xf32> -> vector<8x32xf32>
    %86 = arith.truncf %85 : vector<8x32xf32> to vector<8x32xbf16>
    %cst_23 = arith.constant dense<0.000000e+00> : vector<8x32xf32>
    %87 = tpu.matmul %86, %18, %cst_23 {dimension_numbers = #tpu.dot_dimension_numbers<[1], [0], [0], [1], [0, 0, 1, 1], [], []>} : vector<8x32xbf16>, vector<32x32xbf16>, vector<8x32xf32> -> vector<8x32xf32>
    %88 = vector.broadcast %19 : vector<1x32xf32> to vector<8x32xf32>
    %89 = arith.addf %87, %88 : vector<8x32xf32>
    %90 = arith.addf %1, %89 : vector<8x32xf32>
    %c0_24 = arith.constant 0 : index
    %c0_25 = arith.constant 0 : index
    %91 = vector.load %arg10[%c0_24, %c0_25] : memref<1x32xf32, #tpu.memory_space<vmem>>, vector<1x32xf32>
    %c0_26 = arith.constant 0 : index
    %c0_27 = arith.constant 0 : index
    %92 = vector.load %arg11[%c0_26, %c0_27] : memref<1x32xf32, #tpu.memory_space<vmem>>, vector<1x32xf32>
    %cst_28 = arith.constant dense<0.000000e+00> : vector<8xf32>
    %93 = vector.multi_reduction <add>, %90, %cst_28 [1] : vector<8x32xf32> to vector<8xf32>
    %94 = vector.shape_cast %93 : vector<8xf32> to vector<8x1xf32>
    %cst_29 = arith.constant 3.200000e+01 : f32
    %95 = vector.broadcast %cst_29 : f32 to vector<8x1xf32>
    %96 = arith.divf %94, %95 : vector<8x1xf32>
    %97 = vector.broadcast %96 : vector<8x1xf32> to vector<8x32xf32>
    %98 = arith.subf %90, %97 : vector<8x32xf32>
    %99 = arith.mulf %98, %98 : vector<8x32xf32>
    %cst_30 = arith.constant dense<0.000000e+00> : vector<8xf32>
    %100 = vector.multi_reduction <add>, %99, %cst_30 [1] : vector<8x32xf32> to vector<8xf32>
    %101 = vector.shape_cast %100 : vector<8xf32> to vector<8x1xf32>
    %cst_31 = arith.constant 3.200000e+01 : f32
    %102 = vector.broadcast %cst_31 : f32 to vector<8x1xf32>
    %103 = arith.divf %101, %102 : vector<8x1xf32>
    %104 = vector.broadcast %96 : vector<8x1xf32> to vector<8x32xf32>
    %105 = arith.subf %90, %104 : vector<8x32xf32>
    %cst_32 = arith.constant 9.99999974E-6 : f32
    %106 = vector.broadcast %cst_32 : f32 to vector<8x1xf32>
    %107 = arith.addf %103, %106 : vector<8x1xf32>
    %108 = math.rsqrt %107 : vector<8x1xf32>
    %109 = vector.broadcast %108 : vector<8x1xf32> to vector<8x32xf32>
    %110 = arith.mulf %105, %109 : vector<8x32xf32>
    %111 = vector.broadcast %91 : vector<1x32xf32> to vector<8x32xf32>
    %112 = arith.mulf %110, %111 : vector<8x32xf32>
    %113 = vector.broadcast %92 : vector<1x32xf32> to vector<8x32xf32>
    %114 = arith.addf %112, %113 : vector<8x32xf32>
    %115 = arith.truncf %114 : vector<8x32xf32> to vector<8x32xbf16>
    %c0_33 = arith.constant 0 : index
    %c0_34 = arith.constant 0 : index
    %116 = vector.load %arg12[%c0_33, %c0_34] : memref<32x32xbf16, #tpu.memory_space<vmem>>, vector<32x32xbf16>
    %cst_35 = arith.constant dense<0.000000e+00> : vector<8x32xf32>
    %117 = tpu.matmul %115, %116, %cst_35 {dimension_numbers = #tpu.dot_dimension_numbers<[1], [0], [0], [1], [0, 0, 1, 1], [], []>} : vector<8x32xbf16>, vector<32x32xbf16>, vector<8x32xf32> -> vector<8x32xf32>
    %c0_36 = arith.constant 0 : index
    %c0_37 = arith.constant 0 : index
    %118 = vector.load %arg13[%c0_36, %c0_37] : memref<1x32xf32, #tpu.memory_space<vmem>>, vector<1x32xf32>
    %119 = vector.broadcast %118 : vector<1x32xf32> to vector<8x32xf32>
    %120 = arith.addf %117, %119 : vector<8x32xf32>
    %c0_38 = arith.constant 0 : index
    %c0_39 = arith.constant 0 : index
    %121 = vector.load %arg14[%c0_38, %c0_39] : memref<32x64xbf16, #tpu.memory_space<vmem>>, vector<32x64xbf16>
    %cst_40 = arith.constant dense<0.000000e+00> : vector<8x64xf32>
    %122 = tpu.matmul %3, %121, %cst_40 {dimension_numbers = #tpu.dot_dimension_numbers<[1], [0], [0], [1], [0, 0, 1, 1], [], []>} : vector<8x32xbf16>, vector<32x64xbf16>, vector<8x64xf32> -> vector<8x64xf32>
    %c0_41 = arith.constant 0 : index
    %c0_42 = arith.constant 0 : index
    %123 = vector.load %arg15[%c0_41, %c0_42] : memref<1x64xf32, #tpu.memory_space<vmem>>, vector<1x64xf32>
    %124 = vector.broadcast %123 : vector<1x64xf32> to vector<8x64xf32>
    %125 = arith.addf %122, %124 : vector<8x64xf32>
    %c0_43 = arith.constant 0 : index
    %c0_44 = arith.constant 0 : index
    %c0_45 = arith.constant 0 : index
    %126 = vector.load %arg5[%c0_43, %c0_44, %c0_45] : memref<1x1x8xf32, #tpu.memory_space<vmem>>, vector<1x1x8xf32>
    %127 = vector.shape_cast %126 : vector<1x1x8xf32> to vector<1x8xf32>
    %128 = vector.extract_strided_slice %125 {offsets = [0, 0], sizes = [8, 32], strides = [1, 1]} : vector<8x64xf32> to vector<8x32xf32>
    %129 = vector.extract_strided_slice %125 {offsets = [0, 32], sizes = [8, 32], strides = [1, 1]} : vector<8x64xf32> to vector<8x32xf32>
    %c0_46 = arith.constant 0 : index
    %c0_47 = arith.constant 0 : index
    %130 = vector.load %arg16[%c0_46, %c0_47] : memref<32x32xbf16, #tpu.memory_space<vmem>>, vector<32x32xbf16>
    %c0_48 = arith.constant 0 : index
    %c0_49 = arith.constant 0 : index
    %131 = vector.load %arg17[%c0_48, %c0_49] : memref<1x32xf32, #tpu.memory_space<vmem>>, vector<1x32xf32>
    %132 = vector.extract_strided_slice %120 {offsets = [0, 0], sizes = [8, 8], strides = [1, 1]} : vector<8x32xf32> to vector<8x8xf32>
    %133 = arith.truncf %132 : vector<8x8xf32> to vector<8x8xbf16>
    %134 = vector.extract_strided_slice %120 {offsets = [0, 8], sizes = [8, 8], strides = [1, 1]} : vector<8x32xf32> to vector<8x8xf32>
    %135 = arith.truncf %134 : vector<8x8xf32> to vector<8x8xbf16>
    %136 = vector.extract_strided_slice %120 {offsets = [0, 16], sizes = [8, 8], strides = [1, 1]} : vector<8x32xf32> to vector<8x8xf32>
    %137 = arith.truncf %136 : vector<8x8xf32> to vector<8x8xbf16>
    %138 = vector.extract_strided_slice %120 {offsets = [0, 24], sizes = [8, 8], strides = [1, 1]} : vector<8x32xf32> to vector<8x8xf32>
    %139 = arith.truncf %138 : vector<8x8xf32> to vector<8x8xbf16>
    %140 = vector.shape_cast %133 : vector<8x8xbf16> to vector<1x8x8xbf16>
    %141 = vector.shape_cast %135 : vector<8x8xbf16> to vector<1x8x8xbf16>
    %142 = vector.shape_cast %137 : vector<8x8xbf16> to vector<1x8x8xbf16>
    %143 = vector.shape_cast %139 : vector<8x8xbf16> to vector<1x8x8xbf16>
    %144 = tpu.concatenate %140, %141, %142, %143 in 0 : vector<1x8x8xbf16>, vector<1x8x8xbf16>, vector<1x8x8xbf16>, vector<1x8x8xbf16> -> vector<4x8x8xbf16>
    %145 = vector.extract_strided_slice %128 {offsets = [0, 0], sizes = [8, 8], strides = [1, 1]} : vector<8x32xf32> to vector<8x8xf32>
    %146 = arith.truncf %145 : vector<8x8xf32> to vector<8x8xbf16>
    %147 = vector.extract_strided_slice %128 {offsets = [0, 8], sizes = [8, 8], strides = [1, 1]} : vector<8x32xf32> to vector<8x8xf32>
    %148 = arith.truncf %147 : vector<8x8xf32> to vector<8x8xbf16>
    %149 = vector.extract_strided_slice %128 {offsets = [0, 16], sizes = [8, 8], strides = [1, 1]} : vector<8x32xf32> to vector<8x8xf32>
    %150 = arith.truncf %149 : vector<8x8xf32> to vector<8x8xbf16>
    %151 = vector.extract_strided_slice %128 {offsets = [0, 24], sizes = [8, 8], strides = [1, 1]} : vector<8x32xf32> to vector<8x8xf32>
    %152 = arith.truncf %151 : vector<8x8xf32> to vector<8x8xbf16>
    %153 = vector.shape_cast %146 : vector<8x8xbf16> to vector<1x8x8xbf16>
    %154 = vector.shape_cast %148 : vector<8x8xbf16> to vector<1x8x8xbf16>
    %155 = vector.shape_cast %150 : vector<8x8xbf16> to vector<1x8x8xbf16>
    %156 = vector.shape_cast %152 : vector<8x8xbf16> to vector<1x8x8xbf16>
    %157 = tpu.concatenate %153, %154, %155, %156 in 0 : vector<1x8x8xbf16>, vector<1x8x8xbf16>, vector<1x8x8xbf16>, vector<1x8x8xbf16> -> vector<4x8x8xbf16>
    %158 = vector.extract_strided_slice %129 {offsets = [0, 0], sizes = [8, 8], strides = [1, 1]} : vector<8x32xf32> to vector<8x8xf32>
    %159 = arith.truncf %158 : vector<8x8xf32> to vector<8x8xbf16>
    %160 = vector.extract_strided_slice %129 {offsets = [0, 8], sizes = [8, 8], strides = [1, 1]} : vector<8x32xf32> to vector<8x8xf32>
    %161 = arith.truncf %160 : vector<8x8xf32> to vector<8x8xbf16>
    %162 = vector.extract_strided_slice %129 {offsets = [0, 16], sizes = [8, 8], strides = [1, 1]} : vector<8x32xf32> to vector<8x8xf32>
    %163 = arith.truncf %162 : vector<8x8xf32> to vector<8x8xbf16>
    %164 = vector.extract_strided_slice %129 {offsets = [0, 24], sizes = [8, 8], strides = [1, 1]} : vector<8x32xf32> to vector<8x8xf32>
    %165 = arith.truncf %164 : vector<8x8xf32> to vector<8x8xbf16>
    %166 = vector.shape_cast %159 : vector<8x8xbf16> to vector<1x8x8xbf16>
    %167 = vector.shape_cast %161 : vector<8x8xbf16> to vector<1x8x8xbf16>
    %168 = vector.shape_cast %163 : vector<8x8xbf16> to vector<1x8x8xbf16>
    %169 = vector.shape_cast %165 : vector<8x8xbf16> to vector<1x8x8xbf16>
    %170 = tpu.concatenate %166, %167, %168, %169 in 0 : vector<1x8x8xbf16>, vector<1x8x8xbf16>, vector<1x8x8xbf16>, vector<1x8x8xbf16> -> vector<4x8x8xbf16>
    "tpu.trace_start"() <{level = 10 : i32, message = "htd,hsd->hts"}> : () -> ()
    %cst_50 = arith.constant dense<0.000000e+00> : vector<4x8x8xf32>
    %171 = tpu.matmul %144, %157, %cst_50 {dimension_numbers = #tpu.dot_dimension_numbers<[2], [2], [1], [1], [0, 0, 0, 1, 1, 1], [0], [0]>} : vector<4x8x8xbf16>, vector<4x8x8xbf16>, vector<4x8x8xf32> -> vector<4x8x8xf32>
    "tpu.trace_stop"() : () -> ()
    %cst_51 = arith.constant 0.353553385 : f32
    %172 = vector.broadcast %cst_51 : f32 to vector<4x8x8xf32>
    %173 = arith.mulf %171, %172 : vector<4x8x8xf32>
    %174 = vector.shape_cast %127 : vector<1x8xf32> to vector<1x1x8xf32>
    %175 = vector.broadcast %174 : vector<1x1x8xf32> to vector<4x8x8xf32>
    %176 = arith.addf %173, %175 : vector<4x8x8xf32>
    %cst_52 = arith.constant dense<0xFF800000> : vector<4x8xf32>
    %177 = vector.multi_reduction <maximumf>, %176, %cst_52 [2] : vector<4x8x8xf32> to vector<4x8xf32>
    %178 = vector.shape_cast %177 : vector<4x8xf32> to vector<4x8x1xf32>
    %179 = vector.broadcast %178 : vector<4x8x1xf32> to vector<4x8x8xf32>
    %180 = arith.subf %176, %179 : vector<4x8x8xf32>
    %181 = math.exp %180 : vector<4x8x8xf32>
    %cst_53 = arith.constant dense<0.000000e+00> : vector<4x8xf32>
    %182 = vector.multi_reduction <add>, %181, %cst_53 [2] : vector<4x8x8xf32> to vector<4x8xf32>
    %183 = vector.shape_cast %182 : vector<4x8xf32> to vector<4x8x1xf32>
    %184 = tpu.reciprocal %183 {approx = true} : vector<4x8x1xf32> -> vector<4x8x1xf32>
    %185 = vector.broadcast %184 : vector<4x8x1xf32> to vector<4x8x8xf32>
    %186 = arith.mulf %181, %185 : vector<4x8x8xf32>
    %187 = arith.truncf %186 : vector<4x8x8xf32> to vector<4x8x8xbf16>
    "tpu.trace_start"() <{level = 10 : i32, message = "hts,hsd->htd"}> : () -> ()
    %cst_54 = arith.constant dense<0.000000e+00> : vector<4x8x8xf32>
    %188 = tpu.matmul %187, %170, %cst_54 {dimension_numbers = #tpu.dot_dimension_numbers<[2], [1], [1], [2], [0, 0, 0, 1, 1, 2], [0], [0]>} : vector<4x8x8xbf16>, vector<4x8x8xbf16>, vector<4x8x8xf32> -> vector<4x8x8xf32>
    "tpu.trace_stop"() : () -> ()
    %189 = vector.extract_strided_slice %188 {offsets = [0, 0, 0], sizes = [1, 8, 8], strides = [1, 1, 1]} : vector<4x8x8xf32> to vector<1x8x8xf32>
    %190 = vector.shape_cast %189 : vector<1x8x8xf32> to vector<8x8xf32>
    %191 = vector.extract_strided_slice %188 {offsets = [1, 0, 0], sizes = [1, 8, 8], strides = [1, 1, 1]} : vector<4x8x8xf32> to vector<1x8x8xf32>
    %192 = vector.shape_cast %191 : vector<1x8x8xf32> to vector<8x8xf32>
    %193 = vector.extract_strided_slice %188 {offsets = [2, 0, 0], sizes = [1, 8, 8], strides = [1, 1, 1]} : vector<4x8x8xf32> to vector<1x8x8xf32>
    %194 = vector.shape_cast %193 : vector<1x8x8xf32> to vector<8x8xf32>
    %195 = vector.extract_strided_slice %188 {offsets = [3, 0, 0], sizes = [1, 8, 8], strides = [1, 1, 1]} : vector<4x8x8xf32> to vector<1x8x8xf32>
    %196 = vector.shape_cast %195 : vector<1x8x8xf32> to vector<8x8xf32>
    %197 = tpu.concatenate %190, %192, %194, %196 in 1 : vector<8x8xf32>, vector<8x8xf32>, vector<8x8xf32>, vector<8x8xf32> -> vector<8x32xf32>
    %198 = arith.truncf %197 : vector<8x32xf32> to vector<8x32xbf16>
    %cst_55 = arith.constant dense<0.000000e+00> : vector<8x32xf32>
    %199 = tpu.matmul %198, %130, %cst_55 {dimension_numbers = #tpu.dot_dimension_numbers<[1], [0], [0], [1], [0, 0, 1, 1], [], []>} : vector<8x32xbf16>, vector<32x32xbf16>, vector<8x32xf32> -> vector<8x32xf32>
    %200 = vector.broadcast %131 : vector<1x32xf32> to vector<8x32xf32>
    %201 = arith.addf %199, %200 : vector<8x32xf32>
    %202 = arith.addf %114, %201 : vector<8x32xf32>
    %c0_56 = arith.constant 0 : index
    %c0_57 = arith.constant 0 : index
    %203 = vector.load %arg18[%c0_56, %c0_57] : memref<1x32xf32, #tpu.memory_space<vmem>>, vector<1x32xf32>
    %c0_58 = arith.constant 0 : index
    %c0_59 = arith.constant 0 : index
    %204 = vector.load %arg19[%c0_58, %c0_59] : memref<1x32xf32, #tpu.memory_space<vmem>>, vector<1x32xf32>
    %cst_60 = arith.constant dense<0.000000e+00> : vector<8xf32>
    %205 = vector.multi_reduction <add>, %202, %cst_60 [1] : vector<8x32xf32> to vector<8xf32>
    %206 = vector.shape_cast %205 : vector<8xf32> to vector<8x1xf32>
    %cst_61 = arith.constant 3.200000e+01 : f32
    %207 = vector.broadcast %cst_61 : f32 to vector<8x1xf32>
    %208 = arith.divf %206, %207 : vector<8x1xf32>
    %209 = vector.broadcast %208 : vector<8x1xf32> to vector<8x32xf32>
    %210 = arith.subf %202, %209 : vector<8x32xf32>
    %211 = arith.mulf %210, %210 : vector<8x32xf32>
    %cst_62 = arith.constant dense<0.000000e+00> : vector<8xf32>
    %212 = vector.multi_reduction <add>, %211, %cst_62 [1] : vector<8x32xf32> to vector<8xf32>
    %213 = vector.shape_cast %212 : vector<8xf32> to vector<8x1xf32>
    %cst_63 = arith.constant 3.200000e+01 : f32
    %214 = vector.broadcast %cst_63 : f32 to vector<8x1xf32>
    %215 = arith.divf %213, %214 : vector<8x1xf32>
    %216 = vector.broadcast %208 : vector<8x1xf32> to vector<8x32xf32>
    %217 = arith.subf %202, %216 : vector<8x32xf32>
    %cst_64 = arith.constant 9.99999974E-6 : f32
    %218 = vector.broadcast %cst_64 : f32 to vector<8x1xf32>
    %219 = arith.addf %215, %218 : vector<8x1xf32>
    %220 = math.rsqrt %219 : vector<8x1xf32>
    %221 = vector.broadcast %220 : vector<8x1xf32> to vector<8x32xf32>
    %222 = arith.mulf %217, %221 : vector<8x32xf32>
    %223 = vector.broadcast %203 : vector<1x32xf32> to vector<8x32xf32>
    %224 = arith.mulf %222, %223 : vector<8x32xf32>
    %225 = vector.broadcast %204 : vector<1x32xf32> to vector<8x32xf32>
    %226 = arith.addf %224, %225 : vector<8x32xf32>
    %c0_65 = arith.constant 0 : index
    %c0_66 = arith.constant 0 : index
    %227 = vector.load %arg20[%c0_65, %c0_66] : memref<32x64xbf16, #tpu.memory_space<vmem>>, vector<32x64xbf16>
    %c0_67 = arith.constant 0 : index
    %c0_68 = arith.constant 0 : index
    %228 = vector.load %arg21[%c0_67, %c0_68] : memref<1x64xf32, #tpu.memory_space<vmem>>, vector<1x64xf32>
    %c0_69 = arith.constant 0 : index
    %c0_70 = arith.constant 0 : index
    %229 = vector.load %arg22[%c0_69, %c0_70] : memref<64x32xbf16, #tpu.memory_space<vmem>>, vector<64x32xbf16>
    %c0_71 = arith.constant 0 : index
    %c0_72 = arith.constant 0 : index
    %230 = vector.load %arg23[%c0_71, %c0_72] : memref<1x32xf32, #tpu.memory_space<vmem>>, vector<1x32xf32>
    %231 = arith.truncf %226 : vector<8x32xf32> to vector<8x32xbf16>
    %cst_73 = arith.constant dense<0.000000e+00> : vector<8x64xf32>
    %232 = tpu.matmul %231, %227, %cst_73 {dimension_numbers = #tpu.dot_dimension_numbers<[1], [0], [0], [1], [0, 0, 1, 1], [], []>} : vector<8x32xbf16>, vector<32x64xbf16>, vector<8x64xf32> -> vector<8x64xf32>
    %233 = vector.broadcast %228 : vector<1x64xf32> to vector<8x64xf32>
    %234 = arith.addf %232, %233 : vector<8x64xf32>
    %cst_74 = arith.constant 0.000000e+00 : f32
    %235 = vector.broadcast %cst_74 : f32 to vector<8x64xf32>
    %236 = arith.maximumf %234, %235 : vector<8x64xf32>
    %237 = arith.truncf %236 : vector<8x64xf32> to vector<8x64xbf16>
    %cst_75 = arith.constant dense<0.000000e+00> : vector<8x32xf32>
    %238 = tpu.matmul %237, %229, %cst_75 {dimension_numbers = #tpu.dot_dimension_numbers<[1], [0], [0], [1], [0, 0, 1, 1], [], []>} : vector<8x64xbf16>, vector<64x32xbf16>, vector<8x32xf32> -> vector<8x32xf32>
    %239 = vector.broadcast %230 : vector<1x32xf32> to vector<8x32xf32>
    %240 = arith.addf %238, %239 : vector<8x32xf32>
    %241 = arith.addf %226, %240 : vector<8x32xf32>
    %c0_76 = arith.constant 0 : index
    %c0_77 = arith.constant 0 : index
    %242 = vector.load %arg24[%c0_76, %c0_77] : memref<1x32xf32, #tpu.memory_space<vmem>>, vector<1x32xf32>
    %c0_78 = arith.constant 0 : index
    %c0_79 = arith.constant 0 : index
    %243 = vector.load %arg25[%c0_78, %c0_79] : memref<1x32xf32, #tpu.memory_space<vmem>>, vector<1x32xf32>
    %cst_80 = arith.constant dense<0.000000e+00> : vector<8xf32>
    %244 = vector.multi_reduction <add>, %241, %cst_80 [1] : vector<8x32xf32> to vector<8xf32>
    %245 = vector.shape_cast %244 : vector<8xf32> to vector<8x1xf32>
    %cst_81 = arith.constant 3.200000e+01 : f32
    %246 = vector.broadcast %cst_81 : f32 to vector<8x1xf32>
    %247 = arith.divf %245, %246 : vector<8x1xf32>
    %248 = vector.broadcast %247 : vector<8x1xf32> to vector<8x32xf32>
    %249 = arith.subf %241, %248 : vector<8x32xf32>
    %250 = arith.mulf %249, %249 : vector<8x32xf32>
    %cst_82 = arith.constant dense<0.000000e+00> : vector<8xf32>
    %251 = vector.multi_reduction <add>, %250, %cst_82 [1] : vector<8x32xf32> to vector<8xf32>
    %252 = vector.shape_cast %251 : vector<8xf32> to vector<8x1xf32>
    %cst_83 = arith.constant 3.200000e+01 : f32
    %253 = vector.broadcast %cst_83 : f32 to vector<8x1xf32>
    %254 = arith.divf %252, %253 : vector<8x1xf32>
    %255 = vector.broadcast %247 : vector<8x1xf32> to vector<8x32xf32>
    %256 = arith.subf %241, %255 : vector<8x32xf32>
    %cst_84 = arith.constant 9.99999974E-6 : f32
    %257 = vector.broadcast %cst_84 : f32 to vector<8x1xf32>
    %258 = arith.addf %254, %257 : vector<8x1xf32>
    %259 = math.rsqrt %258 : vector<8x1xf32>
    %260 = vector.broadcast %259 : vector<8x1xf32> to vector<8x32xf32>
    %261 = arith.mulf %256, %260 : vector<8x32xf32>
    %262 = vector.broadcast %242 : vector<1x32xf32> to vector<8x32xf32>
    %263 = arith.mulf %261, %262 : vector<8x32xf32>
    %264 = vector.broadcast %243 : vector<1x32xf32> to vector<8x32xf32>
    %265 = arith.addf %263, %264 : vector<8x32xf32>
    %266 = vector.shape_cast %265 : vector<8x32xf32> to vector<1x8x32xf32>
    %c0_85 = arith.constant 0 : index
    %c0_86 = arith.constant 0 : index
    %c0_87 = arith.constant 0 : index
    %267 = vector.load %arg26[%c0_85, %c0_86, %c0_87] : memref<1x8x32xf32, #tpu.memory_space<vmem>>, vector<1x8x32xf32>
    tpu.vector_store %arg26[%c0_85, %c0_86, %c0_87], %266 {strides = array<i32>} : memref<1x8x32xf32, #tpu.memory_space<vmem>>, vector<1x8x32xf32>,
    return
  }
  func.func @transform_0(%arg0: i32) -> (i32, i32, i32) {
    %c0_i32 = arith.constant 0 : i32
    %c0_i32_0 = arith.constant 0 : i32
    %c0_i32_1 = arith.constant 0 : i32
    return %arg0, %c0_i32, %c0_i32_0 : i32, i32, i32
  }
  func.func @transform_1(%arg0: i32) -> (i32, i32, i32) {
    %c0_i32 = arith.constant 0 : i32
    %c0_i32_0 = arith.constant 0 : i32
    %c0_i32_1 = arith.constant 0 : i32
    return %arg0, %c0_i32, %c0_i32_0 : i32, i32, i32
  }
  func.func @transform_2(%arg0: i32) -> (i32, i32) {
    %c0_i32 = arith.constant 0 : i32
    %c0_i32_0 = arith.constant 0 : i32
    %c0_i32_1 = arith.constant 0 : i32
    return %c0_i32, %c0_i32_0 : i32, i32
  }
  func.func @transform_3(%arg0: i32) -> (i32, i32, i32) {
    %c0_i32 = arith.constant 0 : i32
    %c0_i32_0 = arith.constant 0 : i32
    %c0_i32_1 = arith.constant 0 : i32
    return %arg0, %c0_i32, %c0_i32_0 : i32, i32, i32
  }
  func.func @transform_4(%arg0: i32) -> (i32, i32, i32) {
    %c0_i32 = arith.constant 0 : i32
    %c0_i32_0 = arith.constant 0 : i32
    %c0_i32_1 = arith.constant 0 : i32
    return %arg0, %c0_i32, %c0_i32_0 : i32, i32, i32
  }
  func.func @transform_5(%arg0: i32) -> (i32, i32) {
    %c0_i32 = arith.constant 0 : i32
    %c0_i32_0 = arith.constant 0 : i32
    %c0_i32_1 = arith.constant 0 : i32
    return %c0_i32, %c0_i32_0 : i32, i32
  }
  func.func @transform_6(%arg0: i32) -> (i32, i32) {
    %c0_i32 = arith.constant 0 : i32
    %c0_i32_0 = arith.constant 0 : i32
    %c0_i32_1 = arith.constant 0 : i32
    return %c0_i32, %c0_i32_0 : i32, i32
  }
  func.func @transform_7(%arg0: i32) -> (i32, i32) {
    %c0_i32 = arith.constant 0 : i32
    %c0_i32_0 = arith.constant 0 : i32
    %c0_i32_1 = arith.constant 0 : i32
    return %c0_i32, %c0_i32_0 : i32, i32
  }
  func.func @transform_8(%arg0: i32) -> (i32, i32) {
    %c0_i32 = arith.constant 0 : i32
    %c0_i32_0 = arith.constant 0 : i32
    %c0_i32_1 = arith.constant 0 : i32
    return %c0_i32, %c0_i32_0 : i32, i32
  }
  func.func @transform_9(%arg0: i32) -> (i32, i32) {
    %c0_i32 = arith.constant 0 : i32
    %c0_i32_0 = arith.constant 0 : i32
    %c0_i32_1 = arith.constant 0 : i32
    return %c0_i32, %c0_i32_0 : i32, i32
  }
  func.func @transform_10(%arg0: i32) -> (i32, i32) {
    %c0_i32 = arith.constant 0 : i32
    %c0_i32_0 = arith.constant 0 : i32
    %c0_i32_1 = arith.constant 0 : i32
    return %c0_i32, %c0_i32_0 : i32, i32
  }
  func.func @transform_11(%arg0: i32) -> (i32, i32) {
    %c0_i32 = arith.constant 0 : i32
    %c0_i32_0 = arith.constant 0 : i32
    %c0_i32_1 = arith.constant 0 : i32
    return %c0_i32, %c0_i32_0 : i32, i32
  }
  func.func @transform_12(%arg0: i32) -> (i32, i32) {
    %c0_i32 = arith.constant 0 : i32
    %c0_i32_0 = arith.constant 0 : i32
    %c0_i32_1 = arith.constant 0 : i32
    return %c0_i32, %c0_i32_0 : i32, i32
  }
  func.func @transform_13(%arg0: i32) -> (i32, i32) {
    %c0_i32 = arith.constant 0 : i32
    %c0_i32_0 = arith.constant 0 : i32
    %c0_i32_1 = arith.constant 0 : i32
    return %c0_i32, %c0_i32_0 : i32, i32
  }
  func.func @transform_14(%arg0: i32) -> (i32, i32) {
    %c0_i32 = arith.constant 0 : i32
    %c0_i32_0 = arith.constant 0 : i32
    %c0_i32_1 = arith.constant 0 : i32
    return %c0_i32, %c0_i32_0 : i32, i32
  }
  func.func @transform_15(%arg0: i32) -> (i32, i32) {
    %c0_i32 = arith.constant 0 : i32
    %c0_i32_0 = arith.constant 0 : i32
    %c0_i32_1 = arith.constant 0 : i32
    return %c0_i32, %c0_i32_0 : i32, i32
  }
  func.func @transform_16(%arg0: i32) -> (i32, i32) {
    %c0_i32 = arith.constant 0 : i32
    %c0_i32_0 = arith.constant 0 : i32
    %c0_i32_1 = arith.constant 0 : i32
    return %c0_i32, %c0_i32_0 : i32, i32
  }
  func.func @transform_17(%arg0: i32) -> (i32, i32) {
    %c0_i32 = arith.constant 0 : i32
    %c0_i32_0 = arith.constant 0 : i32
    %c0_i32_1 = arith.constant 0 : i32
    return %c0_i32, %c0_i32_0 : i32, i32
  }
  func.func @transform_18(%arg0: i32) -> (i32, i32) {
    %c0_i32 = arith.constant 0 : i32
    %c0_i32_0 = arith.constant 0 : i32
    %c0_i32_1 = arith.constant 0 : i32
    return %c0_i32, %c0_i32_0 : i32, i32
  }
  func.func @transform_19(%arg0: i32) -> (i32, i32) {
    %c0_i32 = arith.constant 0 : i32
    %c0_i32_0 = arith.constant 0 : i32
    %c0_i32_1 = arith.constant 0 : i32
    return %c0_i32, %c0_i32_0 : i32, i32
  }
  func.func @transform_20(%arg0: i32) -> (i32, i32) {
    %c0_i32 = arith.constant 0 : i32
    %c0_i32_0 = arith.constant 0 : i32
    %c0_i32_1 = arith.constant 0 : i32
    return %c0_i32, %c0_i32_0 : i32, i32
  }
  func.func @transform_21(%arg0: i32) -> (i32, i32) {
    %c0_i32 = arith.constant 0 : i32
    %c0_i32_0 = arith.constant 0 : i32
    %c0_i32_1 = arith.constant 0 : i32
    return %c0_i32, %c0_i32_0 : i32, i32
  }
  func.func @transform_22(%arg0: i32) -> (i32, i32) {
    %c0_i32 = arith.constant 0 : i32
    %c0_i32_0 = arith.constant 0 : i32
    %c0_i32_1 = arith.constant 0 : i32
    return %c0_i32, %c0_i32_0 : i32, i32
  }
  func.func @transform_23(%arg0: i32) -> (i32, i32) {
    %c0_i32 = arith.constant 0 : i32
    %c0_i32_0 = arith.constant 0 : i32
    %c0_i32_1 = arith.constant 0 : i32
    return %c0_i32, %c0_i32_0 : i32, i32
  }
  func.func @transform_24(%arg0: i32) -> (i32, i32) {
    %c0_i32 = arith.constant 0 : i32
    %c0_i32_0 = arith.constant 0 : i32
    %c0_i32_1 = arith.constant 0 : i32
    return %c0_i32, %c0_i32_0 : i32, i32
  }
  func.func @transform_25(%arg0: i32) -> (i32, i32, i32) {
    %c0_i32 = arith.constant 0 : i32
    %c0_i32_0 = arith.constant 0 : i32
    %c0_i32_1 = arith.constant 0 : i32
    return %arg0, %c0_i32, %c0_i32_0 : i32, i32, i32
  }
}

module attributes {stable_mosaic.version = 11 : i64} {
  func.func @_encoder_layer_kernel(%arg0: i32, %arg1: memref<1x8x32xf32, #tpu.memory_space<vmem>>, %arg2: memref<8x8xf32, #tpu.memory_space<vmem>>, %arg3: memref<1x1x8xf32, #tpu.memory_space<vmem>>, %arg4: memref<32x96xbf16, #tpu.memory_space<vmem>>, %arg5: memref<1x96xf32, #tpu.memory_space<vmem>>, %arg6: memref<32x32xbf16, #tpu.memory_space<vmem>>, %arg7: memref<1x32xf32, #tpu.memory_space<vmem>>, %arg8: memref<1x32xf32, #tpu.memory_space<vmem>>, %arg9: memref<1x32xf32, #tpu.memory_space<vmem>>, %arg10: memref<32x64xbf16, #tpu.memory_space<vmem>>, %arg11: memref<1x64xf32, #tpu.memory_space<vmem>>, %arg12: memref<64x32xbf16, #tpu.memory_space<vmem>>, %arg13: memref<1x32xf32, #tpu.memory_space<vmem>>, %arg14: memref<1x32xf32, #tpu.memory_space<vmem>>, %arg15: memref<1x32xf32, #tpu.memory_space<vmem>>, %arg16: memref<1x32xf32, #tpu.memory_space<vmem>>, %arg17: memref<1x32xf32, #tpu.memory_space<vmem>>, %arg18: memref<1x8x32xbf16, #tpu.memory_space<vmem>>) attributes {dimension_semantics = [#tpu.dimension_semantics<parallel>], iteration_bounds = array<i64: 2>, scalar_prefetch = 0 : i64, scratch_operands = 0 : i64, tpu.core_type = #tpu.core_type<tc>, window_params = [{transform_indices = @transform_0, window_bounds = array<i64: 1, 8, 32>}, {pipeline_mode = #tpu.pipeline_mode<synchronous>, transform_indices = @transform_1, window_bounds = array<i64: 8, 8>}, {transform_indices = @transform_2, window_bounds = array<i64: 1, 1, 8>}, {pipeline_mode = #tpu.pipeline_mode<synchronous>, transform_indices = @transform_3, window_bounds = array<i64: 32, 96>}, {pipeline_mode = #tpu.pipeline_mode<synchronous>, transform_indices = @transform_4, window_bounds = array<i64: 1, 96>}, {pipeline_mode = #tpu.pipeline_mode<synchronous>, transform_indices = @transform_5, window_bounds = array<i64: 32, 32>}, {pipeline_mode = #tpu.pipeline_mode<synchronous>, transform_indices = @transform_6, window_bounds = array<i64: 1, 32>}, {pipeline_mode = #tpu.pipeline_mode<synchronous>, transform_indices = @transform_7, window_bounds = array<i64: 1, 32>}, {pipeline_mode = #tpu.pipeline_mode<synchronous>, transform_indices = @transform_8, window_bounds = array<i64: 1, 32>}, {pipeline_mode = #tpu.pipeline_mode<synchronous>, transform_indices = @transform_9, window_bounds = array<i64: 32, 64>}, {pipeline_mode = #tpu.pipeline_mode<synchronous>, transform_indices = @transform_10, window_bounds = array<i64: 1, 64>}, {pipeline_mode = #tpu.pipeline_mode<synchronous>, transform_indices = @transform_11, window_bounds = array<i64: 64, 32>}, {pipeline_mode = #tpu.pipeline_mode<synchronous>, transform_indices = @transform_12, window_bounds = array<i64: 1, 32>}, {pipeline_mode = #tpu.pipeline_mode<synchronous>, transform_indices = @transform_13, window_bounds = array<i64: 1, 32>}, {pipeline_mode = #tpu.pipeline_mode<synchronous>, transform_indices = @transform_14, window_bounds = array<i64: 1, 32>}, {pipeline_mode = #tpu.pipeline_mode<synchronous>, transform_indices = @transform_15, window_bounds = array<i64: 1, 32>}, {pipeline_mode = #tpu.pipeline_mode<synchronous>, transform_indices = @transform_16, window_bounds = array<i64: 1, 32>}, {transform_indices = @transform_17, window_bounds = array<i64: 1, 8, 32>}]} {
    %c0 = arith.constant 0 : index
    %c0_0 = arith.constant 0 : index
    %c0_1 = arith.constant 0 : index
    %0 = vector.load %arg1[%c0, %c0_0, %c0_1] : memref<1x8x32xf32, #tpu.memory_space<vmem>>, vector<1x8x32xf32>
    %1 = vector.shape_cast %0 : vector<1x8x32xf32> to vector<8x32xf32>
    %2 = arith.truncf %1 : vector<8x32xf32> to vector<8x32xbf16>
    %c0_2 = arith.constant 0 : index
    %c0_3 = arith.constant 0 : index
    %3 = vector.load %arg4[%c0_2, %c0_3] : memref<32x96xbf16, #tpu.memory_space<vmem>>, vector<32x96xbf16>
    %cst = arith.constant dense<0.000000e+00> : vector<8x96xf32>
    %4 = tpu.matmul %2, %3, %cst {dimension_numbers = #tpu.dot_dimension_numbers<[1], [0], [0], [1], [0, 0, 1, 1], [], []>} : vector<8x32xbf16>, vector<32x96xbf16>, vector<8x96xf32> -> vector<8x96xf32>
    %c0_4 = arith.constant 0 : index
    %c0_5 = arith.constant 0 : index
    %5 = vector.load %arg5[%c0_4, %c0_5] : memref<1x96xf32, #tpu.memory_space<vmem>>, vector<1x96xf32>
    %6 = vector.broadcast %5 : vector<1x96xf32> to vector<8x96xf32>
    %7 = arith.addf %4, %6 : vector<8x96xf32>
    %c0_6 = arith.constant 0 : index
    %c0_7 = arith.constant 0 : index
    %8 = vector.load %arg2[%c0_6, %c0_7] : memref<8x8xf32, #tpu.memory_space<vmem>>, vector<8x8xf32>
    %c0_8 = arith.constant 0 : index
    %c0_9 = arith.constant 0 : index
    %c0_10 = arith.constant 0 : index
    %9 = vector.load %arg3[%c0_8, %c0_9, %c0_10] : memref<1x1x8xf32, #tpu.memory_space<vmem>>, vector<1x1x8xf32>
    %10 = vector.shape_cast %9 : vector<1x1x8xf32> to vector<1x8xf32>
    %11 = vector.broadcast %10 : vector<1x8xf32> to vector<8x8xf32>
    %12 = arith.addf %8, %11 : vector<8x8xf32>
    %13 = vector.extract_strided_slice %7 {offsets = [0, 0], sizes = [8, 32], strides = [1, 1]} : vector<8x96xf32> to vector<8x32xf32>
    %14 = vector.extract_strided_slice %7 {offsets = [0, 32], sizes = [8, 32], strides = [1, 1]} : vector<8x96xf32> to vector<8x32xf32>
    %15 = vector.extract_strided_slice %7 {offsets = [0, 64], sizes = [8, 32], strides = [1, 1]} : vector<8x96xf32> to vector<8x32xf32>
    %c0_11 = arith.constant 0 : index
    %c0_12 = arith.constant 0 : index
    %16 = vector.load %arg6[%c0_11, %c0_12] : memref<32x32xbf16, #tpu.memory_space<vmem>>, vector<32x32xbf16>
    %c0_13 = arith.constant 0 : index
    %c0_14 = arith.constant 0 : index
    %17 = vector.load %arg7[%c0_13, %c0_14] : memref<1x32xf32, #tpu.memory_space<vmem>>, vector<1x32xf32>
    %18 = vector.extract_strided_slice %13 {offsets = [0, 0], sizes = [8, 8], strides = [1, 1]} : vector<8x32xf32> to vector<8x8xf32>
    %19 = arith.truncf %18 : vector<8x8xf32> to vector<8x8xbf16>
    %20 = vector.extract_strided_slice %13 {offsets = [0, 8], sizes = [8, 8], strides = [1, 1]} : vector<8x32xf32> to vector<8x8xf32>
    %21 = arith.truncf %20 : vector<8x8xf32> to vector<8x8xbf16>
    %22 = vector.extract_strided_slice %13 {offsets = [0, 16], sizes = [8, 8], strides = [1, 1]} : vector<8x32xf32> to vector<8x8xf32>
    %23 = arith.truncf %22 : vector<8x8xf32> to vector<8x8xbf16>
    %24 = vector.extract_strided_slice %13 {offsets = [0, 24], sizes = [8, 8], strides = [1, 1]} : vector<8x32xf32> to vector<8x8xf32>
    %25 = arith.truncf %24 : vector<8x8xf32> to vector<8x8xbf16>
    %26 = vector.shape_cast %19 : vector<8x8xbf16> to vector<1x8x8xbf16>
    %27 = vector.shape_cast %21 : vector<8x8xbf16> to vector<1x8x8xbf16>
    %28 = vector.shape_cast %23 : vector<8x8xbf16> to vector<1x8x8xbf16>
    %29 = vector.shape_cast %25 : vector<8x8xbf16> to vector<1x8x8xbf16>
    %30 = tpu.concatenate %26, %27, %28, %29 in 0 : vector<1x8x8xbf16>, vector<1x8x8xbf16>, vector<1x8x8xbf16>, vector<1x8x8xbf16> -> vector<4x8x8xbf16>
    %31 = vector.extract_strided_slice %14 {offsets = [0, 0], sizes = [8, 8], strides = [1, 1]} : vector<8x32xf32> to vector<8x8xf32>
    %32 = arith.truncf %31 : vector<8x8xf32> to vector<8x8xbf16>
    %33 = vector.extract_strided_slice %14 {offsets = [0, 8], sizes = [8, 8], strides = [1, 1]} : vector<8x32xf32> to vector<8x8xf32>
    %34 = arith.truncf %33 : vector<8x8xf32> to vector<8x8xbf16>
    %35 = vector.extract_strided_slice %14 {offsets = [0, 16], sizes = [8, 8], strides = [1, 1]} : vector<8x32xf32> to vector<8x8xf32>
    %36 = arith.truncf %35 : vector<8x8xf32> to vector<8x8xbf16>
    %37 = vector.extract_strided_slice %14 {offsets = [0, 24], sizes = [8, 8], strides = [1, 1]} : vector<8x32xf32> to vector<8x8xf32>
    %38 = arith.truncf %37 : vector<8x8xf32> to vector<8x8xbf16>
    %39 = vector.shape_cast %32 : vector<8x8xbf16> to vector<1x8x8xbf16>
    %40 = vector.shape_cast %34 : vector<8x8xbf16> to vector<1x8x8xbf16>
    %41 = vector.shape_cast %36 : vector<8x8xbf16> to vector<1x8x8xbf16>
    %42 = vector.shape_cast %38 : vector<8x8xbf16> to vector<1x8x8xbf16>
    %43 = tpu.concatenate %39, %40, %41, %42 in 0 : vector<1x8x8xbf16>, vector<1x8x8xbf16>, vector<1x8x8xbf16>, vector<1x8x8xbf16> -> vector<4x8x8xbf16>
    %44 = vector.extract_strided_slice %15 {offsets = [0, 0], sizes = [8, 8], strides = [1, 1]} : vector<8x32xf32> to vector<8x8xf32>
    %45 = arith.truncf %44 : vector<8x8xf32> to vector<8x8xbf16>
    %46 = vector.extract_strided_slice %15 {offsets = [0, 8], sizes = [8, 8], strides = [1, 1]} : vector<8x32xf32> to vector<8x8xf32>
    %47 = arith.truncf %46 : vector<8x8xf32> to vector<8x8xbf16>
    %48 = vector.extract_strided_slice %15 {offsets = [0, 16], sizes = [8, 8], strides = [1, 1]} : vector<8x32xf32> to vector<8x8xf32>
    %49 = arith.truncf %48 : vector<8x8xf32> to vector<8x8xbf16>
    %50 = vector.extract_strided_slice %15 {offsets = [0, 24], sizes = [8, 8], strides = [1, 1]} : vector<8x32xf32> to vector<8x8xf32>
    %51 = arith.truncf %50 : vector<8x8xf32> to vector<8x8xbf16>
    %52 = vector.shape_cast %45 : vector<8x8xbf16> to vector<1x8x8xbf16>
    %53 = vector.shape_cast %47 : vector<8x8xbf16> to vector<1x8x8xbf16>
    %54 = vector.shape_cast %49 : vector<8x8xbf16> to vector<1x8x8xbf16>
    %55 = vector.shape_cast %51 : vector<8x8xbf16> to vector<1x8x8xbf16>
    %56 = tpu.concatenate %52, %53, %54, %55 in 0 : vector<1x8x8xbf16>, vector<1x8x8xbf16>, vector<1x8x8xbf16>, vector<1x8x8xbf16> -> vector<4x8x8xbf16>
    "tpu.trace_start"() <{level = 10 : i32, message = "htd,hsd->hts"}> : () -> ()
    %cst_15 = arith.constant dense<0.000000e+00> : vector<4x8x8xf32>
    %57 = tpu.matmul %30, %43, %cst_15 {dimension_numbers = #tpu.dot_dimension_numbers<[2], [2], [1], [1], [0, 0, 0, 1, 1, 1], [0], [0]>} : vector<4x8x8xbf16>, vector<4x8x8xbf16>, vector<4x8x8xf32> -> vector<4x8x8xf32>
    "tpu.trace_stop"() : () -> ()
    %cst_16 = arith.constant 0.353553385 : f32
    %58 = vector.broadcast %cst_16 : f32 to vector<4x8x8xf32>
    %59 = arith.mulf %57, %58 : vector<4x8x8xf32>
    %60 = vector.shape_cast %12 : vector<8x8xf32> to vector<1x8x8xf32>
    %61 = vector.broadcast %60 : vector<1x8x8xf32> to vector<4x8x8xf32>
    %62 = arith.addf %59, %61 : vector<4x8x8xf32>
    %cst_17 = arith.constant dense<0xFF800000> : vector<4x8xf32>
    %63 = vector.multi_reduction <maximumf>, %62, %cst_17 [2] : vector<4x8x8xf32> to vector<4x8xf32>
    %64 = vector.shape_cast %63 : vector<4x8xf32> to vector<4x8x1xf32>
    %65 = vector.broadcast %64 : vector<4x8x1xf32> to vector<4x8x8xf32>
    %66 = arith.subf %62, %65 : vector<4x8x8xf32>
    %67 = math.exp %66 : vector<4x8x8xf32>
    %cst_18 = arith.constant dense<0.000000e+00> : vector<4x8xf32>
    %68 = vector.multi_reduction <add>, %67, %cst_18 [2] : vector<4x8x8xf32> to vector<4x8xf32>
    %69 = vector.shape_cast %68 : vector<4x8xf32> to vector<4x8x1xf32>
    %70 = tpu.reciprocal %69 {approx = true} : vector<4x8x1xf32> -> vector<4x8x1xf32>
    %71 = vector.broadcast %70 : vector<4x8x1xf32> to vector<4x8x8xf32>
    %72 = arith.mulf %67, %71 : vector<4x8x8xf32>
    %73 = arith.truncf %72 : vector<4x8x8xf32> to vector<4x8x8xbf16>
    "tpu.trace_start"() <{level = 10 : i32, message = "hts,hsd->htd"}> : () -> ()
    %cst_19 = arith.constant dense<0.000000e+00> : vector<4x8x8xf32>
    %74 = tpu.matmul %73, %56, %cst_19 {dimension_numbers = #tpu.dot_dimension_numbers<[2], [1], [1], [2], [0, 0, 0, 1, 1, 2], [0], [0]>} : vector<4x8x8xbf16>, vector<4x8x8xbf16>, vector<4x8x8xf32> -> vector<4x8x8xf32>
    "tpu.trace_stop"() : () -> ()
    %75 = vector.extract_strided_slice %74 {offsets = [0, 0, 0], sizes = [1, 8, 8], strides = [1, 1, 1]} : vector<4x8x8xf32> to vector<1x8x8xf32>
    %76 = vector.shape_cast %75 : vector<1x8x8xf32> to vector<8x8xf32>
    %77 = vector.extract_strided_slice %74 {offsets = [1, 0, 0], sizes = [1, 8, 8], strides = [1, 1, 1]} : vector<4x8x8xf32> to vector<1x8x8xf32>
    %78 = vector.shape_cast %77 : vector<1x8x8xf32> to vector<8x8xf32>
    %79 = vector.extract_strided_slice %74 {offsets = [2, 0, 0], sizes = [1, 8, 8], strides = [1, 1, 1]} : vector<4x8x8xf32> to vector<1x8x8xf32>
    %80 = vector.shape_cast %79 : vector<1x8x8xf32> to vector<8x8xf32>
    %81 = vector.extract_strided_slice %74 {offsets = [3, 0, 0], sizes = [1, 8, 8], strides = [1, 1, 1]} : vector<4x8x8xf32> to vector<1x8x8xf32>
    %82 = vector.shape_cast %81 : vector<1x8x8xf32> to vector<8x8xf32>
    %83 = tpu.concatenate %76, %78, %80, %82 in 1 : vector<8x8xf32>, vector<8x8xf32>, vector<8x8xf32>, vector<8x8xf32> -> vector<8x32xf32>
    %84 = arith.truncf %83 : vector<8x32xf32> to vector<8x32xbf16>
    %cst_20 = arith.constant dense<0.000000e+00> : vector<8x32xf32>
    %85 = tpu.matmul %84, %16, %cst_20 {dimension_numbers = #tpu.dot_dimension_numbers<[1], [0], [0], [1], [0, 0, 1, 1], [], []>} : vector<8x32xbf16>, vector<32x32xbf16>, vector<8x32xf32> -> vector<8x32xf32>
    %86 = vector.broadcast %17 : vector<1x32xf32> to vector<8x32xf32>
    %87 = arith.addf %85, %86 : vector<8x32xf32>
    %88 = arith.addf %1, %87 : vector<8x32xf32>
    %c0_21 = arith.constant 0 : index
    %c0_22 = arith.constant 0 : index
    %89 = vector.load %arg8[%c0_21, %c0_22] : memref<1x32xf32, #tpu.memory_space<vmem>>, vector<1x32xf32>
    %c0_23 = arith.constant 0 : index
    %c0_24 = arith.constant 0 : index
    %90 = vector.load %arg9[%c0_23, %c0_24] : memref<1x32xf32, #tpu.memory_space<vmem>>, vector<1x32xf32>
    %cst_25 = arith.constant dense<0.000000e+00> : vector<8xf32>
    %91 = vector.multi_reduction <add>, %88, %cst_25 [1] : vector<8x32xf32> to vector<8xf32>
    %92 = vector.shape_cast %91 : vector<8xf32> to vector<8x1xf32>
    %cst_26 = arith.constant 3.200000e+01 : f32
    %93 = vector.broadcast %cst_26 : f32 to vector<8x1xf32>
    %94 = arith.divf %92, %93 : vector<8x1xf32>
    %95 = vector.broadcast %94 : vector<8x1xf32> to vector<8x32xf32>
    %96 = arith.subf %88, %95 : vector<8x32xf32>
    %97 = arith.mulf %96, %96 : vector<8x32xf32>
    %cst_27 = arith.constant dense<0.000000e+00> : vector<8xf32>
    %98 = vector.multi_reduction <add>, %97, %cst_27 [1] : vector<8x32xf32> to vector<8xf32>
    %99 = vector.shape_cast %98 : vector<8xf32> to vector<8x1xf32>
    %cst_28 = arith.constant 3.200000e+01 : f32
    %100 = vector.broadcast %cst_28 : f32 to vector<8x1xf32>
    %101 = arith.divf %99, %100 : vector<8x1xf32>
    %102 = vector.broadcast %94 : vector<8x1xf32> to vector<8x32xf32>
    %103 = arith.subf %88, %102 : vector<8x32xf32>
    %cst_29 = arith.constant 9.99999974E-6 : f32
    %104 = vector.broadcast %cst_29 : f32 to vector<8x1xf32>
    %105 = arith.addf %101, %104 : vector<8x1xf32>
    %106 = math.rsqrt %105 : vector<8x1xf32>
    %107 = vector.broadcast %106 : vector<8x1xf32> to vector<8x32xf32>
    %108 = arith.mulf %103, %107 : vector<8x32xf32>
    %109 = vector.broadcast %89 : vector<1x32xf32> to vector<8x32xf32>
    %110 = arith.mulf %108, %109 : vector<8x32xf32>
    %111 = vector.broadcast %90 : vector<1x32xf32> to vector<8x32xf32>
    %112 = arith.addf %110, %111 : vector<8x32xf32>
    %c0_30 = arith.constant 0 : index
    %c0_31 = arith.constant 0 : index
    %113 = vector.load %arg10[%c0_30, %c0_31] : memref<32x64xbf16, #tpu.memory_space<vmem>>, vector<32x64xbf16>
    %c0_32 = arith.constant 0 : index
    %c0_33 = arith.constant 0 : index
    %114 = vector.load %arg11[%c0_32, %c0_33] : memref<1x64xf32, #tpu.memory_space<vmem>>, vector<1x64xf32>
    %c0_34 = arith.constant 0 : index
    %c0_35 = arith.constant 0 : index
    %115 = vector.load %arg12[%c0_34, %c0_35] : memref<64x32xbf16, #tpu.memory_space<vmem>>, vector<64x32xbf16>
    %c0_36 = arith.constant 0 : index
    %c0_37 = arith.constant 0 : index
    %116 = vector.load %arg13[%c0_36, %c0_37] : memref<1x32xf32, #tpu.memory_space<vmem>>, vector<1x32xf32>
    %117 = arith.truncf %112 : vector<8x32xf32> to vector<8x32xbf16>
    %cst_38 = arith.constant dense<0.000000e+00> : vector<8x64xf32>
    %118 = tpu.matmul %117, %113, %cst_38 {dimension_numbers = #tpu.dot_dimension_numbers<[1], [0], [0], [1], [0, 0, 1, 1], [], []>} : vector<8x32xbf16>, vector<32x64xbf16>, vector<8x64xf32> -> vector<8x64xf32>
    %119 = vector.broadcast %114 : vector<1x64xf32> to vector<8x64xf32>
    %120 = arith.addf %118, %119 : vector<8x64xf32>
    %cst_39 = arith.constant 0.000000e+00 : f32
    %121 = vector.broadcast %cst_39 : f32 to vector<8x64xf32>
    %122 = arith.maximumf %120, %121 : vector<8x64xf32>
    %123 = arith.truncf %122 : vector<8x64xf32> to vector<8x64xbf16>
    %cst_40 = arith.constant dense<0.000000e+00> : vector<8x32xf32>
    %124 = tpu.matmul %123, %115, %cst_40 {dimension_numbers = #tpu.dot_dimension_numbers<[1], [0], [0], [1], [0, 0, 1, 1], [], []>} : vector<8x64xbf16>, vector<64x32xbf16>, vector<8x32xf32> -> vector<8x32xf32>
    %125 = vector.broadcast %116 : vector<1x32xf32> to vector<8x32xf32>
    %126 = arith.addf %124, %125 : vector<8x32xf32>
    %127 = arith.addf %112, %126 : vector<8x32xf32>
    %c0_41 = arith.constant 0 : index
    %c0_42 = arith.constant 0 : index
    %128 = vector.load %arg14[%c0_41, %c0_42] : memref<1x32xf32, #tpu.memory_space<vmem>>, vector<1x32xf32>
    %c0_43 = arith.constant 0 : index
    %c0_44 = arith.constant 0 : index
    %129 = vector.load %arg15[%c0_43, %c0_44] : memref<1x32xf32, #tpu.memory_space<vmem>>, vector<1x32xf32>
    %cst_45 = arith.constant dense<0.000000e+00> : vector<8xf32>
    %130 = vector.multi_reduction <add>, %127, %cst_45 [1] : vector<8x32xf32> to vector<8xf32>
    %131 = vector.shape_cast %130 : vector<8xf32> to vector<8x1xf32>
    %cst_46 = arith.constant 3.200000e+01 : f32
    %132 = vector.broadcast %cst_46 : f32 to vector<8x1xf32>
    %133 = arith.divf %131, %132 : vector<8x1xf32>
    %134 = vector.broadcast %133 : vector<8x1xf32> to vector<8x32xf32>
    %135 = arith.subf %127, %134 : vector<8x32xf32>
    %136 = arith.mulf %135, %135 : vector<8x32xf32>
    %cst_47 = arith.constant dense<0.000000e+00> : vector<8xf32>
    %137 = vector.multi_reduction <add>, %136, %cst_47 [1] : vector<8x32xf32> to vector<8xf32>
    %138 = vector.shape_cast %137 : vector<8xf32> to vector<8x1xf32>
    %cst_48 = arith.constant 3.200000e+01 : f32
    %139 = vector.broadcast %cst_48 : f32 to vector<8x1xf32>
    %140 = arith.divf %138, %139 : vector<8x1xf32>
    %141 = vector.broadcast %133 : vector<8x1xf32> to vector<8x32xf32>
    %142 = arith.subf %127, %141 : vector<8x32xf32>
    %cst_49 = arith.constant 9.99999974E-6 : f32
    %143 = vector.broadcast %cst_49 : f32 to vector<8x1xf32>
    %144 = arith.addf %140, %143 : vector<8x1xf32>
    %145 = math.rsqrt %144 : vector<8x1xf32>
    %146 = vector.broadcast %145 : vector<8x1xf32> to vector<8x32xf32>
    %147 = arith.mulf %142, %146 : vector<8x32xf32>
    %148 = vector.broadcast %128 : vector<1x32xf32> to vector<8x32xf32>
    %149 = arith.mulf %147, %148 : vector<8x32xf32>
    %150 = vector.broadcast %129 : vector<1x32xf32> to vector<8x32xf32>
    %151 = arith.addf %149, %150 : vector<8x32xf32>
    %c0_50 = arith.constant 0 : index
    %c0_51 = arith.constant 0 : index
    %152 = vector.load %arg16[%c0_50, %c0_51] : memref<1x32xf32, #tpu.memory_space<vmem>>, vector<1x32xf32>
    %c0_52 = arith.constant 0 : index
    %c0_53 = arith.constant 0 : index
    %153 = vector.load %arg17[%c0_52, %c0_53] : memref<1x32xf32, #tpu.memory_space<vmem>>, vector<1x32xf32>
    %cst_54 = arith.constant dense<0.000000e+00> : vector<8xf32>
    %154 = vector.multi_reduction <add>, %151, %cst_54 [1] : vector<8x32xf32> to vector<8xf32>
    %155 = vector.shape_cast %154 : vector<8xf32> to vector<8x1xf32>
    %cst_55 = arith.constant 3.200000e+01 : f32
    %156 = vector.broadcast %cst_55 : f32 to vector<8x1xf32>
    %157 = arith.divf %155, %156 : vector<8x1xf32>
    %158 = vector.broadcast %157 : vector<8x1xf32> to vector<8x32xf32>
    %159 = arith.subf %151, %158 : vector<8x32xf32>
    %160 = arith.mulf %159, %159 : vector<8x32xf32>
    %cst_56 = arith.constant dense<0.000000e+00> : vector<8xf32>
    %161 = vector.multi_reduction <add>, %160, %cst_56 [1] : vector<8x32xf32> to vector<8xf32>
    %162 = vector.shape_cast %161 : vector<8xf32> to vector<8x1xf32>
    %cst_57 = arith.constant 3.200000e+01 : f32
    %163 = vector.broadcast %cst_57 : f32 to vector<8x1xf32>
    %164 = arith.divf %162, %163 : vector<8x1xf32>
    %165 = vector.broadcast %157 : vector<8x1xf32> to vector<8x32xf32>
    %166 = arith.subf %151, %165 : vector<8x32xf32>
    %cst_58 = arith.constant 9.99999974E-6 : f32
    %167 = vector.broadcast %cst_58 : f32 to vector<8x1xf32>
    %168 = arith.addf %164, %167 : vector<8x1xf32>
    %169 = math.rsqrt %168 : vector<8x1xf32>
    %170 = vector.broadcast %169 : vector<8x1xf32> to vector<8x32xf32>
    %171 = arith.mulf %166, %170 : vector<8x32xf32>
    %172 = vector.broadcast %152 : vector<1x32xf32> to vector<8x32xf32>
    %173 = arith.mulf %171, %172 : vector<8x32xf32>
    %174 = vector.broadcast %153 : vector<1x32xf32> to vector<8x32xf32>
    %175 = arith.addf %173, %174 : vector<8x32xf32>
    %176 = vector.shape_cast %175 : vector<8x32xf32> to vector<1x8x32xf32>
    %177 = arith.truncf %176 : vector<1x8x32xf32> to vector<1x8x32xbf16>
    %c0_59 = arith.constant 0 : index
    %c0_60 = arith.constant 0 : index
    %c0_61 = arith.constant 0 : index
    %178 = vector.load %arg18[%c0_59, %c0_60, %c0_61] : memref<1x8x32xbf16, #tpu.memory_space<vmem>>, vector<1x8x32xbf16>
    tpu.vector_store %arg18[%c0_59, %c0_60, %c0_61], %177 {strides = array<i32>} : memref<1x8x32xbf16, #tpu.memory_space<vmem>>, vector<1x8x32xbf16>,
    return
  }
  func.func @transform_0(%arg0: i32) -> (i32, i32, i32) {
    %c0_i32 = arith.constant 0 : i32
    %c0_i32_0 = arith.constant 0 : i32
    %c0_i32_1 = arith.constant 0 : i32
    return %arg0, %c0_i32, %c0_i32_0 : i32, i32, i32
  }
  func.func @transform_1(%arg0: i32) -> (i32, i32) {
    %c0_i32 = arith.constant 0 : i32
    %c0_i32_0 = arith.constant 0 : i32
    %c0_i32_1 = arith.constant 0 : i32
    return %c0_i32, %c0_i32_0 : i32, i32
  }
  func.func @transform_2(%arg0: i32) -> (i32, i32, i32) {
    %c0_i32 = arith.constant 0 : i32
    %c0_i32_0 = arith.constant 0 : i32
    %c0_i32_1 = arith.constant 0 : i32
    return %arg0, %c0_i32, %c0_i32_0 : i32, i32, i32
  }
  func.func @transform_3(%arg0: i32) -> (i32, i32) {
    %c0_i32 = arith.constant 0 : i32
    %c0_i32_0 = arith.constant 0 : i32
    %c0_i32_1 = arith.constant 0 : i32
    return %c0_i32, %c0_i32_0 : i32, i32
  }
  func.func @transform_4(%arg0: i32) -> (i32, i32) {
    %c0_i32 = arith.constant 0 : i32
    %c0_i32_0 = arith.constant 0 : i32
    %c0_i32_1 = arith.constant 0 : i32
    return %c0_i32, %c0_i32_0 : i32, i32
  }
  func.func @transform_5(%arg0: i32) -> (i32, i32) {
    %c0_i32 = arith.constant 0 : i32
    %c0_i32_0 = arith.constant 0 : i32
    %c0_i32_1 = arith.constant 0 : i32
    return %c0_i32, %c0_i32_0 : i32, i32
  }
  func.func @transform_6(%arg0: i32) -> (i32, i32) {
    %c0_i32 = arith.constant 0 : i32
    %c0_i32_0 = arith.constant 0 : i32
    %c0_i32_1 = arith.constant 0 : i32
    return %c0_i32, %c0_i32_0 : i32, i32
  }
  func.func @transform_7(%arg0: i32) -> (i32, i32) {
    %c0_i32 = arith.constant 0 : i32
    %c0_i32_0 = arith.constant 0 : i32
    %c0_i32_1 = arith.constant 0 : i32
    return %c0_i32, %c0_i32_0 : i32, i32
  }
  func.func @transform_8(%arg0: i32) -> (i32, i32) {
    %c0_i32 = arith.constant 0 : i32
    %c0_i32_0 = arith.constant 0 : i32
    %c0_i32_1 = arith.constant 0 : i32
    return %c0_i32, %c0_i32_0 : i32, i32
  }
  func.func @transform_9(%arg0: i32) -> (i32, i32) {
    %c0_i32 = arith.constant 0 : i32
    %c0_i32_0 = arith.constant 0 : i32
    %c0_i32_1 = arith.constant 0 : i32
    return %c0_i32, %c0_i32_0 : i32, i32
  }
  func.func @transform_10(%arg0: i32) -> (i32, i32) {
    %c0_i32 = arith.constant 0 : i32
    %c0_i32_0 = arith.constant 0 : i32
    %c0_i32_1 = arith.constant 0 : i32
    return %c0_i32, %c0_i32_0 : i32, i32
  }
  func.func @transform_11(%arg0: i32) -> (i32, i32) {
    %c0_i32 = arith.constant 0 : i32
    %c0_i32_0 = arith.constant 0 : i32
    %c0_i32_1 = arith.constant 0 : i32
    return %c0_i32, %c0_i32_0 : i32, i32
  }
  func.func @transform_12(%arg0: i32) -> (i32, i32) {
    %c0_i32 = arith.constant 0 : i32
    %c0_i32_0 = arith.constant 0 : i32
    %c0_i32_1 = arith.constant 0 : i32
    return %c0_i32, %c0_i32_0 : i32, i32
  }
  func.func @transform_13(%arg0: i32) -> (i32, i32) {
    %c0_i32 = arith.constant 0 : i32
    %c0_i32_0 = arith.constant 0 : i32
    %c0_i32_1 = arith.constant 0 : i32
    return %c0_i32, %c0_i32_0 : i32, i32
  }
  func.func @transform_14(%arg0: i32) -> (i32, i32) {
    %c0_i32 = arith.constant 0 : i32
    %c0_i32_0 = arith.constant 0 : i32
    %c0_i32_1 = arith.constant 0 : i32
    return %c0_i32, %c0_i32_0 : i32, i32
  }
  func.func @transform_15(%arg0: i32) -> (i32, i32) {
    %c0_i32 = arith.constant 0 : i32
    %c0_i32_0 = arith.constant 0 : i32
    %c0_i32_1 = arith.constant 0 : i32
    return %c0_i32, %c0_i32_0 : i32, i32
  }
  func.func @transform_16(%arg0: i32) -> (i32, i32) {
    %c0_i32 = arith.constant 0 : i32
    %c0_i32_0 = arith.constant 0 : i32
    %c0_i32_1 = arith.constant 0 : i32
    return %c0_i32, %c0_i32_0 : i32, i32
  }
  func.func @transform_17(%arg0: i32) -> (i32, i32, i32) {
    %c0_i32 = arith.constant 0 : i32
    %c0_i32_0 = arith.constant 0 : i32
    %c0_i32_1 = arith.constant 0 : i32
    return %arg0, %c0_i32, %c0_i32_0 : i32, i32, i32
  }
}

module attributes {stable_mosaic.version = 11 : i64} {
  func.func @_decoder_layer_kernel(%arg0: i32, %arg1: memref<1x8x32xf32, #tpu.memory_space<vmem>>, %arg2: memref<1x8x32xbf16, #tpu.memory_space<vmem>>, %arg3: memref<8x8xf32, #tpu.memory_space<vmem>>, %arg4: memref<1x1x8xf32, #tpu.memory_space<vmem>>, %arg5: memref<1x1x8xf32, #tpu.memory_space<vmem>>, %arg6: memref<32x96xbf16, #tpu.memory_space<vmem>>, %arg7: memref<1x96xf32, #tpu.memory_space<vmem>>, %arg8: memref<32x32xbf16, #tpu.memory_space<vmem>>, %arg9: memref<1x32xf32, #tpu.memory_space<vmem>>, %arg10: memref<1x32xf32, #tpu.memory_space<vmem>>, %arg11: memref<1x32xf32, #tpu.memory_space<vmem>>, %arg12: memref<32x32xbf16, #tpu.memory_space<vmem>>, %arg13: memref<1x32xf32, #tpu.memory_space<vmem>>, %arg14: memref<32x64xbf16, #tpu.memory_space<vmem>>, %arg15: memref<1x64xf32, #tpu.memory_space<vmem>>, %arg16: memref<32x32xbf16, #tpu.memory_space<vmem>>, %arg17: memref<1x32xf32, #tpu.memory_space<vmem>>, %arg18: memref<1x32xf32, #tpu.memory_space<vmem>>, %arg19: memref<1x32xf32, #tpu.memory_space<vmem>>, %arg20: memref<32x64xbf16, #tpu.memory_space<vmem>>, %arg21: memref<1x64xf32, #tpu.memory_space<vmem>>, %arg22: memref<64x32xbf16, #tpu.memory_space<vmem>>, %arg23: memref<1x32xf32, #tpu.memory_space<vmem>>, %arg24: memref<1x32xf32, #tpu.memory_space<vmem>>, %arg25: memref<1x32xf32, #tpu.memory_space<vmem>>, %arg26: memref<1x8x32xf32, #tpu.memory_space<vmem>>) attributes {dimension_semantics = [#tpu.dimension_semantics<parallel>], iteration_bounds = array<i64: 2>, scalar_prefetch = 0 : i64, scratch_operands = 0 : i64, tpu.core_type = #tpu.core_type<tc>, window_params = [{transform_indices = @transform_0, window_bounds = array<i64: 1, 8, 32>}, {transform_indices = @transform_1, window_bounds = array<i64: 1, 8, 32>}, {pipeline_mode = #tpu.pipeline_mode<synchronous>, transform_indices = @transform_2, window_bounds = array<i64: 8, 8>}, {transform_indices = @transform_3, window_bounds = array<i64: 1, 1, 8>}, {transform_indices = @transform_4, window_bounds = array<i64: 1, 1, 8>}, {pipeline_mode = #tpu.pipeline_mode<synchronous>, transform_indices = @transform_5, window_bounds = array<i64: 32, 96>}, {pipeline_mode = #tpu.pipeline_mode<synchronous>, transform_indices = @transform_6, window_bounds = array<i64: 1, 96>}, {pipeline_mode = #tpu.pipeline_mode<synchronous>, transform_indices = @transform_7, window_bounds = array<i64: 32, 32>}, {pipeline_mode = #tpu.pipeline_mode<synchronous>, transform_indices = @transform_8, window_bounds = array<i64: 1, 32>}, {pipeline_mode = #tpu.pipeline_mode<synchronous>, transform_indices = @transform_9, window_bounds = array<i64: 1, 32>}, {pipeline_mode = #tpu.pipeline_mode<synchronous>, transform_indices = @transform_10, window_bounds = array<i64: 1, 32>}, {pipeline_mode = #tpu.pipeline_mode<synchronous>, transform_indices = @transform_11, window_bounds = array<i64: 32, 32>}, {pipeline_mode = #tpu.pipeline_mode<synchronous>, transform_indices = @transform_12, window_bounds = array<i64: 1, 32>}, {pipeline_mode = #tpu.pipeline_mode<synchronous>, transform_indices = @transform_13, window_bounds = array<i64: 32, 64>}, {pipeline_mode = #tpu.pipeline_mode<synchronous>, transform_indices = @transform_14, window_bounds = array<i64: 1, 64>}, {pipeline_mode = #tpu.pipeline_mode<synchronous>, transform_indices = @transform_15, window_bounds = array<i64: 32, 32>}, {pipeline_mode = #tpu.pipeline_mode<synchronous>, transform_indices = @transform_16, window_bounds = array<i64: 1, 32>}, {pipeline_mode = #tpu.pipeline_mode<synchronous>, transform_indices = @transform_17, window_bounds = array<i64: 1, 32>}, {pipeline_mode = #tpu.pipeline_mode<synchronous>, transform_indices = @transform_18, window_bounds = array<i64: 1, 32>}, {pipeline_mode = #tpu.pipeline_mode<synchronous>, transform_indices = @transform_19, window_bounds = array<i64: 32, 64>}, {pipeline_mode = #tpu.pipeline_mode<synchronous>, transform_indices = @transform_20, window_bounds = array<i64: 1, 64>}, {pipeline_mode = #tpu.pipeline_mode<synchronous>, transform_indices = @transform_21, window_bounds = array<i64: 64, 32>}, {pipeline_mode = #tpu.pipeline_mode<synchronous>, transform_indices = @transform_22, window_bounds = array<i64: 1, 32>}, {pipeline_mode = #tpu.pipeline_mode<synchronous>, transform_indices = @transform_23, window_bounds = array<i64: 1, 32>}, {pipeline_mode = #tpu.pipeline_mode<synchronous>, transform_indices = @transform_24, window_bounds = array<i64: 1, 32>}, {transform_indices = @transform_25, window_bounds = array<i64: 1, 8, 32>}]} {
    %c0 = arith.constant 0 : index
    %c0_0 = arith.constant 0 : index
    %c0_1 = arith.constant 0 : index
    %0 = vector.load %arg1[%c0, %c0_0, %c0_1] : memref<1x8x32xf32, #tpu.memory_space<vmem>>, vector<1x8x32xf32>
    %1 = vector.shape_cast %0 : vector<1x8x32xf32> to vector<8x32xf32>
    %c0_2 = arith.constant 0 : index
    %c0_3 = arith.constant 0 : index
    %c0_4 = arith.constant 0 : index
    %2 = vector.load %arg2[%c0_2, %c0_3, %c0_4] : memref<1x8x32xbf16, #tpu.memory_space<vmem>>, vector<1x8x32xbf16>
    %3 = vector.shape_cast %2 : vector<1x8x32xbf16> to vector<8x32xbf16>
    %4 = arith.truncf %1 : vector<8x32xf32> to vector<8x32xbf16>
    %c0_5 = arith.constant 0 : index
    %c0_6 = arith.constant 0 : index
    %5 = vector.load %arg6[%c0_5, %c0_6] : memref<32x96xbf16, #tpu.memory_space<vmem>>, vector<32x96xbf16>
    %cst = arith.constant dense<0.000000e+00> : vector<8x96xf32>
    %6 = tpu.matmul %4, %5, %cst {dimension_numbers = #tpu.dot_dimension_numbers<[1], [0], [0], [1], [0, 0, 1, 1], [], []>} : vector<8x32xbf16>, vector<32x96xbf16>, vector<8x96xf32> -> vector<8x96xf32>
    %c0_7 = arith.constant 0 : index
    %c0_8 = arith.constant 0 : index
    %7 = vector.load %arg7[%c0_7, %c0_8] : memref<1x96xf32, #tpu.memory_space<vmem>>, vector<1x96xf32>
    %8 = vector.broadcast %7 : vector<1x96xf32> to vector<8x96xf32>
    %9 = arith.addf %6, %8 : vector<8x96xf32>
    %c0_9 = arith.constant 0 : index
    %c0_10 = arith.constant 0 : index
    %10 = vector.load %arg3[%c0_9, %c0_10] : memref<8x8xf32, #tpu.memory_space<vmem>>, vector<8x8xf32>
    %c0_11 = arith.constant 0 : index
    %c0_12 = arith.constant 0 : index
    %c0_13 = arith.constant 0 : index
    %11 = vector.load %arg4[%c0_11, %c0_12, %c0_13] : memref<1x1x8xf32, #tpu.memory_space<vmem>>, vector<1x1x8xf32>
    %12 = vector.shape_cast %11 : vector<1x1x8xf32> to vector<1x8xf32>
    %13 = vector.broadcast %12 : vector<1x8xf32> to vector<8x8xf32>
    %14 = arith.addf %10, %13 : vector<8x8xf32>
    %15 = vector.extract_strided_slice %9 {offsets = [0, 0], sizes = [8, 32], strides = [1, 1]} : vector<8x96xf32> to vector<8x32xf32>
    %16 = vector.extract_strided_slice %9 {offsets = [0, 32], sizes = [8, 32], strides = [1, 1]} : vector<8x96xf32> to vector<8x32xf32>
    %17 = vector.extract_strided_slice %9 {offsets = [0, 64], sizes = [8, 32], strides = [1, 1]} : vector<8x96xf32> to vector<8x32xf32>
    %c0_14 = arith.constant 0 : index
    %c0_15 = arith.constant 0 : index
    %18 = vector.load %arg8[%c0_14, %c0_15] : memref<32x32xbf16, #tpu.memory_space<vmem>>, vector<32x32xbf16>
    %c0_16 = arith.constant 0 : index
    %c0_17 = arith.constant 0 : index
    %19 = vector.load %arg9[%c0_16, %c0_17] : memref<1x32xf32, #tpu.memory_space<vmem>>, vector<1x32xf32>
    %20 = vector.extract_strided_slice %15 {offsets = [0, 0], sizes = [8, 8], strides = [1, 1]} : vector<8x32xf32> to vector<8x8xf32>
    %21 = arith.truncf %20 : vector<8x8xf32> to vector<8x8xbf16>
    %22 = vector.extract_strided_slice %15 {offsets = [0, 8], sizes = [8, 8], strides = [1, 1]} : vector<8x32xf32> to vector<8x8xf32>
    %23 = arith.truncf %22 : vector<8x8xf32> to vector<8x8xbf16>
    %24 = vector.extract_strided_slice %15 {offsets = [0, 16], sizes = [8, 8], strides = [1, 1]} : vector<8x32xf32> to vector<8x8xf32>
    %25 = arith.truncf %24 : vector<8x8xf32> to vector<8x8xbf16>
    %26 = vector.extract_strided_slice %15 {offsets = [0, 24], sizes = [8, 8], strides = [1, 1]} : vector<8x32xf32> to vector<8x8xf32>
    %27 = arith.truncf %26 : vector<8x8xf32> to vector<8x8xbf16>
    %28 = vector.shape_cast %21 : vector<8x8xbf16> to vector<1x8x8xbf16>
    %29 = vector.shape_cast %23 : vector<8x8xbf16> to vector<1x8x8xbf16>
    %30 = vector.shape_cast %25 : vector<8x8xbf16> to vector<1x8x8xbf16>
    %31 = vector.shape_cast %27 : vector<8x8xbf16> to vector<1x8x8xbf16>
    %32 = tpu.concatenate %28, %29, %30, %31 in 0 : vector<1x8x8xbf16>, vector<1x8x8xbf16>, vector<1x8x8xbf16>, vector<1x8x8xbf16> -> vector<4x8x8xbf16>
    %33 = vector.extract_strided_slice %16 {offsets = [0, 0], sizes = [8, 8], strides = [1, 1]} : vector<8x32xf32> to vector<8x8xf32>
    %34 = arith.truncf %33 : vector<8x8xf32> to vector<8x8xbf16>
    %35 = vector.extract_strided_slice %16 {offsets = [0, 8], sizes = [8, 8], strides = [1, 1]} : vector<8x32xf32> to vector<8x8xf32>
    %36 = arith.truncf %35 : vector<8x8xf32> to vector<8x8xbf16>
    %37 = vector.extract_strided_slice %16 {offsets = [0, 16], sizes = [8, 8], strides = [1, 1]} : vector<8x32xf32> to vector<8x8xf32>
    %38 = arith.truncf %37 : vector<8x8xf32> to vector<8x8xbf16>
    %39 = vector.extract_strided_slice %16 {offsets = [0, 24], sizes = [8, 8], strides = [1, 1]} : vector<8x32xf32> to vector<8x8xf32>
    %40 = arith.truncf %39 : vector<8x8xf32> to vector<8x8xbf16>
    %41 = vector.shape_cast %34 : vector<8x8xbf16> to vector<1x8x8xbf16>
    %42 = vector.shape_cast %36 : vector<8x8xbf16> to vector<1x8x8xbf16>
    %43 = vector.shape_cast %38 : vector<8x8xbf16> to vector<1x8x8xbf16>
    %44 = vector.shape_cast %40 : vector<8x8xbf16> to vector<1x8x8xbf16>
    %45 = tpu.concatenate %41, %42, %43, %44 in 0 : vector<1x8x8xbf16>, vector<1x8x8xbf16>, vector<1x8x8xbf16>, vector<1x8x8xbf16> -> vector<4x8x8xbf16>
    %46 = vector.extract_strided_slice %17 {offsets = [0, 0], sizes = [8, 8], strides = [1, 1]} : vector<8x32xf32> to vector<8x8xf32>
    %47 = arith.truncf %46 : vector<8x8xf32> to vector<8x8xbf16>
    %48 = vector.extract_strided_slice %17 {offsets = [0, 8], sizes = [8, 8], strides = [1, 1]} : vector<8x32xf32> to vector<8x8xf32>
    %49 = arith.truncf %48 : vector<8x8xf32> to vector<8x8xbf16>
    %50 = vector.extract_strided_slice %17 {offsets = [0, 16], sizes = [8, 8], strides = [1, 1]} : vector<8x32xf32> to vector<8x8xf32>
    %51 = arith.truncf %50 : vector<8x8xf32> to vector<8x8xbf16>
    %52 = vector.extract_strided_slice %17 {offsets = [0, 24], sizes = [8, 8], strides = [1, 1]} : vector<8x32xf32> to vector<8x8xf32>
    %53 = arith.truncf %52 : vector<8x8xf32> to vector<8x8xbf16>
    %54 = vector.shape_cast %47 : vector<8x8xbf16> to vector<1x8x8xbf16>
    %55 = vector.shape_cast %49 : vector<8x8xbf16> to vector<1x8x8xbf16>
    %56 = vector.shape_cast %51 : vector<8x8xbf16> to vector<1x8x8xbf16>
    %57 = vector.shape_cast %53 : vector<8x8xbf16> to vector<1x8x8xbf16>
    %58 = tpu.concatenate %54, %55, %56, %57 in 0 : vector<1x8x8xbf16>, vector<1x8x8xbf16>, vector<1x8x8xbf16>, vector<1x8x8xbf16> -> vector<4x8x8xbf16>
    "tpu.trace_start"() <{level = 10 : i32, message = "htd,hsd->hts"}> : () -> ()
    %cst_18 = arith.constant dense<0.000000e+00> : vector<4x8x8xf32>
    %59 = tpu.matmul %32, %45, %cst_18 {dimension_numbers = #tpu.dot_dimension_numbers<[2], [2], [1], [1], [0, 0, 0, 1, 1, 1], [0], [0]>} : vector<4x8x8xbf16>, vector<4x8x8xbf16>, vector<4x8x8xf32> -> vector<4x8x8xf32>
    "tpu.trace_stop"() : () -> ()
    %cst_19 = arith.constant 0.353553385 : f32
    %60 = vector.broadcast %cst_19 : f32 to vector<4x8x8xf32>
    %61 = arith.mulf %59, %60 : vector<4x8x8xf32>
    %62 = vector.shape_cast %14 : vector<8x8xf32> to vector<1x8x8xf32>
    %63 = vector.broadcast %62 : vector<1x8x8xf32> to vector<4x8x8xf32>
    %64 = arith.addf %61, %63 : vector<4x8x8xf32>
    %cst_20 = arith.constant dense<0xFF800000> : vector<4x8xf32>
    %65 = vector.multi_reduction <maximumf>, %64, %cst_20 [2] : vector<4x8x8xf32> to vector<4x8xf32>
    %66 = vector.shape_cast %65 : vector<4x8xf32> to vector<4x8x1xf32>
    %67 = vector.broadcast %66 : vector<4x8x1xf32> to vector<4x8x8xf32>
    %68 = arith.subf %64, %67 : vector<4x8x8xf32>
    %69 = math.exp %68 : vector<4x8x8xf32>
    %cst_21 = arith.constant dense<0.000000e+00> : vector<4x8xf32>
    %70 = vector.multi_reduction <add>, %69, %cst_21 [2] : vector<4x8x8xf32> to vector<4x8xf32>
    %71 = vector.shape_cast %70 : vector<4x8xf32> to vector<4x8x1xf32>
    %72 = tpu.reciprocal %71 {approx = true} : vector<4x8x1xf32> -> vector<4x8x1xf32>
    %73 = vector.broadcast %72 : vector<4x8x1xf32> to vector<4x8x8xf32>
    %74 = arith.mulf %69, %73 : vector<4x8x8xf32>
    %75 = arith.truncf %74 : vector<4x8x8xf32> to vector<4x8x8xbf16>
    "tpu.trace_start"() <{level = 10 : i32, message = "hts,hsd->htd"}> : () -> ()
    %cst_22 = arith.constant dense<0.000000e+00> : vector<4x8x8xf32>
    %76 = tpu.matmul %75, %58, %cst_22 {dimension_numbers = #tpu.dot_dimension_numbers<[2], [1], [1], [2], [0, 0, 0, 1, 1, 2], [0], [0]>} : vector<4x8x8xbf16>, vector<4x8x8xbf16>, vector<4x8x8xf32> -> vector<4x8x8xf32>
    "tpu.trace_stop"() : () -> ()
    %77 = vector.extract_strided_slice %76 {offsets = [0, 0, 0], sizes = [1, 8, 8], strides = [1, 1, 1]} : vector<4x8x8xf32> to vector<1x8x8xf32>
    %78 = vector.shape_cast %77 : vector<1x8x8xf32> to vector<8x8xf32>
    %79 = vector.extract_strided_slice %76 {offsets = [1, 0, 0], sizes = [1, 8, 8], strides = [1, 1, 1]} : vector<4x8x8xf32> to vector<1x8x8xf32>
    %80 = vector.shape_cast %79 : vector<1x8x8xf32> to vector<8x8xf32>
    %81 = vector.extract_strided_slice %76 {offsets = [2, 0, 0], sizes = [1, 8, 8], strides = [1, 1, 1]} : vector<4x8x8xf32> to vector<1x8x8xf32>
    %82 = vector.shape_cast %81 : vector<1x8x8xf32> to vector<8x8xf32>
    %83 = vector.extract_strided_slice %76 {offsets = [3, 0, 0], sizes = [1, 8, 8], strides = [1, 1, 1]} : vector<4x8x8xf32> to vector<1x8x8xf32>
    %84 = vector.shape_cast %83 : vector<1x8x8xf32> to vector<8x8xf32>
    %85 = tpu.concatenate %78, %80, %82, %84 in 1 : vector<8x8xf32>, vector<8x8xf32>, vector<8x8xf32>, vector<8x8xf32> -> vector<8x32xf32>
    %86 = arith.truncf %85 : vector<8x32xf32> to vector<8x32xbf16>
    %cst_23 = arith.constant dense<0.000000e+00> : vector<8x32xf32>
    %87 = tpu.matmul %86, %18, %cst_23 {dimension_numbers = #tpu.dot_dimension_numbers<[1], [0], [0], [1], [0, 0, 1, 1], [], []>} : vector<8x32xbf16>, vector<32x32xbf16>, vector<8x32xf32> -> vector<8x32xf32>
    %88 = vector.broadcast %19 : vector<1x32xf32> to vector<8x32xf32>
    %89 = arith.addf %87, %88 : vector<8x32xf32>
    %90 = arith.addf %1, %89 : vector<8x32xf32>
    %c0_24 = arith.constant 0 : index
    %c0_25 = arith.constant 0 : index
    %91 = vector.load %arg10[%c0_24, %c0_25] : memref<1x32xf32, #tpu.memory_space<vmem>>, vector<1x32xf32>
    %c0_26 = arith.constant 0 : index
    %c0_27 = arith.constant 0 : index
    %92 = vector.load %arg11[%c0_26, %c0_27] : memref<1x32xf32, #tpu.memory_space<vmem>>, vector<1x32xf32>
    %cst_28 = arith.constant dense<0.000000e+00> : vector<8xf32>
    %93 = vector.multi_reduction <add>, %90, %cst_28 [1] : vector<8x32xf32> to vector<8xf32>
    %94 = vector.shape_cast %93 : vector<8xf32> to vector<8x1xf32>
    %cst_29 = arith.constant 3.200000e+01 : f32
    %95 = vector.broadcast %cst_29 : f32 to vector<8x1xf32>
    %96 = arith.divf %94, %95 : vector<8x1xf32>
    %97 = vector.broadcast %96 : vector<8x1xf32> to vector<8x32xf32>
    %98 = arith.subf %90, %97 : vector<8x32xf32>
    %99 = arith.mulf %98, %98 : vector<8x32xf32>
    %cst_30 = arith.constant dense<0.000000e+00> : vector<8xf32>
    %100 = vector.multi_reduction <add>, %99, %cst_30 [1] : vector<8x32xf32> to vector<8xf32>
    %101 = vector.shape_cast %100 : vector<8xf32> to vector<8x1xf32>
    %cst_31 = arith.constant 3.200000e+01 : f32
    %102 = vector.broadcast %cst_31 : f32 to vector<8x1xf32>
    %103 = arith.divf %101, %102 : vector<8x1xf32>
    %104 = vector.broadcast %96 : vector<8x1xf32> to vector<8x32xf32>
    %105 = arith.subf %90, %104 : vector<8x32xf32>
    %cst_32 = arith.constant 9.99999974E-6 : f32
    %106 = vector.broadcast %cst_32 : f32 to vector<8x1xf32>
    %107 = arith.addf %103, %106 : vector<8x1xf32>
    %108 = math.rsqrt %107 : vector<8x1xf32>
    %109 = vector.broadcast %108 : vector<8x1xf32> to vector<8x32xf32>
    %110 = arith.mulf %105, %109 : vector<8x32xf32>
    %111 = vector.broadcast %91 : vector<1x32xf32> to vector<8x32xf32>
    %112 = arith.mulf %110, %111 : vector<8x32xf32>
    %113 = vector.broadcast %92 : vector<1x32xf32> to vector<8x32xf32>
    %114 = arith.addf %112, %113 : vector<8x32xf32>
    %115 = arith.truncf %114 : vector<8x32xf32> to vector<8x32xbf16>
    %c0_33 = arith.constant 0 : index
    %c0_34 = arith.constant 0 : index
    %116 = vector.load %arg12[%c0_33, %c0_34] : memref<32x32xbf16, #tpu.memory_space<vmem>>, vector<32x32xbf16>
    %cst_35 = arith.constant dense<0.000000e+00> : vector<8x32xf32>
    %117 = tpu.matmul %115, %116, %cst_35 {dimension_numbers = #tpu.dot_dimension_numbers<[1], [0], [0], [1], [0, 0, 1, 1], [], []>} : vector<8x32xbf16>, vector<32x32xbf16>, vector<8x32xf32> -> vector<8x32xf32>
    %c0_36 = arith.constant 0 : index
    %c0_37 = arith.constant 0 : index
    %118 = vector.load %arg13[%c0_36, %c0_37] : memref<1x32xf32, #tpu.memory_space<vmem>>, vector<1x32xf32>
    %119 = vector.broadcast %118 : vector<1x32xf32> to vector<8x32xf32>
    %120 = arith.addf %117, %119 : vector<8x32xf32>
    %c0_38 = arith.constant 0 : index
    %c0_39 = arith.constant 0 : index
    %121 = vector.load %arg14[%c0_38, %c0_39] : memref<32x64xbf16, #tpu.memory_space<vmem>>, vector<32x64xbf16>
    %cst_40 = arith.constant dense<0.000000e+00> : vector<8x64xf32>
    %122 = tpu.matmul %3, %121, %cst_40 {dimension_numbers = #tpu.dot_dimension_numbers<[1], [0], [0], [1], [0, 0, 1, 1], [], []>} : vector<8x32xbf16>, vector<32x64xbf16>, vector<8x64xf32> -> vector<8x64xf32>
    %c0_41 = arith.constant 0 : index
    %c0_42 = arith.constant 0 : index
    %123 = vector.load %arg15[%c0_41, %c0_42] : memref<1x64xf32, #tpu.memory_space<vmem>>, vector<1x64xf32>
    %124 = vector.broadcast %123 : vector<1x64xf32> to vector<8x64xf32>
    %125 = arith.addf %122, %124 : vector<8x64xf32>
    %c0_43 = arith.constant 0 : index
    %c0_44 = arith.constant 0 : index
    %c0_45 = arith.constant 0 : index
    %126 = vector.load %arg5[%c0_43, %c0_44, %c0_45] : memref<1x1x8xf32, #tpu.memory_space<vmem>>, vector<1x1x8xf32>
    %127 = vector.shape_cast %126 : vector<1x1x8xf32> to vector<1x8xf32>
    %128 = vector.extract_strided_slice %125 {offsets = [0, 0], sizes = [8, 32], strides = [1, 1]} : vector<8x64xf32> to vector<8x32xf32>
    %129 = vector.extract_strided_slice %125 {offsets = [0, 32], sizes = [8, 32], strides = [1, 1]} : vector<8x64xf32> to vector<8x32xf32>
    %c0_46 = arith.constant 0 : index
    %c0_47 = arith.constant 0 : index
    %130 = vector.load %arg16[%c0_46, %c0_47] : memref<32x32xbf16, #tpu.memory_space<vmem>>, vector<32x32xbf16>
    %c0_48 = arith.constant 0 : index
    %c0_49 = arith.constant 0 : index
    %131 = vector.load %arg17[%c0_48, %c0_49] : memref<1x32xf32, #tpu.memory_space<vmem>>, vector<1x32xf32>
    %132 = vector.extract_strided_slice %120 {offsets = [0, 0], sizes = [8, 8], strides = [1, 1]} : vector<8x32xf32> to vector<8x8xf32>
    %133 = arith.truncf %132 : vector<8x8xf32> to vector<8x8xbf16>
    %134 = vector.extract_strided_slice %120 {offsets = [0, 8], sizes = [8, 8], strides = [1, 1]} : vector<8x32xf32> to vector<8x8xf32>
    %135 = arith.truncf %134 : vector<8x8xf32> to vector<8x8xbf16>
    %136 = vector.extract_strided_slice %120 {offsets = [0, 16], sizes = [8, 8], strides = [1, 1]} : vector<8x32xf32> to vector<8x8xf32>
    %137 = arith.truncf %136 : vector<8x8xf32> to vector<8x8xbf16>
    %138 = vector.extract_strided_slice %120 {offsets = [0, 24], sizes = [8, 8], strides = [1, 1]} : vector<8x32xf32> to vector<8x8xf32>
    %139 = arith.truncf %138 : vector<8x8xf32> to vector<8x8xbf16>
    %140 = vector.shape_cast %133 : vector<8x8xbf16> to vector<1x8x8xbf16>
    %141 = vector.shape_cast %135 : vector<8x8xbf16> to vector<1x8x8xbf16>
    %142 = vector.shape_cast %137 : vector<8x8xbf16> to vector<1x8x8xbf16>
    %143 = vector.shape_cast %139 : vector<8x8xbf16> to vector<1x8x8xbf16>
    %144 = tpu.concatenate %140, %141, %142, %143 in 0 : vector<1x8x8xbf16>, vector<1x8x8xbf16>, vector<1x8x8xbf16>, vector<1x8x8xbf16> -> vector<4x8x8xbf16>
    %145 = vector.extract_strided_slice %128 {offsets = [0, 0], sizes = [8, 8], strides = [1, 1]} : vector<8x32xf32> to vector<8x8xf32>
    %146 = arith.truncf %145 : vector<8x8xf32> to vector<8x8xbf16>
    %147 = vector.extract_strided_slice %128 {offsets = [0, 8], sizes = [8, 8], strides = [1, 1]} : vector<8x32xf32> to vector<8x8xf32>
    %148 = arith.truncf %147 : vector<8x8xf32> to vector<8x8xbf16>
    %149 = vector.extract_strided_slice %128 {offsets = [0, 16], sizes = [8, 8], strides = [1, 1]} : vector<8x32xf32> to vector<8x8xf32>
    %150 = arith.truncf %149 : vector<8x8xf32> to vector<8x8xbf16>
    %151 = vector.extract_strided_slice %128 {offsets = [0, 24], sizes = [8, 8], strides = [1, 1]} : vector<8x32xf32> to vector<8x8xf32>
    %152 = arith.truncf %151 : vector<8x8xf32> to vector<8x8xbf16>
    %153 = vector.shape_cast %146 : vector<8x8xbf16> to vector<1x8x8xbf16>
    %154 = vector.shape_cast %148 : vector<8x8xbf16> to vector<1x8x8xbf16>
    %155 = vector.shape_cast %150 : vector<8x8xbf16> to vector<1x8x8xbf16>
    %156 = vector.shape_cast %152 : vector<8x8xbf16> to vector<1x8x8xbf16>
    %157 = tpu.concatenate %153, %154, %155, %156 in 0 : vector<1x8x8xbf16>, vector<1x8x8xbf16>, vector<1x8x8xbf16>, vector<1x8x8xbf16> -> vector<4x8x8xbf16>
    %158 = vector.extract_strided_slice %129 {offsets = [0, 0], sizes = [8, 8], strides = [1, 1]} : vector<8x32xf32> to vector<8x8xf32>
    %159 = arith.truncf %158 : vector<8x8xf32> to vector<8x8xbf16>
    %160 = vector.extract_strided_slice %129 {offsets = [0, 8], sizes = [8, 8], strides = [1, 1]} : vector<8x32xf32> to vector<8x8xf32>
    %161 = arith.truncf %160 : vector<8x8xf32> to vector<8x8xbf16>
    %162 = vector.extract_strided_slice %129 {offsets = [0, 16], sizes = [8, 8], strides = [1, 1]} : vector<8x32xf32> to vector<8x8xf32>
    %163 = arith.truncf %162 : vector<8x8xf32> to vector<8x8xbf16>
    %164 = vector.extract_strided_slice %129 {offsets = [0, 24], sizes = [8, 8], strides = [1, 1]} : vector<8x32xf32> to vector<8x8xf32>
    %165 = arith.truncf %164 : vector<8x8xf32> to vector<8x8xbf16>
    %166 = vector.shape_cast %159 : vector<8x8xbf16> to vector<1x8x8xbf16>
    %167 = vector.shape_cast %161 : vector<8x8xbf16> to vector<1x8x8xbf16>
    %168 = vector.shape_cast %163 : vector<8x8xbf16> to vector<1x8x8xbf16>
    %169 = vector.shape_cast %165 : vector<8x8xbf16> to vector<1x8x8xbf16>
    %170 = tpu.concatenate %166, %167, %168, %169 in 0 : vector<1x8x8xbf16>, vector<1x8x8xbf16>, vector<1x8x8xbf16>, vector<1x8x8xbf16> -> vector<4x8x8xbf16>
    "tpu.trace_start"() <{level = 10 : i32, message = "htd,hsd->hts"}> : () -> ()
    %cst_50 = arith.constant dense<0.000000e+00> : vector<4x8x8xf32>
    %171 = tpu.matmul %144, %157, %cst_50 {dimension_numbers = #tpu.dot_dimension_numbers<[2], [2], [1], [1], [0, 0, 0, 1, 1, 1], [0], [0]>} : vector<4x8x8xbf16>, vector<4x8x8xbf16>, vector<4x8x8xf32> -> vector<4x8x8xf32>
    "tpu.trace_stop"() : () -> ()
    %cst_51 = arith.constant 0.353553385 : f32
    %172 = vector.broadcast %cst_51 : f32 to vector<4x8x8xf32>
    %173 = arith.mulf %171, %172 : vector<4x8x8xf32>
    %174 = vector.shape_cast %127 : vector<1x8xf32> to vector<1x1x8xf32>
    %175 = vector.broadcast %174 : vector<1x1x8xf32> to vector<4x8x8xf32>
    %176 = arith.addf %173, %175 : vector<4x8x8xf32>
    %cst_52 = arith.constant dense<0xFF800000> : vector<4x8xf32>
    %177 = vector.multi_reduction <maximumf>, %176, %cst_52 [2] : vector<4x8x8xf32> to vector<4x8xf32>
    %178 = vector.shape_cast %177 : vector<4x8xf32> to vector<4x8x1xf32>
    %179 = vector.broadcast %178 : vector<4x8x1xf32> to vector<4x8x8xf32>
    %180 = arith.subf %176, %179 : vector<4x8x8xf32>
    %181 = math.exp %180 : vector<4x8x8xf32>
    %cst_53 = arith.constant dense<0.000000e+00> : vector<4x8xf32>
    %182 = vector.multi_reduction <add>, %181, %cst_53 [2] : vector<4x8x8xf32> to vector<4x8xf32>
    %183 = vector.shape_cast %182 : vector<4x8xf32> to vector<4x8x1xf32>
    %184 = tpu.reciprocal %183 {approx = true} : vector<4x8x1xf32> -> vector<4x8x1xf32>
    %185 = vector.broadcast %184 : vector<4x8x1xf32> to vector<4x8x8xf32>
    %186 = arith.mulf %181, %185 : vector<4x8x8xf32>
    %187 = arith.truncf %186 : vector<4x8x8xf32> to vector<4x8x8xbf16>
    "tpu.trace_start"() <{level = 10 : i32, message = "hts,hsd->htd"}> : () -> ()
    %cst_54 = arith.constant dense<0.000000e+00> : vector<4x8x8xf32>
    %188 = tpu.matmul %187, %170, %cst_54 {dimension_numbers = #tpu.dot_dimension_numbers<[2], [1], [1], [2], [0, 0, 0, 1, 1, 2], [0], [0]>} : vector<4x8x8xbf16>, vector<4x8x8xbf16>, vector<4x8x8xf32> -> vector<4x8x8xf32>
    "tpu.trace_stop"() : () -> ()
    %189 = vector.extract_strided_slice %188 {offsets = [0, 0, 0], sizes = [1, 8, 8], strides = [1, 1, 1]} : vector<4x8x8xf32> to vector<1x8x8xf32>
    %190 = vector.shape_cast %189 : vector<1x8x8xf32> to vector<8x8xf32>
    %191 = vector.extract_strided_slice %188 {offsets = [1, 0, 0], sizes = [1, 8, 8], strides = [1, 1, 1]} : vector<4x8x8xf32> to vector<1x8x8xf32>
    %192 = vector.shape_cast %191 : vector<1x8x8xf32> to vector<8x8xf32>
    %193 = vector.extract_strided_slice %188 {offsets = [2, 0, 0], sizes = [1, 8, 8], strides = [1, 1, 1]} : vector<4x8x8xf32> to vector<1x8x8xf32>
    %194 = vector.shape_cast %193 : vector<1x8x8xf32> to vector<8x8xf32>
    %195 = vector.extract_strided_slice %188 {offsets = [3, 0, 0], sizes = [1, 8, 8], strides = [1, 1, 1]} : vector<4x8x8xf32> to vector<1x8x8xf32>
    %196 = vector.shape_cast %195 : vector<1x8x8xf32> to vector<8x8xf32>
    %197 = tpu.concatenate %190, %192, %194, %196 in 1 : vector<8x8xf32>, vector<8x8xf32>, vector<8x8xf32>, vector<8x8xf32> -> vector<8x32xf32>
    %198 = arith.truncf %197 : vector<8x32xf32> to vector<8x32xbf16>
    %cst_55 = arith.constant dense<0.000000e+00> : vector<8x32xf32>
    %199 = tpu.matmul %198, %130, %cst_55 {dimension_numbers = #tpu.dot_dimension_numbers<[1], [0], [0], [1], [0, 0, 1, 1], [], []>} : vector<8x32xbf16>, vector<32x32xbf16>, vector<8x32xf32> -> vector<8x32xf32>
    %200 = vector.broadcast %131 : vector<1x32xf32> to vector<8x32xf32>
    %201 = arith.addf %199, %200 : vector<8x32xf32>
    %202 = arith.addf %114, %201 : vector<8x32xf32>
    %c0_56 = arith.constant 0 : index
    %c0_57 = arith.constant 0 : index
    %203 = vector.load %arg18[%c0_56, %c0_57] : memref<1x32xf32, #tpu.memory_space<vmem>>, vector<1x32xf32>
    %c0_58 = arith.constant 0 : index
    %c0_59 = arith.constant 0 : index
    %204 = vector.load %arg19[%c0_58, %c0_59] : memref<1x32xf32, #tpu.memory_space<vmem>>, vector<1x32xf32>
    %cst_60 = arith.constant dense<0.000000e+00> : vector<8xf32>
    %205 = vector.multi_reduction <add>, %202, %cst_60 [1] : vector<8x32xf32> to vector<8xf32>
    %206 = vector.shape_cast %205 : vector<8xf32> to vector<8x1xf32>
    %cst_61 = arith.constant 3.200000e+01 : f32
    %207 = vector.broadcast %cst_61 : f32 to vector<8x1xf32>
    %208 = arith.divf %206, %207 : vector<8x1xf32>
    %209 = vector.broadcast %208 : vector<8x1xf32> to vector<8x32xf32>
    %210 = arith.subf %202, %209 : vector<8x32xf32>
    %211 = arith.mulf %210, %210 : vector<8x32xf32>
    %cst_62 = arith.constant dense<0.000000e+00> : vector<8xf32>
    %212 = vector.multi_reduction <add>, %211, %cst_62 [1] : vector<8x32xf32> to vector<8xf32>
    %213 = vector.shape_cast %212 : vector<8xf32> to vector<8x1xf32>
    %cst_63 = arith.constant 3.200000e+01 : f32
    %214 = vector.broadcast %cst_63 : f32 to vector<8x1xf32>
    %215 = arith.divf %213, %214 : vector<8x1xf32>
    %216 = vector.broadcast %208 : vector<8x1xf32> to vector<8x32xf32>
    %217 = arith.subf %202, %216 : vector<8x32xf32>
    %cst_64 = arith.constant 9.99999974E-6 : f32
    %218 = vector.broadcast %cst_64 : f32 to vector<8x1xf32>
    %219 = arith.addf %215, %218 : vector<8x1xf32>
    %220 = math.rsqrt %219 : vector<8x1xf32>
    %221 = vector.broadcast %220 : vector<8x1xf32> to vector<8x32xf32>
    %222 = arith.mulf %217, %221 : vector<8x32xf32>
    %223 = vector.broadcast %203 : vector<1x32xf32> to vector<8x32xf32>
    %224 = arith.mulf %222, %223 : vector<8x32xf32>
    %225 = vector.broadcast %204 : vector<1x32xf32> to vector<8x32xf32>
    %226 = arith.addf %224, %225 : vector<8x32xf32>
    %c0_65 = arith.constant 0 : index
    %c0_66 = arith.constant 0 : index
    %227 = vector.load %arg20[%c0_65, %c0_66] : memref<32x64xbf16, #tpu.memory_space<vmem>>, vector<32x64xbf16>
    %c0_67 = arith.constant 0 : index
    %c0_68 = arith.constant 0 : index
    %228 = vector.load %arg21[%c0_67, %c0_68] : memref<1x64xf32, #tpu.memory_space<vmem>>, vector<1x64xf32>
    %c0_69 = arith.constant 0 : index
    %c0_70 = arith.constant 0 : index
    %229 = vector.load %arg22[%c0_69, %c0_70] : memref<64x32xbf16, #tpu.memory_space<vmem>>, vector<64x32xbf16>
    %c0_71 = arith.constant 0 : index
    %c0_72 = arith.constant 0 : index
    %230 = vector.load %arg23[%c0_71, %c0_72] : memref<1x32xf32, #tpu.memory_space<vmem>>, vector<1x32xf32>
    %231 = arith.truncf %226 : vector<8x32xf32> to vector<8x32xbf16>
    %cst_73 = arith.constant dense<0.000000e+00> : vector<8x64xf32>
    %232 = tpu.matmul %231, %227, %cst_73 {dimension_numbers = #tpu.dot_dimension_numbers<[1], [0], [0], [1], [0, 0, 1, 1], [], []>} : vector<8x32xbf16>, vector<32x64xbf16>, vector<8x64xf32> -> vector<8x64xf32>
    %233 = vector.broadcast %228 : vector<1x64xf32> to vector<8x64xf32>
    %234 = arith.addf %232, %233 : vector<8x64xf32>
    %cst_74 = arith.constant 0.000000e+00 : f32
    %235 = vector.broadcast %cst_74 : f32 to vector<8x64xf32>
    %236 = arith.maximumf %234, %235 : vector<8x64xf32>
    %237 = arith.truncf %236 : vector<8x64xf32> to vector<8x64xbf16>
    %cst_75 = arith.constant dense<0.000000e+00> : vector<8x32xf32>
    %238 = tpu.matmul %237, %229, %cst_75 {dimension_numbers = #tpu.dot_dimension_numbers<[1], [0], [0], [1], [0, 0, 1, 1], [], []>} : vector<8x64xbf16>, vector<64x32xbf16>, vector<8x32xf32> -> vector<8x32xf32>
    %239 = vector.broadcast %230 : vector<1x32xf32> to vector<8x32xf32>
    %240 = arith.addf %238, %239 : vector<8x32xf32>
    %241 = arith.addf %226, %240 : vector<8x32xf32>
    %c0_76 = arith.constant 0 : index
    %c0_77 = arith.constant 0 : index
    %242 = vector.load %arg24[%c0_76, %c0_77] : memref<1x32xf32, #tpu.memory_space<vmem>>, vector<1x32xf32>
    %c0_78 = arith.constant 0 : index
    %c0_79 = arith.constant 0 : index
    %243 = vector.load %arg25[%c0_78, %c0_79] : memref<1x32xf32, #tpu.memory_space<vmem>>, vector<1x32xf32>
    %cst_80 = arith.constant dense<0.000000e+00> : vector<8xf32>
    %244 = vector.multi_reduction <add>, %241, %cst_80 [1] : vector<8x32xf32> to vector<8xf32>
    %245 = vector.shape_cast %244 : vector<8xf32> to vector<8x1xf32>
    %cst_81 = arith.constant 3.200000e+01 : f32
    %246 = vector.broadcast %cst_81 : f32 to vector<8x1xf32>
    %247 = arith.divf %245, %246 : vector<8x1xf32>
    %248 = vector.broadcast %247 : vector<8x1xf32> to vector<8x32xf32>
    %249 = arith.subf %241, %248 : vector<8x32xf32>
    %250 = arith.mulf %249, %249 : vector<8x32xf32>
    %cst_82 = arith.constant dense<0.000000e+00> : vector<8xf32>
    %251 = vector.multi_reduction <add>, %250, %cst_82 [1] : vector<8x32xf32> to vector<8xf32>
    %252 = vector.shape_cast %251 : vector<8xf32> to vector<8x1xf32>
    %cst_83 = arith.constant 3.200000e+01 : f32
    %253 = vector.broadcast %cst_83 : f32 to vector<8x1xf32>
    %254 = arith.divf %252, %253 : vector<8x1xf32>
    %255 = vector.broadcast %247 : vector<8x1xf32> to vector<8x32xf32>
    %256 = arith.subf %241, %255 : vector<8x32xf32>
    %cst_84 = arith.constant 9.99999974E-6 : f32
    %257 = vector.broadcast %cst_84 : f32 to vector<8x1xf32>
    %258 = arith.addf %254, %257 : vector<8x1xf32>
    %259 = math.rsqrt %258 : vector<8x1xf32>
    %260 = vector.broadcast %259 : vector<8x1xf32> to vector<8x32xf32>
    %261 = arith.mulf %256, %260 : vector<8x32xf32>
    %262 = vector.broadcast %242 : vector<1x32xf32> to vector<8x32xf32>
    %263 = arith.mulf %261, %262 : vector<8x32xf32>
    %264 = vector.broadcast %243 : vector<1x32xf32> to vector<8x32xf32>
    %265 = arith.addf %263, %264 : vector<8x32xf32>
    %266 = vector.shape_cast %265 : vector<8x32xf32> to vector<1x8x32xf32>
    %c0_85 = arith.constant 0 : index
    %c0_86 = arith.constant 0 : index
    %c0_87 = arith.constant 0 : index
    %267 = vector.load %arg26[%c0_85, %c0_86, %c0_87] : memref<1x8x32xf32, #tpu.memory_space<vmem>>, vector<1x8x32xf32>
    tpu.vector_store %arg26[%c0_85, %c0_86, %c0_87], %266 {strides = array<i32>} : memref<1x8x32xf32, #tpu.memory_space<vmem>>, vector<1x8x32xf32>,
    return
  }
  func.func @transform_0(%arg0: i32) -> (i32, i32, i32) {
    %c0_i32 = arith.constant 0 : i32
    %c0_i32_0 = arith.constant 0 : i32
    %c0_i32_1 = arith.constant 0 : i32
    return %arg0, %c0_i32, %c0_i32_0 : i32, i32, i32
  }
  func.func @transform_1(%arg0: i32) -> (i32, i32, i32) {
    %c0_i32 = arith.constant 0 : i32
    %c0_i32_0 = arith.constant 0 : i32
    %c0_i32_1 = arith.constant 0 : i32
    return %arg0, %c0_i32, %c0_i32_0 : i32, i32, i32
  }
  func.func @transform_2(%arg0: i32) -> (i32, i32) {
    %c0_i32 = arith.constant 0 : i32
    %c0_i32_0 = arith.constant 0 : i32
    %c0_i32_1 = arith.constant 0 : i32
    return %c0_i32, %c0_i32_0 : i32, i32
  }
  func.func @transform_3(%arg0: i32) -> (i32, i32, i32) {
    %c0_i32 = arith.constant 0 : i32
    %c0_i32_0 = arith.constant 0 : i32
    %c0_i32_1 = arith.constant 0 : i32
    return %arg0, %c0_i32, %c0_i32_0 : i32, i32, i32
  }
  func.func @transform_4(%arg0: i32) -> (i32, i32, i32) {
    %c0_i32 = arith.constant 0 : i32
    %c0_i32_0 = arith.constant 0 : i32
    %c0_i32_1 = arith.constant 0 : i32
    return %arg0, %c0_i32, %c0_i32_0 : i32, i32, i32
  }
  func.func @transform_5(%arg0: i32) -> (i32, i32) {
    %c0_i32 = arith.constant 0 : i32
    %c0_i32_0 = arith.constant 0 : i32
    %c0_i32_1 = arith.constant 0 : i32
    return %c0_i32, %c0_i32_0 : i32, i32
  }
  func.func @transform_6(%arg0: i32) -> (i32, i32) {
    %c0_i32 = arith.constant 0 : i32
    %c0_i32_0 = arith.constant 0 : i32
    %c0_i32_1 = arith.constant 0 : i32
    return %c0_i32, %c0_i32_0 : i32, i32
  }
  func.func @transform_7(%arg0: i32) -> (i32, i32) {
    %c0_i32 = arith.constant 0 : i32
    %c0_i32_0 = arith.constant 0 : i32
    %c0_i32_1 = arith.constant 0 : i32
    return %c0_i32, %c0_i32_0 : i32, i32
  }
  func.func @transform_8(%arg0: i32) -> (i32, i32) {
    %c0_i32 = arith.constant 0 : i32
    %c0_i32_0 = arith.constant 0 : i32
    %c0_i32_1 = arith.constant 0 : i32
    return %c0_i32, %c0_i32_0 : i32, i32
  }
  func.func @transform_9(%arg0: i32) -> (i32, i32) {
    %c0_i32 = arith.constant 0 : i32
    %c0_i32_0 = arith.constant 0 : i32
    %c0_i32_1 = arith.constant 0 : i32
    return %c0_i32, %c0_i32_0 : i32, i32
  }
  func.func @transform_10(%arg0: i32) -> (i32, i32) {
    %c0_i32 = arith.constant 0 : i32
    %c0_i32_0 = arith.constant 0 : i32
    %c0_i32_1 = arith.constant 0 : i32
    return %c0_i32, %c0_i32_0 : i32, i32
  }
  func.func @transform_11(%arg0: i32) -> (i32, i32) {
    %c0_i32 = arith.constant 0 : i32
    %c0_i32_0 = arith.constant 0 : i32
    %c0_i32_1 = arith.constant 0 : i32
    return %c0_i32, %c0_i32_0 : i32, i32
  }
  func.func @transform_12(%arg0: i32) -> (i32, i32) {
    %c0_i32 = arith.constant 0 : i32
    %c0_i32_0 = arith.constant 0 : i32
    %c0_i32_1 = arith.constant 0 : i32
    return %c0_i32, %c0_i32_0 : i32, i32
  }
  func.func @transform_13(%arg0: i32) -> (i32, i32) {
    %c0_i32 = arith.constant 0 : i32
    %c0_i32_0 = arith.constant 0 : i32
    %c0_i32_1 = arith.constant 0 : i32
    return %c0_i32, %c0_i32_0 : i32, i32
  }
  func.func @transform_14(%arg0: i32) -> (i32, i32) {
    %c0_i32 = arith.constant 0 : i32
    %c0_i32_0 = arith.constant 0 : i32
    %c0_i32_1 = arith.constant 0 : i32
    return %c0_i32, %c0_i32_0 : i32, i32
  }
  func.func @transform_15(%arg0: i32) -> (i32, i32) {
    %c0_i32 = arith.constant 0 : i32
    %c0_i32_0 = arith.constant 0 : i32
    %c0_i32_1 = arith.constant 0 : i32
    return %c0_i32, %c0_i32_0 : i32, i32
  }
  func.func @transform_16(%arg0: i32) -> (i32, i32) {
    %c0_i32 = arith.constant 0 : i32
    %c0_i32_0 = arith.constant 0 : i32
    %c0_i32_1 = arith.constant 0 : i32
    return %c0_i32, %c0_i32_0 : i32, i32
  }
  func.func @transform_17(%arg0: i32) -> (i32, i32) {
    %c0_i32 = arith.constant 0 : i32
    %c0_i32_0 = arith.constant 0 : i32
    %c0_i32_1 = arith.constant 0 : i32
    return %c0_i32, %c0_i32_0 : i32, i32
  }
  func.func @transform_18(%arg0: i32) -> (i32, i32) {
    %c0_i32 = arith.constant 0 : i32
    %c0_i32_0 = arith.constant 0 : i32
    %c0_i32_1 = arith.constant 0 : i32
    return %c0_i32, %c0_i32_0 : i32, i32
  }
  func.func @transform_19(%arg0: i32) -> (i32, i32) {
    %c0_i32 = arith.constant 0 : i32
    %c0_i32_0 = arith.constant 0 : i32
    %c0_i32_1 = arith.constant 0 : i32
    return %c0_i32, %c0_i32_0 : i32, i32
  }
  func.func @transform_20(%arg0: i32) -> (i32, i32) {
    %c0_i32 = arith.constant 0 : i32
    %c0_i32_0 = arith.constant 0 : i32
    %c0_i32_1 = arith.constant 0 : i32
    return %c0_i32, %c0_i32_0 : i32, i32
  }
  func.func @transform_21(%arg0: i32) -> (i32, i32) {
    %c0_i32 = arith.constant 0 : i32
    %c0_i32_0 = arith.constant 0 : i32
    %c0_i32_1 = arith.constant 0 : i32
    return %c0_i32, %c0_i32_0 : i32, i32
  }
  func.func @transform_22(%arg0: i32) -> (i32, i32) {
    %c0_i32 = arith.constant 0 : i32
    %c0_i32_0 = arith.constant 0 : i32
    %c0_i32_1 = arith.constant 0 : i32
    return %c0_i32, %c0_i32_0 : i32, i32
  }
  func.func @transform_23(%arg0: i32) -> (i32, i32) {
    %c0_i32 = arith.constant 0 : i32
    %c0_i32_0 = arith.constant 0 : i32
    %c0_i32_1 = arith.constant 0 : i32
    return %c0_i32, %c0_i32_0 : i32, i32
  }
  func.func @transform_24(%arg0: i32) -> (i32, i32) {
    %c0_i32 = arith.constant 0 : i32
    %c0_i32_0 = arith.constant 0 : i32
    %c0_i32_1 = arith.constant 0 : i32
    return %c0_i32, %c0_i32_0 : i32, i32
  }
  func.func @transform_25(%arg0: i32) -> (i32, i32, i32) {
    %c0_i32 = arith.constant 0 : i32
    %c0_i32_0 = arith.constant 0 : i32
    %c0_i32_1 = arith.constant 0 : i32
    return %arg0, %c0_i32, %c0_i32_0 : i32, i32, i32
  }
}

module attributes {stable_mosaic.version = 11 : i64} {
  func.func @_norm_generator_kernel(%arg0: i32, %arg1: i32, %arg2: memref<16x32xf32, #tpu.memory_space<vmem>>, %arg3: memref<1x32xf32, #tpu.memory_space<vmem>>, %arg4: memref<1x32xf32, #tpu.memory_space<vmem>>, %arg5: memref<32x60xbf16, #tpu.memory_space<vmem>>, %arg6: memref<1x60xf32, #tpu.memory_space<vmem>>, %arg7: memref<16x60xf32, #tpu.memory_space<vmem>>) attributes {dimension_semantics = [#tpu.dimension_semantics<parallel>, #tpu.dimension_semantics<parallel>], iteration_bounds = array<i64: 1, 1>, scalar_prefetch = 0 : i64, scratch_operands = 0 : i64, tpu.core_type = #tpu.core_type<tc>, window_params = [{transform_indices = @transform_0, window_bounds = array<i64: 16, 32>}, {pipeline_mode = #tpu.pipeline_mode<synchronous>, transform_indices = @transform_1, window_bounds = array<i64: 1, 32>}, {pipeline_mode = #tpu.pipeline_mode<synchronous>, transform_indices = @transform_2, window_bounds = array<i64: 1, 32>}, {transform_indices = @transform_3, window_bounds = array<i64: 32, 60>}, {transform_indices = @transform_4, window_bounds = array<i64: 1, 60>}, {transform_indices = @transform_5, window_bounds = array<i64: 16, 60>}]} {
    %c0 = arith.constant 0 : index
    %c0_0 = arith.constant 0 : index
    %0 = vector.load %arg2[%c0, %c0_0] : memref<16x32xf32, #tpu.memory_space<vmem>>, vector<16x32xf32>
    %c0_1 = arith.constant 0 : index
    %c0_2 = arith.constant 0 : index
    %1 = vector.load %arg3[%c0_1, %c0_2] : memref<1x32xf32, #tpu.memory_space<vmem>>, vector<1x32xf32>
    %c0_3 = arith.constant 0 : index
    %c0_4 = arith.constant 0 : index
    %2 = vector.load %arg4[%c0_3, %c0_4] : memref<1x32xf32, #tpu.memory_space<vmem>>, vector<1x32xf32>
    %cst = arith.constant dense<0.000000e+00> : vector<16xf32>
    %3 = vector.multi_reduction <add>, %0, %cst [1] : vector<16x32xf32> to vector<16xf32>
    %4 = vector.shape_cast %3 : vector<16xf32> to vector<16x1xf32>
    %cst_5 = arith.constant 3.200000e+01 : f32
    %5 = vector.broadcast %cst_5 : f32 to vector<16x1xf32>
    %6 = arith.divf %4, %5 : vector<16x1xf32>
    %7 = vector.broadcast %6 : vector<16x1xf32> to vector<16x32xf32>
    %8 = arith.subf %0, %7 : vector<16x32xf32>
    %9 = arith.mulf %8, %8 : vector<16x32xf32>
    %cst_6 = arith.constant dense<0.000000e+00> : vector<16xf32>
    %10 = vector.multi_reduction <add>, %9, %cst_6 [1] : vector<16x32xf32> to vector<16xf32>
    %11 = vector.shape_cast %10 : vector<16xf32> to vector<16x1xf32>
    %cst_7 = arith.constant 3.200000e+01 : f32
    %12 = vector.broadcast %cst_7 : f32 to vector<16x1xf32>
    %13 = arith.divf %11, %12 : vector<16x1xf32>
    %14 = vector.broadcast %6 : vector<16x1xf32> to vector<16x32xf32>
    %15 = arith.subf %0, %14 : vector<16x32xf32>
    %cst_8 = arith.constant 9.99999974E-6 : f32
    %16 = vector.broadcast %cst_8 : f32 to vector<16x1xf32>
    %17 = arith.addf %13, %16 : vector<16x1xf32>
    %18 = math.rsqrt %17 : vector<16x1xf32>
    %19 = vector.broadcast %18 : vector<16x1xf32> to vector<16x32xf32>
    %20 = arith.mulf %15, %19 : vector<16x32xf32>
    %21 = vector.broadcast %1 : vector<1x32xf32> to vector<16x32xf32>
    %22 = arith.mulf %20, %21 : vector<16x32xf32>
    %23 = vector.broadcast %2 : vector<1x32xf32> to vector<16x32xf32>
    %24 = arith.addf %22, %23 : vector<16x32xf32>
    %25 = arith.truncf %24 : vector<16x32xf32> to vector<16x32xbf16>
    %c0_9 = arith.constant 0 : index
    %c0_10 = arith.constant 0 : index
    %26 = vector.load %arg5[%c0_9, %c0_10] : memref<32x60xbf16, #tpu.memory_space<vmem>>, vector<32x60xbf16>
    %cst_11 = arith.constant dense<0.000000e+00> : vector<16x60xf32>
    %27 = tpu.matmul %25, %26, %cst_11 {dimension_numbers = #tpu.dot_dimension_numbers<[1], [0], [0], [1], [0, 0, 1, 1], [], []>} : vector<16x32xbf16>, vector<32x60xbf16>, vector<16x60xf32> -> vector<16x60xf32>
    %c0_12 = arith.constant 0 : index
    %c0_13 = arith.constant 0 : index
    %28 = vector.load %arg6[%c0_12, %c0_13] : memref<1x60xf32, #tpu.memory_space<vmem>>, vector<1x60xf32>
    %29 = vector.broadcast %28 : vector<1x60xf32> to vector<16x60xf32>
    %30 = arith.addf %27, %29 : vector<16x60xf32>
    %c0_14 = arith.constant 0 : index
    %c0_15 = arith.constant 0 : index
    %31 = vector.load %arg7[%c0_14, %c0_15] : memref<16x60xf32, #tpu.memory_space<vmem>>, vector<16x60xf32>
    tpu.vector_store %arg7[%c0_14, %c0_15], %30 {strides = array<i32>} : memref<16x60xf32, #tpu.memory_space<vmem>>, vector<16x60xf32>,
    return
  }
  func.func @transform_0(%arg0: i32, %arg1: i32) -> (i32, i32) {
    %c0_i32 = arith.constant 0 : i32
    %c0_i32_0 = arith.constant 0 : i32
    return %arg0, %c0_i32 : i32, i32
  }
  func.func @transform_1(%arg0: i32, %arg1: i32) -> (i32, i32) {
    %c0_i32 = arith.constant 0 : i32
    %c0_i32_0 = arith.constant 0 : i32
    %c0_i32_1 = arith.constant 0 : i32
    return %c0_i32, %c0_i32_0 : i32, i32
  }
  func.func @transform_2(%arg0: i32, %arg1: i32) -> (i32, i32) {
    %c0_i32 = arith.constant 0 : i32
    %c0_i32_0 = arith.constant 0 : i32
    %c0_i32_1 = arith.constant 0 : i32
    return %c0_i32, %c0_i32_0 : i32, i32
  }
  func.func @transform_3(%arg0: i32, %arg1: i32) -> (i32, i32) {
    %c0_i32 = arith.constant 0 : i32
    %c0_i32_0 = arith.constant 0 : i32
    return %c0_i32, %arg1 : i32, i32
  }
  func.func @transform_4(%arg0: i32, %arg1: i32) -> (i32, i32) {
    %c0_i32 = arith.constant 0 : i32
    %c0_i32_0 = arith.constant 0 : i32
    return %c0_i32, %arg1 : i32, i32
  }
  func.func @transform_5(%arg0: i32, %arg1: i32) -> (i32, i32) {
    %c0_i32 = arith.constant 0 : i32
    return %arg0, %arg1 : i32, i32
  }
}

</mosaic_0001>

<bundles_post_ra>
// kernel: seq2seq_transformer_forward.5
= control target key start
LH: loop header
LB: loop body
LE: loop exit
PB: predicated region body
PF: predicated region fallthrough
CT: control target
= control target key end

     0   :  { %s1757_s24 = smov 0   ;;  %s1949_s0 = inlined_call_operand.vmem [shape: f32[2,8,32], index: 0, kind: input, shape index: {}]   ;;  %s1950_s1 = inlined_call_operand.vmem [shape: f32[8,8], index: 1, kind: input, shape index: {}]   ;;  %s1951_s2 = inlined_call_operand.vmem [shape: f32[2,1,8], index: 2, kind: input, shape index: {}]   ;;  %s1952_s3 = inlined_call_operand.vmem [shape: bf16[32,96], index: 3, kind: input, shape index: {}]   ;;  %s1953_s4 = inlined_call_operand.vmem [shape: f32[1,96], index: 4, kind: input, shape index: {}]   ;;  %s1954_s5 = inlined_call_operand.vmem [shape: bf16[32,32], index: 5, kind: input, shape index: {}]   ;;  %s1955_s6 = inlined_call_operand.vmem [shape: f32[1,32], index: 6, kind: input, shape index: {}]   ;;  %s1956_s7 = inlined_call_operand.vmem [shape: f32[1,32], index: 7, kind: input, shape index: {}]   ;;  %s1957_s8 = inlined_call_operand.vmem [shape: f32[1,32], index: 8, kind: input, shape index: {}]   ;;  %s1958_s9 = inlined_call_operand.vmem [shape: bf16[32,64], index: 9, kind: input, shape index: {}]   ;;  %s1959_s10 = inlined_call_operand.vmem [shape: f32[1,64], index: 10, kind: input, shape index: {}]   ;;  %s1960_s11 = inlined_call_operand.vmem [shape: bf16[64,32], index: 11, kind: input, shape index: {}]   ;;  %s1961_s12 = inlined_call_operand.vmem [shape: f32[1,32], index: 12, kind: input, shape index: {}]   ;;  %s1962_s13 = inlined_call_operand.vmem [shape: f32[1,32], index: 13, kind: input, shape index: {}]   ;;  %s1963_s14 = inlined_call_operand.vmem [shape: f32[1,32], index: 14, kind: input, shape index: {}]   ;;  %s1964_s15 = inlined_call_operand.vmem [shape: f32[1,32], index: 15, kind: input, shape index: {}]   ;;  %s1965_s16 = inlined_call_operand.vmem [shape: f32[1,32], index: 16, kind: input, shape index: {}]   ;;  %s1966_s17 = inlined_call_operand.vmem [shape: f32[2,8,32], index: 17, kind: output, shape index: {}]  }
   0x1   :  { %1967 = sst [smem:[#allocation2_spill]] %s1949_s0 }
   0x2   :  { %1968 = sst [smem:[#allocation3_spill]] %s1950_s1 }
   0x3 LB: > { %s1447_s25 = sadd.s32 4294967295, %s1655_s24   ;;  %p1451_p0 = scmp.ge.s32.totalorder %s1655_s24, 1  ;;  %s1655_s24 = sphi %s1757_s24, %s27_s24  }
   0x4   : > { %p494_p1 = scmp.lt.s32.totalorder %s1655_s24, 3 }
   0x6   : > { %p495_p2 = pnand %p1451_p0, %p494_p1 }
   0x7   : > { %p547_p3 = scmp.lt.s32.totalorder (!%p495_p2), %s1447_s25, 1  ;;  %s1969_s30 = sld [smem:[#allocation2_spill]] (!%p495_p2) }
   0x8   : > { %498 = sbr.rel (%p495_p2) target bundleno = 2499 (0x9c3), region = 88  ;;  %s1659_s20 = smov (!%p495_p2), 104  }
   0x9   : > { %s1660_s21 = smov (!%p495_p2), 120   ;;  %s1661_s22 = smov (!%p495_p2), 96  }
   0xa   : > { %s1662_s23 = smov (!%p495_p2), 112   ;;  %s1970_s0 = sld [smem:[#allocation3_spill]] (!%p495_p2) }
   0xd   : > { %v1619_v0 = vld [vmem:[%s1952_s3 + $0x8] sm:$0xff]   ;;  %v1657_v1 = vmov 0.0   ;;  %v1620_v2 = vld [vmem:[%s1952_s3] sm:$0xff]   ;;  %vm1658_vm0 = vmmov 0   ;;  %s1972_s25 = smov (!%p547_p3, %s1447_s25), 1  ;;  %vm584_vm1 = vcmask 261120  }
   0xe   : > { %1517 = vmatprep.subr.bf16.mxu0 %v1657_v1  ;;  %1525 = vmatprep.subr.bf16.mxu1 %v1657_v1  ;;  %s1452_s28 = sshll.u32 %s1972_s25, 3  ;;  %v1454_v5 = vld [vmem:[%s1953_s4] ss:$0 sm:$0xff]  ;;  %vm652_vm2 = vcmask 64512   ;;  %s553_s26 = scalar_lea.vmem %s1951_s2, %s1972_s25  ;;  %vm904_vm3 = vcmask 1043456   ;;  %vm1105_vm4 = vcmask 130048  }
   0xf   : > { %1518 = vmatpush3.bf16.msra.mxu0 %v1619_v0  ;;  %1521 = vmatprep.mubr.msk.bf16.mxu0 %vm1658_vm0, %v1657_v1  ;;  %s550_s18 = scalar_lea.vmem %s1969_s30, %s1452_s28  ;;  %v1458_v24 = vld [vmem:[%s553_s26] ss:$0 sm:$0xff]  ;;  %s1663_s30 = smov 64   ;;  %vm1107_vm5 = vcmask 195584   ;;  %vm1310_vm6 = vcmask 523264  }
  0x10   : > { %1519 = vmatprep.subr.bf16.mxu0 %v1657_v1  ;;  %1527 = vmatprep.mubr.msk.bf16.mxu1 %vm1658_vm0, %v1657_v1  ;;  %v1787_v3 = vld [vmem:[%s550_s18] sm:$0xff]  ;;  %s557_s15 = scalar_lea.vmem %s1966_s17, %s1452_s28 }
  0x11   : > { %v560_v4 = vpack.c.bf16 %v1787_v3, %v1787_v3  ;;  %v628_v23 = vld [vmem:[%s1970_s0] sm:$0xff] }
  0x12   : > { %v636_v25 = vadd.f32 %v1458_v24, %v628_v23 }
  0x13   : > { %1520 = vmatpush3.bf16.msra.mxu0 %v1620_v2 }
  0x14   : > { %1531 = vmatprep.subr.bf16.mxu0 %v1657_v1 }
  0x16   : > { %1522 = vmatmul.mubr.msk.bf16.vlgmr.msra.gmra.mxu0 %vm584_vm1, %v560_v4 }
  0x17   : > { %1533 = vmatprep.mubr.msk.bf16.mxu0 %vm1658_vm0, %v1657_v1 }
  0xd6   : > { %v622_v6 = vpop.f32.mrf.mxu0 }
  0xd7   : > { %v623_v7 = vadd.f32 %v1454_v5, %v622_v6 }
  0xd8   : > { %v1523_v8 = vpop.f32.mrf.mxu0 }
  0xd9   : > { %v1797_v9 = vpack.c.bf16 %v623_v7, %v623_v7 }
  0xda   : > { %v625_v10 = vpop.f32.mrf.mxu0 }
  0xdb   : > { %648 = vrot.lane.b32.xlu1 %v1797_v9, %s1659_s20  ;;  %644 = vrot.lane.b32.xlu0 %v1797_v9, %s1660_s21  ;;  %s1664_s21 = smov 8  }
  0xdc   : > { %v1524_v11 = vpop.f32.mrf.mxu0 }
  0xdf   : > { %650 = vrot.lane.b32.xlu1 %v1797_v9, %s1661_s22  ;;  %646 = vrot.lane.b32.xlu0 %v1797_v9, %s1662_s23  ;;  %s1666_s23 = smov 24  }
 0x14d   : > { %v1803_v12 = vpop.permute.xlu1 %648  ;;  %v1805_v13 = vpop.permute.xlu0 %644 }
 0x14e   : > { %699 = vrot.lane.b32.xlu0 %v1805_v13, %s1661_s22 }
 0x151   : > { %v651_v14 = vpop.permute.xlu1 %650  ;;  %v1808_v15 = vpop.permute.xlu0 %646 }
 0x152   : > { %795 = vrot.lane.b32.xlu0 %v1803_v12, %s1661_s22  ;;  %747 = vrot.lane.b32.xlu1 %v1808_v15, %s1661_s22  ;;  %v657_v16 = vsel %vm652_vm2, %v651_v14, 0  ;;  %s1665_s22 = smov 16  }
 0x153   : > { %1526 = vmatpush3.bf16.xpose.msra.mxu1 %v657_v16 }
 0x154   : > { %1537 = vmatprep.subr.bf16.mxu1 %v1657_v1 }
 0x15a   : > { %1528 = vmatmul.mubr.msk.bf16.vlgmr.msra.gmra.mxu1 %vm652_vm2, %v1797_v9 }
 0x15b   : > { %1539 = vmatprep.mubr.msk.bf16.mxu1 %vm1658_vm0, %v1657_v1 }
 0x1c0   : > { %v700_v17 = vpop.permute.xlu0 %699 }
 0x1c1   : > { %v705_v18 = vsel %vm652_vm2, %v700_v17, 0 }
 0x1c2   : > { %1532 = vmatpush3.bf16.xpose.msra.mxu0 %v705_v18 }
 0x1c3   : > { %1543 = vmatprep.subr.bf16.mxu0 %v1657_v1 }
 0x1c4   : > { %v748_v19 = vpop.permute.xlu1 %747  ;;  %v796_v21 = vpop.permute.xlu0 %795 }
 0x1c5   : > { %v753_v20 = vsel %vm652_vm2, %v748_v19, 0  ;;  %v801_v22 = vsel %vm652_vm2, %v796_v21, 0 }
 0x1c6   : > { %1538 = vmatpush3.bf16.xpose.msra.mxu1 %v753_v20 }
 0x1c7   : > { %1549 = vmatprep.subr.bf16.mxu1 %v1657_v1 }
 0x1c9   : > { %1534 = vmatmul.mubr.msk.bf16.vlgmr.msra.gmra.mxu0 %vm652_vm2, %v1805_v13 }
 0x1ca   : > { %1544 = vmatpush3.bf16.xpose.msra.mxu0 %v801_v22  ;;  %1545 = vmatprep.mubr.msk.bf16.mxu0 %vm1658_vm0, %v1657_v1 }
 0x1cb   : > { %1555 = vmatprep.subr.bf16.mxu0 %v1657_v1 }
 0x1cd   : > { %1540 = vmatmul.mubr.msk.bf16.vlgmr.msra.gmra.mxu1 %vm652_vm2, %v1808_v15 }
 0x1ce   : > { %1551 = vmatprep.mubr.msk.bf16.mxu1 %vm1658_vm0, %v1657_v1 }
 0x1d1   : > { %1546 = vmatmul.mubr.msk.bf16.vlgmr.msra.gmra.mxu0 %vm652_vm2, %v1803_v12 }
 0x1d2   : > { %1557 = vmatprep.mubr.msk.bf16.mxu0 %vm1658_vm0, %v1657_v1 }
 0x21a   : > { %v693_v26 = vpop.f32.mrf.mxu1 }
 0x21b   : > { %v843_v27 = vmul.f32 0.35355338, %v693_v26 }
 0x21c   : > { %v1529_v28 = vpop.f32.mrf.mxu1 }
 0x21d   : > { %v847_v29 = vadd.f32 %v843_v27, %v636_v25 }
 0x21e   : > { %v696_v30 = vpop.f32.mrf.mxu1 }
 0x21f   : > { %v851_v31 = vsel %vm652_vm2, %v847_v29, -inf }
 0x220   : > { %v1530_v32 = vpop.f32.mrf.mxu1  ;;  %852 = vmax.xlane.f32.xlu1 %v851_v31 }
 0x289   : > { %v741_v33 = vpop.f32.mrf.mxu0 }
 0x28a   : > { %v844_v34 = vmul.f32 0.35355338, %v741_v33 }
 0x28b   : > { %v1535_v35 = vpop.f32.mrf.mxu0 }
 0x28c   : > { %v848_v36 = vadd.f32 %v844_v34, %v636_v25 }
 0x28d   : > { %v744_v37 = vpop.f32.mrf.mxu0  ;;  %v789_v38 = vpop.f32.mrf.mxu1 }
 0x28e   : > { %v845_v39 = vmul.f32 0.35355338, %v789_v38  ;;  %v854_v40 = vsel %vm652_vm2, %v848_v36, -inf }
 0x28f   : > { %v1541_v41 = vpop.f32.mrf.mxu1  ;;  %855 = vmax.xlane.f32.xlu0 %v854_v40  ;;  %v1536_v42 = vpop.f32.mrf.mxu0  ;;  %v1621_v40 = vld [vmem:[%s1954_s5 + $0x8] sm:$0xff]  }
 0x290   : > { %v849_v43 = vadd.f32 %v845_v39, %v636_v25  ;;  %v1622_v41 = vld [vmem:[%s1954_s5] sm:$0xff]  }
 0x291   : > { %v792_v44 = vpop.f32.mrf.mxu1  ;;  %v837_v45 = vpop.f32.mrf.mxu0 }
 0x292   : > { %v846_v46 = vmul.f32 0.35355338, %v837_v45  ;;  %v857_v47 = vsel %vm652_vm2, %v849_v43, -inf }
 0x293   : > { %v1542_v48 = vpop.f32.mrf.mxu1  ;;  %858 = vmax.xlane.f32.xlu0 %v857_v47  ;;  %v1547_v49 = vpop.f32.mrf.mxu0 }
 0x294   : > { %v850_v50 = vadd.f32 %v846_v46, %v636_v25 }
 0x295   : > { %v840_v51 = vpop.f32.mrf.mxu0 }
 0x296   : > { %v860_v52 = vsel %vm652_vm2, %v850_v50, -inf }
 0x297   : > { %861 = vmax.xlane.f32.xlu1 %v860_v52  ;;  %v1548_v53 = vpop.f32.mrf.mxu0 }
 0x2a8   : > { %948 = vrot.lane.b32.xlu1 %v1805_v13, %s1663_s30 }
 0x2a9   : > { %899 = vrot.lane.b32.xlu0 %v1797_v9, %s1663_s30  ;;  %v853_v54 = vpop.xlane.xlu1 %852 }
 0x2aa   : > { %v863_v55 = vsub.f32 %v847_v29, %v853_v54 }
 0x2ac   : > { %v867_v56 = vmul.f32 1.442695, %v863_v55 }
 0x2ae   : > { %1629 = vpow2.f32 %v867_v56 }
 0x2bb   : > { %v1630_v57 = vpop.eup %1629 }
 0x2bc   : > { %v875_v58 = vsel %vm652_vm2, %v1630_v57, 0.0 }
 0x2c8   : > { %876 = vadd.xlane.f32.xlu0 %v875_v58 }
 0x318   : > { %v856_v59 = vpop.xlane.xlu0 %855 }
 0x319   : > { %v864_v60 = vsub.f32 %v848_v36, %v856_v59 }
 0x31b   : > { %v869_v61 = vmul.f32 1.442695, %v864_v60 }
 0x31c   : > { %v859_v62 = vpop.xlane.xlu0 %858 }
 0x31d   : > { %1631 = vpow2.f32 %v869_v61  ;;  %v865_v63 = vsub.f32 %v849_v43, %v859_v62  ;;  %v1467_v61 = vld [vmem:[%s1955_s6] ss:$0 sm:$0xff] }
 0x31f   : > { %v871_v0 = vmul.f32 1.442695, %v865_v63 }
 0x320   : > { %v900_v2 = vpop.permute.xlu0 %899  ;;  %v862_v4 = vpop.xlane.xlu1 %861 }
 0x321   : > { %1633 = vpow2.f32 %v871_v0  ;;  %v906_v5 = vsel %vm904_vm3, %v900_v2, 0  ;;  %v866_v6 = vsub.f32 %v850_v50, %v862_v4 }
 0x322   : > { %1550 = vmatpush3.bf16.msra.mxu1 %v906_v5 }
 0x323   : > { %v873_v7 = vmul.f32 1.442695, %v866_v6  ;;  %1561 = vmatprep.subr.bf16.mxu1 %v1657_v1 }
 0x324   : > { %v949_v8 = vpop.permute.xlu1 %948 }
 0x325   : > { %1635 = vpow2.f32 %v873_v7  ;;  %v954_v9 = vsel %vm904_vm3, %v949_v8, 0 }
 0x326   : > { %1556 = vmatpush3.bf16.msra.mxu0 %v954_v9 }
 0x327   : > { %1567 = vmatprep.subr.bf16.mxu0 %v1657_v1 }
 0x32a   : > { %v1632_v10 = vpop.eup %1631 }
 0x32b   : > { %v878_v11 = vsel %vm652_vm2, %v1632_v10, 0.0 }
 0x32c   : > { %879 = vadd.xlane.f32.xlu1 %v878_v11 }
 0x32e   : > { %v1634_v13 = vpop.eup %1633 }
 0x32f   : > { %v881_v14 = vsel %vm652_vm2, %v1634_v13, 0.0 }
 0x330   : > { %882 = vadd.xlane.f32.xlu0 %v881_v14  ;;  %v1625_v14 = vld [vmem:[%s1960_s11 + $0x18] sm:$0xff]  }
 0x332   : > { %v1636_v16 = vpop.eup %1635 }
 0x333   : > { %v884_v17 = vsel %vm652_vm2, %v1636_v16, 0.0 }
 0x334   : > { %885 = vadd.xlane.f32.xlu1 %v884_v17 }
 0x345   : > { %996 = vrot.lane.b32.xlu1 %v1808_v15, %s1663_s30 }
 0x346   : > { %1044 = vrot.lane.b32.xlu0 %v1803_v12, %s1663_s30 }
 0x351   : > { %v877_v18 = vpop.xlane.xlu0 %876 }
 0x352   : > { %1637 = vrcp.f32 %v877_v18 }
 0x35f   : > { %v1638_v19 = vpop.eup %1637 }
 0x360   : > { %v891_v20 = vmul.f32 %v1638_v19, %v1630_v57 }
 0x362   : > { %v895_v21 = vpack.c.bf16 %v891_v20, %v891_v20 }
 0x364   : > { %1552 = vmatmul.mubr.msk.bf16.vlgmr.msra.gmra.mxu1 %vm652_vm2, %v895_v21  ;;  %v1471_v21 = vld [vmem:[%s1956_s7] ss:$0 sm:$0xff] }
 0x365   : > { %1563 = vmatprep.mubr.msk.bf16.mxu1 %vm1658_vm0, %v1657_v1 }
 0x3b5   : > { %v880_v22 = vpop.xlane.xlu1 %879 }
 0x3b6   : > { %1639 = vrcp.f32 %v880_v22 }
 0x3b9   : > { %v883_v23 = vpop.xlane.xlu0 %882 }
 0x3ba   : > { %1641 = vrcp.f32 %v883_v23  ;;  %v1472_v23 = vld [vmem:[%s1957_s8] ss:$0 sm:$0xff] }
 0x3bd   : > { %v886_v24 = vpop.xlane.xlu1 %885  ;;  %v1045_v27 = vpop.permute.xlu0 %1044 }
 0x3be   : > { %1643 = vrcp.f32 %v886_v24  ;;  %v1050_v30 = vsel %vm904_vm3, %v1045_v27, 0  ;;  %v1473_v27 = vld [vmem:[%s1959_s10] ss:$0 sm:$0xff] }
 0x3c1   : > { %v997_v15 = vpop.permute.xlu1 %996 }
 0x3c2   : > { %v1002_v25 = vsel %vm904_vm3, %v997_v15, 0 }
 0x3c3   : > { %v1640_v12 = vpop.eup %1639  ;;  %1562 = vmatpush3.bf16.msra.mxu1 %v1002_v25 }
 0x3c4   : > { %v892_v26 = vmul.f32 %v1640_v12, %v1632_v10  ;;  %1573 = vmatprep.subr.bf16.mxu1 %v1657_v1  ;;  %v1627_v12 = vld [vmem:[%s1960_s11 + $0x8] sm:$0xff]  }
 0x3c6   : > { %v896_v28 = vpack.c.bf16 %v892_v26, %v892_v26  ;;  %v1628_v26 = vld [vmem:[%s1960_s11] sm:$0xff]  }
 0x3c7   : > { %v1642_v29 = vpop.eup %1641 }
 0x3c8   : > { %1558 = vmatmul.mubr.msk.bf16.vlgmr.msra.gmra.mxu0 %vm652_vm2, %v896_v28  ;;  %v893_v31 = vmul.f32 %v1642_v29, %v1634_v13  ;;  %v1623_v13 = vld [vmem:[%s1958_s9 + $0x8] sm:$0xff]  }
 0x3c9   : > { %1568 = vmatpush3.bf16.msra.mxu0 %v1050_v30  ;;  %1569 = vmatprep.mubr.msk.bf16.mxu0 %vm1658_vm0, %v1657_v1 }
 0x3ca   : > { %v897_v32 = vpack.c.bf16 %v893_v31, %v893_v31  ;;  %1581 = vmatprep.subr.bf16.mxu0 %v1657_v1 }
 0x3cb   : > { %v1644_v33 = vpop.eup %1643 }
 0x3cc   : > { %1564 = vmatmul.mubr.msk.bf16.vlgmr.msra.gmra.mxu1 %vm652_vm2, %v897_v32  ;;  %v894_v34 = vmul.f32 %v1644_v33, %v1636_v16  ;;  %v1626_v16 = vld [vmem:[%s1960_s11 + $0x10] sm:$0xff]  }
 0x3cd   : > { %1577 = vmatprep.mubr.msk.bf16.mxu1 %vm1658_vm0, %v1657_v1  ;;  %1574 = vmatpush3.bf16.msra.mxu1 %v1621_v40 }
 0x3ce   : > { %v898_v35 = vpack.c.bf16 %v894_v34, %v894_v34  ;;  %1575 = vmatprep.subr.bf16.mxu1 %v1657_v1 }
 0x3d0   : > { %1570 = vmatmul.mubr.msk.bf16.vlgmr.msra.gmra.mxu0 %vm652_vm2, %v898_v35 }
 0x3d1   : > { %1585 = vmatprep.mubr.msk.bf16.mxu0 %vm1658_vm0, %v1657_v1  ;;  %1576 = vmatpush3.bf16.msra.mxu1 %v1622_v41 }
 0x3d2   : > { %1589 = vmatprep.subr.bf16.mxu1 %v1657_v1  ;;  %1582 = vmatpush3.bf16.msra.mxu0 %v1623_v13 }
 0x3d3   : > { %1583 = vmatprep.subr.bf16.mxu0 %v1657_v1 }
 0x424   : > { %v942_v36 = vpop.f32.mrf.mxu1 }
 0x426   : > { %v1553_v37 = vpop.f32.mrf.mxu1 }
 0x428   : > { %v945_v38 = vpop.f32.mrf.mxu1 }
 0x42a   : > { %v1554_v39 = vpop.f32.mrf.mxu1 }
 0x488   : > { %v990_v42 = vpop.f32.mrf.mxu0 }
 0x489   : > { %1093 = vrot.lane.b32.xlu1 %v990_v42, %s1664_s21 }
 0x48a   : > { %v1559_v43 = vpop.f32.mrf.mxu0 }
 0x48c   : > { %v993_v44 = vpop.f32.mrf.mxu0  ;;  %v1038_v45 = vpop.f32.mrf.mxu1 }
 0x48d   : > { %1097 = vrot.lane.b32.xlu0 %v1038_v45, %s1665_s22 }
 0x48e   : > { %v1560_v46 = vpop.f32.mrf.mxu0  ;;  %v1565_v47 = vpop.f32.mrf.mxu1 }
 0x490   : > { %v1041_v48 = vpop.f32.mrf.mxu1  ;;  %v1086_v49 = vpop.f32.mrf.mxu0 }
 0x491   : > { %1101 = vrot.lane.b32.xlu1 %v1086_v49, %s1666_s23 }
 0x492   : > { %v1566_v50 = vpop.f32.mrf.mxu1  ;;  %v1571_v51 = vpop.f32.mrf.mxu0 }
 0x493   : > { %v1483_v51 = vld [vmem:[%s1962_s13] ss:$0 sm:$0xff] }
 0x494   : > { %v1089_v52 = vpop.f32.mrf.mxu0 }
 0x496   : > { %v1572_v53 = vpop.f32.mrf.mxu0 }
 0x497   : > { %v1484_v53 = vld [vmem:[%s1963_s14] ss:$0 sm:$0xff] }
 0x4fb   : > { %v1094_v54 = vpop.permute.xlu1 %1093 }
 0x4fc   : > { %v1104_v56 = vsel %vm652_vm2, %v942_v36, %v1094_v54 }
 0x4ff   : > { %v1098_v55 = vpop.permute.xlu0 %1097 }
 0x500   : > { %v1106_v57 = vsel %vm1105_vm4, %v1104_v56, %v1098_v55 }
 0x503   : > { %v1102_v58 = vpop.permute.xlu1 %1101 }
 0x504   : > { %v1108_v59 = vsel %vm1107_vm5, %v1106_v57, %v1102_v58 }
 0x505   : > { %v1109_v60 = vpack.c.bf16 %v1108_v59, %v1108_v59 }
 0x507   : > { %1578 = vmatmul.mubr.msk.bf16.vlgmr.msra.gmra.mxu1 %vm584_vm1, %v1109_v60 }
 0x508   : > { %1597 = vmatprep.mubr.msk.bf16.mxu1 %vm1658_vm0, %v1657_v1  ;;  %1590 = vmatpush3.bf16.msra.mxu1 %v1625_v14 }
 0x509   : > { %1591 = vmatprep.subr.bf16.mxu1 %v1657_v1 }
 0x50c   : > { %1592 = vmatpush3.bf16.msra.mxu1 %v1626_v16 }
 0x50d   : > { %1593 = vmatprep.subr.bf16.mxu1 %v1657_v1 }
 0x510   : > { %1594 = vmatpush3.bf16.msra.mxu1 %v1627_v12 }
 0x511   : > { %1595 = vmatprep.subr.bf16.mxu1 %v1657_v1  ;;  %v1477_v1 = vld [vmem:[%s1961_s12] ss:$0 sm:$0xff] }
 0x514   : > { %1596 = vmatpush3.bf16.msra.mxu1 %v1628_v26 }
 0x5c7   : > { %v1165_v62 = vpop.f32.mrf.mxu1 }
 0x5c8   : > { %v1166_v63 = vadd.f32 %v1467_v61, %v1165_v62 }
 0x5c9   : > { %v1579_v0 = vpop.f32.mrf.mxu1 }
 0x5ca   : > { %v1171_v2 = vadd.f32 %v1166_v63, %v1787_v3  ;;  %v1624_v3 = vld [vmem:[%s1958_s9] sm:$0xff]  }
 0x5cb   : > { %v1168_v4 = vpop.f32.mrf.mxu1  ;;  %1584 = vmatpush3.bf16.msra.mxu0 %v1624_v3 }
 0x5cc   : > { %v1174_v5 = vsel %vm584_vm1, %v1171_v2, 0.0 }
 0x5cd   : > { %1175 = vadd.xlane.f32.xlu0 %v1174_v5  ;;  %v1580_v6 = vpop.f32.mrf.mxu1 }
 0x656   : > { %v1176_v7 = vpop.xlane.xlu0 %1175 }
 0x657   : > { %v1178_v8 = vmul.f32 0.03125, %v1176_v7 }
 0x659   : > { %v1179_v9 = vsub.f32 %v1171_v2, %v1178_v8 }
 0x65b   : > { %v1180_v10 = vmul.f32 %v1179_v9, %v1179_v9 }
 0x65d   : > { %v1181_v11 = vsel %vm584_vm1, %v1180_v10, 0.0 }
 0x65e   : > { %1182 = vadd.xlane.f32.xlu1 %v1181_v11 }
 0x6e7   : > { %v1183_v17 = vpop.xlane.xlu1 %1182 }
 0x6e8   : > { %v1184_v18 = vmul.f32 0.03125, %v1183_v17 }
 0x6ea   : > { %v1185_v19 = vadd.f32 1e-05, %v1184_v18 }
 0x6ec   : > { %1645 = vrsqrt.f32 %v1185_v19 }
 0x6f9   : > { %v1646_v20 = vpop.eup %1645 }
 0x6fa   : > { %v1187_v22 = vmul.f32 %v1646_v20, %v1179_v9 }
 0x6fc   : > { %v1194_v24 = vmul.f32 %v1471_v21, %v1187_v22 }
 0x6fe   : > { %v1201_v15 = vadd.f32 %v1472_v23, %v1194_v24 }
 0x700   : > { %v1216_v25 = vpack.c.bf16 %v1201_v15, %v1201_v15 }
 0x702   : > { %1586 = vmatmul.mubr.msk.bf16.vlgmr.msra.gmra.mxu0 %vm584_vm1, %v1216_v25 }
 0x7c2   : > { %v1272_v28 = vpop.f32.mrf.mxu0 }
 0x7c3   : > { %v1273_v29 = vadd.f32 %v1473_v27, %v1272_v28 }
 0x7c4   : > { %v1587_v30 = vpop.f32.mrf.mxu0 }
 0x7c5   : > { %v1278_v31 = vmax.f32 %v1273_v29, 0.0 }
 0x7c6   : > { %v1275_v32 = vpop.f32.mrf.mxu0 }
 0x7c7   : > { %v1279_v33 = vpack.c.bf16 %v1278_v31, %v1278_v31 }
 0x7c8   : > { %v1588_v34 = vpop.f32.mrf.mxu0 }
 0x7c9   : > { %1598 = vmatmul.mubr.msk.bf16.vlgmr.msra.gmra.mxu1 %vm1310_vm6, %v1279_v33 }
 0x889   : > { %v1348_v35 = vpop.f32.mrf.mxu1 }
 0x88a   : > { %v1349_v36 = vadd.f32 %v1477_v1, %v1348_v35 }
 0x88b   : > { %v1599_v37 = vpop.f32.mrf.mxu1 }
 0x88c   : > { %v1354_v38 = vadd.f32 %v1349_v36, %v1201_v15 }
 0x88d   : > { %v1351_v39 = vpop.f32.mrf.mxu1 }
 0x88e   : > { %v1357_v40 = vsel %vm584_vm1, %v1354_v38, 0.0 }
 0x88f   : > { %1358 = vadd.xlane.f32.xlu0 %v1357_v40  ;;  %v1600_v41 = vpop.f32.mrf.mxu1 }
 0x918   : > { %v1359_v42 = vpop.xlane.xlu0 %1358 }
 0x919   : > { %v1360_v43 = vmul.f32 0.03125, %v1359_v42 }
 0x91b   : > { %v1361_v44 = vsub.f32 %v1354_v38, %v1360_v43 }
 0x91d   : > { %v1362_v45 = vmul.f32 %v1361_v44, %v1361_v44 }
 0x91f   : > { %v1363_v46 = vsel %vm584_vm1, %v1362_v45, 0.0 }
 0x920   : > { %1364 = vadd.xlane.f32.xlu0 %v1363_v46 }
 0x9a9   : > { %v1365_v47 = vpop.xlane.xlu0 %1364 }
 0x9aa   : > { %v1366_v48 = vmul.f32 0.03125, %v1365_v47 }
 0x9ac   : > { %v1367_v49 = vadd.f32 1e-05, %v1366_v48 }
 0x9ae   : > { %1647 = vrsqrt.f32 %v1367_v49 }
 0x9bb   : > { %v1648_v50 = vpop.eup %1647 }
 0x9bc   : > { %v1369_v52 = vmul.f32 %v1648_v50, %v1361_v44 }
 0x9be   : > { %v1376_v54 = vmul.f32 %v1483_v51, %v1369_v52 }
 0x9c0   : > { %v1383_v55 = vadd.f32 %v1484_v53, %v1376_v54 }
 0x9c2   : > { %1384 = vst.msk [vmem:[%s557_s15] sm:$0xff] %vm584_vm1, %v1383_v55 }
 0x9c3 PF: > { %s27_s24 = sadd.s32 1, %s1655_s24  }
 0x9c4   : > { %p24_p4 = scmp.ge.s32.totalorder %s27_s24, 4  }
 0x9c6   :  { %26 = sbr.rel (!%p24_p4) target bundleno = 3 (0x3), region = 121 }

// kernel: seq2seq_transformer_forward.6
= control target key start
LH: loop header
LB: loop body
LE: loop exit
PB: predicated region body
PF: predicated region fallthrough
CT: control target
= control target key end

     0   :  { %s1792_s24 = smov 0   ;;  %s1988_s0 = inlined_call_operand.vmem [shape: f32[2,8,32], index: 0, kind: input, shape index: {}]   ;;  %s1989_s1 = inlined_call_operand.vmem [shape: f32[8,8], index: 1, kind: input, shape index: {}]   ;;  %s1990_s2 = inlined_call_operand.vmem [shape: f32[2,1,8], index: 2, kind: input, shape index: {}]   ;;  %s1991_s3 = inlined_call_operand.vmem [shape: bf16[32,96], index: 3, kind: input, shape index: {}]   ;;  %s1992_s4 = inlined_call_operand.vmem [shape: f32[1,96], index: 4, kind: input, shape index: {}]   ;;  %s1993_s5 = inlined_call_operand.vmem [shape: bf16[32,32], index: 5, kind: input, shape index: {}]   ;;  %s1994_s6 = inlined_call_operand.vmem [shape: f32[1,32], index: 6, kind: input, shape index: {}]   ;;  %s1995_s7 = inlined_call_operand.vmem [shape: f32[1,32], index: 7, kind: input, shape index: {}]   ;;  %s1996_s8 = inlined_call_operand.vmem [shape: f32[1,32], index: 8, kind: input, shape index: {}]   ;;  %s1997_s9 = inlined_call_operand.vmem [shape: bf16[32,64], index: 9, kind: input, shape index: {}]   ;;  %s1998_s10 = inlined_call_operand.vmem [shape: f32[1,64], index: 10, kind: input, shape index: {}]   ;;  %s1999_s11 = inlined_call_operand.vmem [shape: bf16[64,32], index: 11, kind: input, shape index: {}]   ;;  %s2000_s12 = inlined_call_operand.vmem [shape: f32[1,32], index: 12, kind: input, shape index: {}]   ;;  %s2001_s13 = inlined_call_operand.vmem [shape: f32[1,32], index: 13, kind: input, shape index: {}]   ;;  %s2002_s14 = inlined_call_operand.vmem [shape: f32[1,32], index: 14, kind: input, shape index: {}]   ;;  %s2003_s15 = inlined_call_operand.vmem [shape: f32[1,32], index: 15, kind: input, shape index: {}]   ;;  %s2004_s16 = inlined_call_operand.vmem [shape: f32[1,32], index: 16, kind: input, shape index: {}]   ;;  %s2005_s17 = inlined_call_operand.vmem [shape: bf16[2,8,32], index: 17, kind: output, shape index: {}]  }
   0x1   :  { %2006 = sst [smem:[#allocation2_spill]] %s1988_s0 }
   0x2   :  { %2007 = sst [smem:[#allocation3_spill]] %s1989_s1 }
   0x3 LB: > { %s1478_s25 = sadd.s32 4294967295, %s1690_s24   ;;  %p1482_p0 = scmp.ge.s32.totalorder %s1690_s24, 1  ;;  %s1690_s24 = sphi %s1792_s24, %s27_s24  }
   0x4   : > { %p494_p1 = scmp.lt.s32.totalorder %s1690_s24, 3 }
   0x6   : > { %p495_p2 = pnand %p1482_p0, %p494_p1 }
   0x7   : > { %p547_p3 = scmp.lt.s32.totalorder (!%p495_p2), %s1478_s25, 1  ;;  %s2008_s19 = sld [smem:[#allocation2_spill]] (!%p495_p2) }
   0x8   : > { %498 = sbr.rel (%p495_p2) target bundleno = 2809 (0xaf9), region = 88  ;;  %s1694_s22 = smov (!%p495_p2), 104  }
   0x9   : > { %s1695_s23 = smov (!%p495_p2), 120   ;;  %s1696_s26 = smov (!%p495_p2), 96  }
   0xa   : > { %s1697_s27 = smov (!%p495_p2), 112   ;;  %s1701_s28 = smov (!%p495_p2), 24  }
   0xd   : > { %v1652_v0 = vld [vmem:[%s1991_s3 + $0x8] sm:$0xff]   ;;  %v1692_v1 = vmov 0.0   ;;  %v1653_v2 = vld [vmem:[%s1991_s3] sm:$0xff]   ;;  %vm1693_vm0 = vmmov 0   ;;  %s2011_s25 = smov (!%p547_p3, %s1478_s25), 1  ;;  %vm584_vm1 = vcmask 261120  }
   0xe   : > { %1550 = vmatprep.subr.bf16.mxu0 %v1692_v1  ;;  %1558 = vmatprep.subr.bf16.mxu1 %v1692_v1  ;;  %s1483_s0 = sshll.u32 %s2011_s25, 3  ;;  %v1485_v5 = vld [vmem:[%s1992_s4] ss:$0 sm:$0xff]  ;;  %vm652_vm2 = vcmask 64512   ;;  %vm904_vm3 = vcmask 1043456   ;;  %vm1105_vm4 = vcmask 130048  }
   0xf   : > { %1551 = vmatpush3.bf16.msra.mxu0 %v1652_v0  ;;  %1554 = vmatprep.mubr.msk.bf16.mxu0 %vm1693_vm0, %v1692_v1  ;;  %s550_s1 = scalar_lea.vmem %s2008_s19, %s1483_s0  ;;  %s553_s0 = scalar_lea.vmem %s1990_s2, %s2011_s25  ;;  %vm1107_vm5 = vcmask 195584   ;;  %vm1310_vm6 = vcmask 523264   ;;  %vm1414_vm7 = vcmask 257024  }
  0x10   : > { %1552 = vmatprep.subr.bf16.mxu0 %v1692_v1  ;;  %1560 = vmatprep.mubr.msk.bf16.mxu1 %vm1693_vm0, %v1692_v1  ;;  %v1820_v3 = vld [vmem:[%s550_s1] sm:$0xff]  ;;  %s2009_s19 = sld [smem:[#allocation3_spill]]  ;;  %s1698_s1 = smov 64  }
  0x11   : > { %v560_v4 = vpack.c.bf16 %v1820_v3, %v1820_v3  ;;  %v1489_v24 = vld [vmem:[%s553_s0] ss:$0 sm:$0xff] }
  0x13   : > { %1553 = vmatpush3.bf16.msra.mxu0 %v1653_v2 }
  0x14   : > { %1564 = vmatprep.subr.bf16.mxu0 %v1692_v1 }
  0x16   : > { %1555 = vmatmul.mubr.msk.bf16.vlgmr.msra.gmra.mxu0 %vm584_vm1, %v560_v4  ;;  %v628_v23 = vld [vmem:[%s2009_s19] sm:$0xff]  ;;  %s1484_s19 = sshll.u32 %s2011_s25, 2 }
  0x17   : > { %1566 = vmatprep.mubr.msk.bf16.mxu0 %vm1693_vm0, %v1692_v1  ;;  %v636_v25 = vadd.f32 %v1489_v24, %v628_v23  ;;  %s557_s21 = scalar_lea.vmem %s2005_s17, %s1484_s19 }
  0xd6   : > { %v622_v6 = vpop.f32.mrf.mxu0 }
  0xd7   : > { %v623_v7 = vadd.f32 %v1485_v5, %v622_v6 }
  0xd8   : > { %v1556_v8 = vpop.f32.mrf.mxu0 }
  0xd9   : > { %v1830_v9 = vpack.c.bf16 %v623_v7, %v623_v7 }
  0xda   : > { %v625_v10 = vpop.f32.mrf.mxu0 }
  0xdb   : > { %648 = vrot.lane.b32.xlu1 %v1830_v9, %s1694_s22  ;;  %644 = vrot.lane.b32.xlu0 %v1830_v9, %s1695_s23 }
  0xdc   : > { %v1557_v11 = vpop.f32.mrf.mxu0 }
  0xdf   : > { %650 = vrot.lane.b32.xlu1 %v1830_v9, %s1696_s26  ;;  %646 = vrot.lane.b32.xlu0 %v1830_v9, %s1697_s27  ;;  %s1700_s27 = smov 16  }
 0x14d   : > { %v1836_v12 = vpop.permute.xlu1 %648  ;;  %v1838_v13 = vpop.permute.xlu0 %644 }
 0x14e   : > { %699 = vrot.lane.b32.xlu0 %v1838_v13, %s1696_s26 }
 0x151   : > { %v651_v14 = vpop.permute.xlu1 %650  ;;  %v1841_v15 = vpop.permute.xlu0 %646 }
 0x152   : > { %795 = vrot.lane.b32.xlu0 %v1836_v12, %s1696_s26  ;;  %747 = vrot.lane.b32.xlu1 %v1841_v15, %s1696_s26  ;;  %v657_v16 = vsel %vm652_vm2, %v651_v14, 0  ;;  %s1699_s26 = smov 8  }
 0x153   : > { %1559 = vmatpush3.bf16.xpose.msra.mxu1 %v657_v16 }
 0x154   : > { %1570 = vmatprep.subr.bf16.mxu1 %v1692_v1 }
 0x15a   : > { %1561 = vmatmul.mubr.msk.bf16.vlgmr.msra.gmra.mxu1 %vm652_vm2, %v1830_v9 }
 0x15b   : > { %1572 = vmatprep.mubr.msk.bf16.mxu1 %vm1693_vm0, %v1692_v1 }
 0x1c0   : > { %v700_v17 = vpop.permute.xlu0 %699 }
 0x1c1   : > { %v705_v18 = vsel %vm652_vm2, %v700_v17, 0 }
 0x1c2   : > { %1565 = vmatpush3.bf16.xpose.msra.mxu0 %v705_v18 }
 0x1c3   : > { %1576 = vmatprep.subr.bf16.mxu0 %v1692_v1 }
 0x1c4   : > { %v748_v19 = vpop.permute.xlu1 %747  ;;  %v796_v21 = vpop.permute.xlu0 %795 }
 0x1c5   : > { %v753_v20 = vsel %vm652_vm2, %v748_v19, 0  ;;  %v801_v22 = vsel %vm652_vm2, %v796_v21, 0 }
 0x1c6   : > { %1571 = vmatpush3.bf16.xpose.msra.mxu1 %v753_v20 }
 0x1c7   : > { %1582 = vmatprep.subr.bf16.mxu1 %v1692_v1 }
 0x1c9   : > { %1567 = vmatmul.mubr.msk.bf16.vlgmr.msra.gmra.mxu0 %vm652_vm2, %v1838_v13 }
 0x1ca   : > { %1577 = vmatpush3.bf16.xpose.msra.mxu0 %v801_v22  ;;  %1578 = vmatprep.mubr.msk.bf16.mxu0 %vm1693_vm0, %v1692_v1 }
 0x1cb   : > { %1588 = vmatprep.subr.bf16.mxu0 %v1692_v1 }
 0x1cd   : > { %1573 = vmatmul.mubr.msk.bf16.vlgmr.msra.gmra.mxu1 %vm652_vm2, %v1841_v15 }
 0x1ce   : > { %1584 = vmatprep.mubr.msk.bf16.mxu1 %vm1693_vm0, %v1692_v1 }
 0x1d1   : > { %1579 = vmatmul.mubr.msk.bf16.vlgmr.msra.gmra.mxu0 %vm652_vm2, %v1836_v12 }
 0x1d2   : > { %1590 = vmatprep.mubr.msk.bf16.mxu0 %vm1693_vm0, %v1692_v1 }
 0x21a   : > { %v693_v26 = vpop.f32.mrf.mxu1 }
 0x21b   : > { %v843_v27 = vmul.f32 0.35355338, %v693_v26 }
 0x21c   : > { %v1562_v28 = vpop.f32.mrf.mxu1 }
 0x21d   : > { %v847_v29 = vadd.f32 %v843_v27, %v636_v25 }
 0x21e   : > { %v696_v30 = vpop.f32.mrf.mxu1 }
 0x21f   : > { %v851_v31 = vsel %vm652_vm2, %v847_v29, -inf }
 0x220   : > { %v1563_v32 = vpop.f32.mrf.mxu1  ;;  %852 = vmax.xlane.f32.xlu1 %v851_v31 }
 0x289   : > { %v741_v33 = vpop.f32.mrf.mxu0 }
 0x28a   : > { %v844_v34 = vmul.f32 0.35355338, %v741_v33 }
 0x28b   : > { %v1568_v35 = vpop.f32.mrf.mxu0 }
 0x28c   : > { %v848_v36 = vadd.f32 %v844_v34, %v636_v25 }
 0x28d   : > { %v744_v37 = vpop.f32.mrf.mxu0  ;;  %v789_v38 = vpop.f32.mrf.mxu1 }
 0x28e   : > { %v845_v39 = vmul.f32 0.35355338, %v789_v38  ;;  %v854_v40 = vsel %vm652_vm2, %v848_v36, -inf }
 0x28f   : > { %v1574_v41 = vpop.f32.mrf.mxu1  ;;  %855 = vmax.xlane.f32.xlu0 %v854_v40  ;;  %v1569_v42 = vpop.f32.mrf.mxu0  ;;  %v1654_v40 = vld [vmem:[%s1993_s5 + $0x8] sm:$0xff]  }
 0x290   : > { %v849_v43 = vadd.f32 %v845_v39, %v636_v25  ;;  %v1655_v41 = vld [vmem:[%s1993_s5] sm:$0xff]  }
 0x291   : > { %v792_v44 = vpop.f32.mrf.mxu1  ;;  %v837_v45 = vpop.f32.mrf.mxu0 }
 0x292   : > { %v846_v46 = vmul.f32 0.35355338, %v837_v45  ;;  %v857_v47 = vsel %vm652_vm2, %v849_v43, -inf }
 0x293   : > { %v1575_v48 = vpop.f32.mrf.mxu1  ;;  %858 = vmax.xlane.f32.xlu0 %v857_v47  ;;  %v1580_v49 = vpop.f32.mrf.mxu0 }
 0x294   : > { %v850_v50 = vadd.f32 %v846_v46, %v636_v25 }
 0x295   : > { %v840_v51 = vpop.f32.mrf.mxu0 }
 0x296   : > { %v860_v52 = vsel %vm652_vm2, %v850_v50, -inf }
 0x297   : > { %861 = vmax.xlane.f32.xlu1 %v860_v52  ;;  %v1581_v53 = vpop.f32.mrf.mxu0 }
 0x2a8   : > { %948 = vrot.lane.b32.xlu1 %v1838_v13, %s1698_s1 }
 0x2a9   : > { %899 = vrot.lane.b32.xlu0 %v1830_v9, %s1698_s1  ;;  %v853_v54 = vpop.xlane.xlu1 %852 }
 0x2aa   : > { %v863_v55 = vsub.f32 %v847_v29, %v853_v54 }
 0x2ac   : > { %v867_v56 = vmul.f32 1.442695, %v863_v55 }
 0x2ae   : > { %1662 = vpow2.f32 %v867_v56 }
 0x2bb   : > { %v1663_v57 = vpop.eup %1662 }
 0x2bc   : > { %v875_v58 = vsel %vm652_vm2, %v1663_v57, 0.0 }
 0x2c8   : > { %876 = vadd.xlane.f32.xlu0 %v875_v58 }
 0x318   : > { %v856_v59 = vpop.xlane.xlu0 %855 }
 0x319   : > { %v864_v60 = vsub.f32 %v848_v36, %v856_v59 }
 0x31b   : > { %v869_v61 = vmul.f32 1.442695, %v864_v60 }
 0x31c   : > { %v859_v62 = vpop.xlane.xlu0 %858 }
 0x31d   : > { %1664 = vpow2.f32 %v869_v61  ;;  %v865_v63 = vsub.f32 %v849_v43, %v859_v62  ;;  %v1498_v61 = vld [vmem:[%s1994_s6] ss:$0 sm:$0xff] }
 0x31f   : > { %v871_v0 = vmul.f32 1.442695, %v865_v63 }
 0x320   : > { %v900_v2 = vpop.permute.xlu0 %899  ;;  %v862_v4 = vpop.xlane.xlu1 %861 }
 0x321   : > { %1666 = vpow2.f32 %v871_v0  ;;  %v906_v5 = vsel %vm904_vm3, %v900_v2, 0  ;;  %v866_v6 = vsub.f32 %v850_v50, %v862_v4 }
 0x322   : > { %1583 = vmatpush3.bf16.msra.mxu1 %v906_v5 }
 0x323   : > { %v873_v7 = vmul.f32 1.442695, %v866_v6  ;;  %1594 = vmatprep.subr.bf16.mxu1 %v1692_v1 }
 0x324   : > { %v949_v8 = vpop.permute.xlu1 %948 }
 0x325   : > { %1668 = vpow2.f32 %v873_v7  ;;  %v954_v9 = vsel %vm904_vm3, %v949_v8, 0 }
 0x326   : > { %1589 = vmatpush3.bf16.msra.mxu0 %v954_v9 }
 0x327   : > { %1600 = vmatprep.subr.bf16.mxu0 %v1692_v1 }
 0x32a   : > { %v1665_v10 = vpop.eup %1664 }
 0x32b   : > { %v878_v11 = vsel %vm652_vm2, %v1665_v10, 0.0 }
 0x32c   : > { %879 = vadd.xlane.f32.xlu1 %v878_v11 }
 0x32e   : > { %v1667_v13 = vpop.eup %1666 }
 0x32f   : > { %v881_v14 = vsel %vm652_vm2, %v1667_v13, 0.0 }
 0x330   : > { %882 = vadd.xlane.f32.xlu0 %v881_v14  ;;  %v1658_v14 = vld [vmem:[%s1999_s11 + $0x18] sm:$0xff]  }
 0x332   : > { %v1669_v16 = vpop.eup %1668 }
 0x333   : > { %v884_v17 = vsel %vm652_vm2, %v1669_v16, 0.0 }
 0x334   : > { %885 = vadd.xlane.f32.xlu1 %v884_v17 }
 0x345   : > { %996 = vrot.lane.b32.xlu1 %v1841_v15, %s1698_s1 }
 0x346   : > { %1044 = vrot.lane.b32.xlu0 %v1836_v12, %s1698_s1 }
 0x351   : > { %v877_v18 = vpop.xlane.xlu0 %876 }
 0x352   : > { %1670 = vrcp.f32 %v877_v18 }
 0x35f   : > { %v1671_v19 = vpop.eup %1670 }
 0x360   : > { %v891_v20 = vmul.f32 %v1671_v19, %v1663_v57 }
 0x362   : > { %v895_v21 = vpack.c.bf16 %v891_v20, %v891_v20 }
 0x364   : > { %1585 = vmatmul.mubr.msk.bf16.vlgmr.msra.gmra.mxu1 %vm652_vm2, %v895_v21  ;;  %v1502_v21 = vld [vmem:[%s1995_s7] ss:$0 sm:$0xff] }
 0x365   : > { %1596 = vmatprep.mubr.msk.bf16.mxu1 %vm1693_vm0, %v1692_v1 }
 0x3b5   : > { %v880_v22 = vpop.xlane.xlu1 %879 }
 0x3b6   : > { %1672 = vrcp.f32 %v880_v22 }
 0x3b9   : > { %v883_v23 = vpop.xlane.xlu0 %882 }
 0x3ba   : > { %1674 = vrcp.f32 %v883_v23  ;;  %v1503_v23 = vld [vmem:[%s1996_s8] ss:$0 sm:$0xff] }
 0x3bd   : > { %v886_v24 = vpop.xlane.xlu1 %885  ;;  %v1045_v27 = vpop.permute.xlu0 %1044 }
 0x3be   : > { %1676 = vrcp.f32 %v886_v24  ;;  %v1050_v30 = vsel %vm904_vm3, %v1045_v27, 0  ;;  %v1504_v27 = vld [vmem:[%s1998_s10] ss:$0 sm:$0xff] }
 0x3c1   : > { %v997_v15 = vpop.permute.xlu1 %996 }
 0x3c2   : > { %v1002_v25 = vsel %vm904_vm3, %v997_v15, 0 }
 0x3c3   : > { %v1673_v12 = vpop.eup %1672  ;;  %1595 = vmatpush3.bf16.msra.mxu1 %v1002_v25 }
 0x3c4   : > { %v892_v26 = vmul.f32 %v1673_v12, %v1665_v10  ;;  %1606 = vmatprep.subr.bf16.mxu1 %v1692_v1  ;;  %v1660_v12 = vld [vmem:[%s1999_s11 + $0x8] sm:$0xff]  }
 0x3c6   : > { %v896_v28 = vpack.c.bf16 %v892_v26, %v892_v26  ;;  %v1661_v26 = vld [vmem:[%s1999_s11] sm:$0xff]  }
 0x3c7   : > { %v1675_v29 = vpop.eup %1674 }
 0x3c8   : > { %1591 = vmatmul.mubr.msk.bf16.vlgmr.msra.gmra.mxu0 %vm652_vm2, %v896_v28  ;;  %v893_v31 = vmul.f32 %v1675_v29, %v1667_v13  ;;  %v1656_v13 = vld [vmem:[%s1997_s9 + $0x8] sm:$0xff]  }
 0x3c9   : > { %1601 = vmatpush3.bf16.msra.mxu0 %v1050_v30  ;;  %1602 = vmatprep.mubr.msk.bf16.mxu0 %vm1693_vm0, %v1692_v1 }
 0x3ca   : > { %v897_v32 = vpack.c.bf16 %v893_v31, %v893_v31  ;;  %1614 = vmatprep.subr.bf16.mxu0 %v1692_v1 }
 0x3cb   : > { %v1677_v33 = vpop.eup %1676 }
 0x3cc   : > { %1597 = vmatmul.mubr.msk.bf16.vlgmr.msra.gmra.mxu1 %vm652_vm2, %v897_v32  ;;  %v894_v34 = vmul.f32 %v1677_v33, %v1669_v16  ;;  %v1659_v16 = vld [vmem:[%s1999_s11 + $0x10] sm:$0xff]  }
 0x3cd   : > { %1610 = vmatprep.mubr.msk.bf16.mxu1 %vm1693_vm0, %v1692_v1  ;;  %1607 = vmatpush3.bf16.msra.mxu1 %v1654_v40 }
 0x3ce   : > { %v898_v35 = vpack.c.bf16 %v894_v34, %v894_v34  ;;  %1608 = vmatprep.subr.bf16.mxu1 %v1692_v1 }
 0x3d0   : > { %1603 = vmatmul.mubr.msk.bf16.vlgmr.msra.gmra.mxu0 %vm652_vm2, %v898_v35 }
 0x3d1   : > { %1618 = vmatprep.mubr.msk.bf16.mxu0 %vm1693_vm0, %v1692_v1  ;;  %1609 = vmatpush3.bf16.msra.mxu1 %v1655_v41 }
 0x3d2   : > { %1622 = vmatprep.subr.bf16.mxu1 %v1692_v1  ;;  %1615 = vmatpush3.bf16.msra.mxu0 %v1656_v13 }
 0x3d3   : > { %1616 = vmatprep.subr.bf16.mxu0 %v1692_v1 }
 0x424   : > { %v942_v36 = vpop.f32.mrf.mxu1 }
 0x426   : > { %v1586_v37 = vpop.f32.mrf.mxu1 }
 0x428   : > { %v945_v38 = vpop.f32.mrf.mxu1 }
 0x42a   : > { %v1587_v39 = vpop.f32.mrf.mxu1 }
 0x488   : > { %v990_v42 = vpop.f32.mrf.mxu0 }
 0x489   : > { %1093 = vrot.lane.b32.xlu1 %v990_v42, %s1699_s26 }
 0x48a   : > { %v1592_v43 = vpop.f32.mrf.mxu0 }
 0x48c   : > { %v993_v44 = vpop.f32.mrf.mxu0  ;;  %v1038_v45 = vpop.f32.mrf.mxu1 }
 0x48d   : > { %1097 = vrot.lane.b32.xlu0 %v1038_v45, %s1700_s27 }
 0x48e   : > { %v1593_v46 = vpop.f32.mrf.mxu0  ;;  %v1598_v47 = vpop.f32.mrf.mxu1 }
 0x490   : > { %v1041_v48 = vpop.f32.mrf.mxu1  ;;  %v1086_v49 = vpop.f32.mrf.mxu0 }
 0x491   : > { %1101 = vrot.lane.b32.xlu1 %v1086_v49, %s1701_s28 }
 0x492   : > { %v1599_v50 = vpop.f32.mrf.mxu1  ;;  %v1604_v51 = vpop.f32.mrf.mxu0 }
 0x493   : > { %v1514_v51 = vld [vmem:[%s2001_s13] ss:$0 sm:$0xff] }
 0x494   : > { %v1089_v52 = vpop.f32.mrf.mxu0 }
 0x496   : > { %v1605_v53 = vpop.f32.mrf.mxu0 }
 0x497   : > { %v1515_v53 = vld [vmem:[%s2002_s14] ss:$0 sm:$0xff] }
 0x4fb   : > { %v1094_v54 = vpop.permute.xlu1 %1093 }
 0x4fc   : > { %v1104_v56 = vsel %vm652_vm2, %v942_v36, %v1094_v54 }
 0x4ff   : > { %v1098_v55 = vpop.permute.xlu0 %1097 }
 0x500   : > { %v1106_v57 = vsel %vm1105_vm4, %v1104_v56, %v1098_v55 }
 0x503   : > { %v1102_v58 = vpop.permute.xlu1 %1101 }
 0x504   : > { %v1108_v59 = vsel %vm1107_vm5, %v1106_v57, %v1102_v58 }
 0x505   : > { %v1109_v60 = vpack.c.bf16 %v1108_v59, %v1108_v59 }
 0x507   : > { %1611 = vmatmul.mubr.msk.bf16.vlgmr.msra.gmra.mxu1 %vm584_vm1, %v1109_v60 }
 0x508   : > { %1630 = vmatprep.mubr.msk.bf16.mxu1 %vm1693_vm0, %v1692_v1  ;;  %1623 = vmatpush3.bf16.msra.mxu1 %v1658_v14 }
 0x509   : > { %1624 = vmatprep.subr.bf16.mxu1 %v1692_v1 }
 0x50c   : > { %1625 = vmatpush3.bf16.msra.mxu1 %v1659_v16 }
 0x50d   : > { %1626 = vmatprep.subr.bf16.mxu1 %v1692_v1 }
 0x510   : > { %1627 = vmatpush3.bf16.msra.mxu1 %v1660_v12 }
 0x511   : > { %1628 = vmatprep.subr.bf16.mxu1 %v1692_v1  ;;  %v1508_v1 = vld [vmem:[%s2000_s12] ss:$0 sm:$0xff] }
 0x514   : > { %1629 = vmatpush3.bf16.msra.mxu1 %v1661_v26 }
 0x5c7   : > { %v1165_v62 = vpop.f32.mrf.mxu1 }
 0x5c8   : > { %v1166_v63 = vadd.f32 %v1498_v61, %v1165_v62 }
 0x5c9   : > { %v1612_v0 = vpop.f32.mrf.mxu1 }
 0x5ca   : > { %v1171_v2 = vadd.f32 %v1166_v63, %v1820_v3  ;;  %v1657_v3 = vld [vmem:[%s1997_s9] sm:$0xff]  }
 0x5cb   : > { %v1168_v4 = vpop.f32.mrf.mxu1  ;;  %1617 = vmatpush3.bf16.msra.mxu0 %v1657_v3 }
 0x5cc   : > { %v1174_v5 = vsel %vm584_vm1, %v1171_v2, 0.0  ;;  %v1516_v4 = vld [vmem:[%s2003_s15] ss:$0 sm:$0xff] }
 0x5cd   : > { %1175 = vadd.xlane.f32.xlu0 %v1174_v5  ;;  %v1613_v6 = vpop.f32.mrf.mxu1 }
 0x5ce   : > { %v1517_v6 = vld [vmem:[%s2004_s16] ss:$0 sm:$0xff] }
 0x656   : > { %v1176_v7 = vpop.xlane.xlu0 %1175 }
 0x657   : > { %v1178_v8 = vmul.f32 0.03125, %v1176_v7 }
 0x659   : > { %v1179_v9 = vsub.f32 %v1171_v2, %v1178_v8 }
 0x65b   : > { %v1180_v10 = vmul.f32 %v1179_v9, %v1179_v9 }
 0x65d   : > { %v1181_v11 = vsel %vm584_vm1, %v1180_v10, 0.0 }
 0x65e   : > { %1182 = vadd.xlane.f32.xlu1 %v1181_v11 }
 0x6e7   : > { %v1183_v17 = vpop.xlane.xlu1 %1182 }
 0x6e8   : > { %v1184_v18 = vmul.f32 0.03125, %v1183_v17 }
 0x6ea   : > { %v1185_v19 = vadd.f32 1e-05, %v1184_v18 }
 0x6ec   : > { %1678 = vrsqrt.f32 %v1185_v19 }
 0x6f9   : > { %v1679_v20 = vpop.eup %1678 }
 0x6fa   : > { %v1187_v22 = vmul.f32 %v1679_v20, %v1179_v9 }
 0x6fc   : > { %v1194_v24 = vmul.f32 %v1502_v21, %v1187_v22 }
 0x6fe   : > { %v1201_v15 = vadd.f32 %v1503_v23, %v1194_v24 }
 0x700   : > { %v1216_v25 = vpack.c.bf16 %v1201_v15, %v1201_v15 }
 0x702   : > { %1619 = vmatmul.mubr.msk.bf16.vlgmr.msra.gmra.mxu0 %vm584_vm1, %v1216_v25 }
 0x7c2   : > { %v1272_v28 = vpop.f32.mrf.mxu0 }
 0x7c3   : > { %v1273_v29 = vadd.f32 %v1504_v27, %v1272_v28 }
 0x7c4   : > { %v1620_v30 = vpop.f32.mrf.mxu0 }
 0x7c5   : > { %v1278_v31 = vmax.f32 %v1273_v29, 0.0 }
 0x7c6   : > { %v1275_v32 = vpop.f32.mrf.mxu0 }
 0x7c7   : > { %v1279_v33 = vpack.c.bf16 %v1278_v31, %v1278_v31 }
 0x7c8   : > { %v1621_v34 = vpop.f32.mrf.mxu0 }
 0x7c9   : > { %1631 = vmatmul.mubr.msk.bf16.vlgmr.msra.gmra.mxu1 %vm1310_vm6, %v1279_v33 }
 0x889   : > { %v1348_v35 = vpop.f32.mrf.mxu1 }
 0x88a   : > { %v1349_v36 = vadd.f32 %v1508_v1, %v1348_v35 }
 0x88b   : > { %v1632_v37 = vpop.f32.mrf.mxu1 }
 0x88c   : > { %v1354_v38 = vadd.f32 %v1349_v36, %v1201_v15 }
 0x88d   : > { %v1351_v39 = vpop.f32.mrf.mxu1 }
 0x88e   : > { %v1357_v40 = vsel %vm584_vm1, %v1354_v38, 0.0 }
 0x88f   : > { %1358 = vadd.xlane.f32.xlu0 %v1357_v40  ;;  %v1633_v41 = vpop.f32.mrf.mxu1 }
 0x918   : > { %v1359_v42 = vpop.xlane.xlu0 %1358 }
 0x919   : > { %v1360_v43 = vmul.f32 0.03125, %v1359_v42 }
 0x91b   : > { %v1361_v44 = vsub.f32 %v1354_v38, %v1360_v43 }
 0x91d   : > { %v1362_v45 = vmul.f32 %v1361_v44, %v1361_v44 }
 0x91f   : > { %v1363_v46 = vsel %vm584_vm1, %v1362_v45, 0.0 }
 0x920   : > { %1364 = vadd.xlane.f32.xlu0 %v1363_v46 }
 0x9a9   : > { %v1365_v47 = vpop.xlane.xlu0 %1364 }
 0x9aa   : > { %v1366_v48 = vmul.f32 0.03125, %v1365_v47 }
 0x9ac   : > { %v1367_v49 = vadd.f32 1e-05, %v1366_v48 }
 0x9ae   : > { %1680 = vrsqrt.f32 %v1367_v49 }
 0x9bb   : > { %v1681_v50 = vpop.eup %1680 }
 0x9bc   : > { %v1369_v52 = vmul.f32 %v1681_v50, %v1361_v44 }
 0x9be   : > { %v1376_v54 = vmul.f32 %v1514_v51, %v1369_v52 }
 0x9c0   : > { %v1383_v55 = vadd.f32 %v1515_v53, %v1376_v54 }
 0x9c2   : > { %v1386_v56 = vsel %vm584_vm1, %v1383_v55, 0.0 }
 0x9c3   : > { %1387 = vadd.xlane.f32.xlu1 %v1386_v56 }
 0xa4c   : > { %v1388_v57 = vpop.xlane.xlu1 %1387 }
 0xa4d   : > { %v1389_v58 = vmul.f32 0.03125, %v1388_v57 }
 0xa4f   : > { %v1390_v59 = vsub.f32 %v1383_v55, %v1389_v58 }
 0xa51   : > { %v1391_v60 = vmul.f32 %v1390_v59, %v1390_v59 }
 0xa53   : > { %v1392_v61 = vsel %vm584_vm1, %v1391_v60, 0.0 }
 0xa54   : > { %1393 = vadd.xlane.f32.xlu0 %v1392_v61 }
 0xadd   : > { %v1394_v62 = vpop.xlane.xlu0 %1393 }
 0xade   : > { %v1395_v63 = vmul.f32 0.03125, %v1394_v62 }
 0xae0   : > { %v1396_v0 = vadd.f32 1e-05, %v1395_v63 }
 0xae2   : > { %1682 = vrsqrt.f32 %v1396_v0 }
 0xaef   : > { %v1683_v2 = vpop.eup %1682 }
 0xaf0   : > { %v1398_v5 = vmul.f32 %v1683_v2, %v1390_v59 }
 0xaf2   : > { %v1405_v7 = vmul.f32 %v1516_v4, %v1398_v5 }
 0xaf4   : > { %v1412_v8 = vadd.f32 %v1517_v6, %v1405_v7 }
 0xaf6   : > { %v1413_v9 = vpack.c.bf16 %v1412_v8, %v1412_v8 }
 0xaf8   : > { %1415 = vst.msk [vmem:[%s557_s21] sm:$0xf] %vm1414_vm7, %v1413_v9 }
 0xaf9 PF: > { %s27_s24 = sadd.s32 1, %s1690_s24  }
 0xafa   : > { %p24_p4 = scmp.ge.s32.totalorder %s27_s24, 4  }
 0xafc   :  { %26 = sbr.rel (!%p24_p4) target bundleno = 3 (0x3), region = 121 }

// kernel: seq2seq_transformer_forward.7
= control target key start
LH: loop header
LB: loop body
LE: loop exit
PB: predicated region body
PF: predicated region fallthrough
CT: control target
= control target key end

     0   :  { %s2911_s29 = smov 0   ;;  %s3261_s0 = inlined_call_operand.vmem [shape: f32[2,8,32], index: 0, kind: input, shape index: {}]   ;;  %s3262_s1 = inlined_call_operand.vmem [shape: bf16[2,8,32], index: 1, kind: input, shape index: {}]   ;;  %s3263_s2 = inlined_call_operand.vmem [shape: f32[8,8], index: 2, kind: input, shape index: {}]   ;;  %s3264_s3 = inlined_call_operand.vmem [shape: f32[2,1,8], index: 3, kind: input, shape index: {}]   ;;  %s3265_s4 = inlined_call_operand.vmem [shape: f32[2,1,8], index: 4, kind: input, shape index: {}]   ;;  %s3266_s5 = inlined_call_operand.vmem [shape: bf16[32,96], index: 5, kind: input, shape index: {}]   ;;  %s3267_s6 = inlined_call_operand.vmem [shape: f32[1,96], index: 6, kind: input, shape index: {}]   ;;  %s3268_s7 = inlined_call_operand.vmem [shape: bf16[32,32], index: 7, kind: input, shape index: {}]   ;;  %s3269_s8 = inlined_call_operand.vmem [shape: f32[1,32], index: 8, kind: input, shape index: {}]   ;;  %s3270_s9 = inlined_call_operand.vmem [shape: f32[1,32], index: 9, kind: input, shape index: {}]   ;;  %s3271_s10 = inlined_call_operand.vmem [shape: f32[1,32], index: 10, kind: input, shape index: {}]   ;;  %s3272_s11 = inlined_call_operand.vmem [shape: bf16[32,32], index: 11, kind: input, shape index: {}]   ;;  %s3273_s12 = inlined_call_operand.vmem [shape: f32[1,32], index: 12, kind: input, shape index: {}]   ;;  %s3274_s13 = inlined_call_operand.vmem [shape: bf16[32,64], index: 13, kind: input, shape index: {}]   ;;  %s3275_s14 = inlined_call_operand.vmem [shape: f32[1,64], index: 14, kind: input, shape index: {}]   ;;  %s3276_s15 = inlined_call_operand.vmem [shape: bf16[32,32], index: 15, kind: input, shape index: {}]   ;;  %s3277_s16 = inlined_call_operand.vmem [shape: f32[1,32], index: 16, kind: input, shape index: {}]   ;;  %s3278_s17 = inlined_call_operand.vmem [shape: f32[1,32], index: 17, kind: input, shape index: {}]   ;;  %s3279_s18 = inlined_call_operand.vmem [shape: f32[1,32], index: 18, kind: input, shape index: {}]   ;;  %s3280_s19 = inlined_call_operand.vmem [shape: bf16[32,64], index: 19, kind: input, shape index: {}]   ;;  %s3281_s20 = inlined_call_operand.vmem [shape: f32[1,64], index: 20, kind: input, shape index: {}]   ;;  %s3282_s21 = inlined_call_operand.vmem [shape: bf16[64,32], index: 21, kind: input, shape index: {}]   ;;  %s3283_s22 = inlined_call_operand.vmem [shape: f32[1,32], index: 22, kind: input, shape index: {}]   ;;  %s3284_s23 = inlined_call_operand.vmem [shape: f32[1,32], index: 23, kind: input, shape index: {}]   ;;  %s3285_s24 = inlined_call_operand.vmem [shape: f32[1,32], index: 24, kind: input, shape index: {}]   ;;  %s3286_s25 = inlined_call_operand.vmem [shape: f32[2,8,32], index: 25, kind: output, shape index: {}]  }
   0x1   :  { %3297 = sst [smem:[#allocation2_spill]] %s3261_s0 }
   0x2   :  { %3298 = sst [smem:[#allocation3_spill]] %s3262_s1 }
   0x3   :  { %3299 = sst [smem:[#allocation4_spill]] %s3263_s2 }
   0x4   :  { %3300 = sst [smem:[#allocation5_spill]] %s3264_s3 }
   0x5   :  { %3301 = sst [smem:[#allocation6_spill]] %s3265_s4 }
   0x6   :  { %3302 = sst [smem:[#allocation7_spill]] %s3266_s5 }
   0x7   :  { %3303 = sst [smem:[#allocation8_spill]] %s3267_s6 }
   0x8   :  { %3304 = sst [smem:[#allocation9_spill]] %s3268_s7 }
   0x9   :  { %3305 = sst [smem:[#allocation10_spill]] %s3269_s8 }
   0xa   :  { %3306 = sst [smem:[#allocation11_spill]] %s3270_s9 }
   0xb LB: > { %s2416_s2 = sadd.s32 4294967295, %s2769_s29   ;;  %p2420_p0 = scmp.ge.s32.totalorder %s2769_s29, 1  ;;  %s2769_s29 = sphi %s2911_s29, %s35_s29  }
   0xc   : > { %p711_p1 = scmp.lt.s32.totalorder %s2769_s29, 3 }
   0xe   : > { %p712_p2 = pnand %p2420_p0, %p711_p1 }
   0xf   : > { %s3307_s7 = sld [smem:[#allocation7_spill]] (!%p712_p2)  ;;  %p787_p3 = scmp.lt.s32.totalorder (!%p712_p2), %s2416_s2, 1 }
  0x10   : > { %715 = sbr.rel (%p712_p2) target bundleno = 4156 (0x103c), region = 120  ;;  %s3308_s4 = sld [smem:[#allocation2_spill]] (!%p712_p2) }
  0x11   : > { %s3309_s0 = sld [smem:[#allocation8_spill]] (!%p712_p2)  ;;  %s3295_s6 = smov (!%p712_p2), 104  }
  0x12   : > { %s2774_s30 = smov (!%p712_p2), 120   ;;  %s3293_s3 = smov (!%p712_p2), 96  }
  0x13   : > { %s2776_s26 = smov (!%p712_p2), 112   ;;  %s2777_s8 = smov (!%p712_p2), 64  }
  0x14   : > { %s3290_s27 = smov (!%p712_p2), 24   ;;  %s3313_s5 = sld [smem:[#allocation10_spill]] (!%p712_p2) }
  0x15   : > { %v2709_v0 = vld [vmem:[%s3307_s7 + $0x8] sm:$0xff]   ;;  %v2771_v1 = vmov 0.0   ;;  %v2710_v2 = vld [vmem:[%s3307_s7] sm:$0xff]   ;;  %vm2772_vm0 = vmmov 0   ;;  %s3324_s2 = smov (!%p787_p3, %s2416_s2), 1  ;;  %vm832_vm1 = vcmask 261120  }
  0x16   : > { %2535 = vmatprep.subr.bf16.mxu1 %v2771_v1  ;;  %2549 = vmatprep.subr.bf16.mxu0 %v2771_v1  ;;  %s3289_s1 = sshll.u32 %s3324_s2, 3  ;;  %vm900_vm2 = vcmask 64512   ;;  %vm1152_vm3 = vcmask 1043456   ;;  %vm1353_vm4 = vcmask 130048   ;;  %vm1355_vm5 = vcmask 195584  }
  0x17   : > { %2536 = vmatpush3.bf16.msra.mxu1 %v2709_v0  ;;  %2539 = vmatprep.mubr.msk.bf16.mxu1 %vm2772_vm0, %v2771_v1  ;;  %s790_s28 = scalar_lea.vmem %s3308_s4, %s3289_s1  ;;  %v2424_v5 = vld [vmem:[%s3309_s0] ss:$0 sm:$0xff]  ;;  %s3310_s4 = sld [smem:[#allocation5_spill]]  ;;  %vm2258_vm6 = vcmask 523264  }
  0x18   : > { %2537 = vmatprep.subr.bf16.mxu1 %v2771_v1  ;;  %2551 = vmatprep.mubr.msk.bf16.mxu0 %vm2772_vm0, %v2771_v1  ;;  %v2941_v3 = vld [vmem:[%s790_s28] sm:$0xff]  ;;  %s3311_s0 = sld [smem:[#allocation4_spill]]  ;;  %s3316_s1 = smov 104  }
  0x19   : > { %v808_v4 = vpack.c.bf16 %v2941_v3, %v2941_v3 }
  0x1b   : > { %2538 = vmatpush3.bf16.msra.mxu1 %v2710_v2 }
  0x1c   : > { %2543 = vmatprep.subr.bf16.mxu1 %v2771_v1 }
  0x1d   : > { %s797_s28 = scalar_lea.vmem %s3310_s4, %s3324_s2 }
  0x1e   : > { %2540 = vmatmul.mubr.msk.bf16.vlgmr.msra.gmra.mxu1 %vm832_vm1, %v808_v4  ;;  %v876_v23 = vld [vmem:[%s3311_s0] sm:$0xff]  ;;  %s3292_s0 = smov 8  }
  0x1f   : > { %2545 = vmatprep.mubr.msk.bf16.mxu1 %vm2772_vm0, %v2771_v1  ;;  %v2428_v24 = vld [vmem:[%s797_s28] ss:$0 sm:$0xff]  ;;  %s3312_s28 = sld [smem:[#allocation9_spill]] }
  0x20   : > { %v884_v25 = vadd.f32 %v2428_v24, %v876_v23 }
  0xde   : > { %v870_v6 = vpop.f32.mrf.mxu1 }
  0xdf   : > { %v871_v7 = vadd.f32 %v2424_v5, %v870_v6 }
  0xe0   : > { %v2541_v8 = vpop.f32.mrf.mxu1 }
  0xe1   : > { %v2951_v9 = vpack.c.bf16 %v871_v7, %v871_v7 }
  0xe2   : > { %v873_v10 = vpop.f32.mrf.mxu1 }
  0xe3   : > { %896 = vrot.lane.b32.xlu1 %v2951_v9, %s3295_s6  ;;  %892 = vrot.lane.b32.xlu0 %v2951_v9, %s2774_s30 }
  0xe4   : > { %v2542_v11 = vpop.f32.mrf.mxu1 }
  0xe7   : > { %898 = vrot.lane.b32.xlu1 %v2951_v9, %s3293_s3  ;;  %894 = vrot.lane.b32.xlu0 %v2951_v9, %s2776_s26 }
 0x155   : > { %v2961_v12 = vpop.permute.xlu1 %896  ;;  %v2963_v13 = vpop.permute.xlu0 %892 }
 0x156   : > { %947 = vrot.lane.b32.xlu0 %v2963_v13, %s3293_s3 }
 0x159   : > { %v899_v14 = vpop.permute.xlu1 %898  ;;  %v2967_v15 = vpop.permute.xlu0 %894 }
 0x15a   : > { %v905_v16 = vsel %vm900_vm2, %v899_v14, 0  ;;  %1043 = vrot.lane.b32.xlu0 %v2961_v12, %s3293_s3  ;;  %995 = vrot.lane.b32.xlu1 %v2967_v15, %s3293_s3  ;;  %s3314_s3 = sld [smem:[#allocation3_spill]] }
 0x15b   : > { %2544 = vmatpush3.bf16.xpose.msra.mxu1 %v905_v16 }
 0x15c   : > { %2555 = vmatprep.subr.bf16.mxu1 %v2771_v1 }
 0x162   : > { %2546 = vmatmul.mubr.msk.bf16.vlgmr.msra.gmra.mxu1 %vm900_vm2, %v2951_v9 }
 0x163   : > { %2557 = vmatprep.mubr.msk.bf16.mxu1 %vm2772_vm0, %v2771_v1 }
 0x1c8   : > { %v948_v17 = vpop.permute.xlu0 %947 }
 0x1c9   : > { %v953_v18 = vsel %vm900_vm2, %v948_v17, 0 }
 0x1ca   : > { %2550 = vmatpush3.bf16.xpose.msra.mxu0 %v953_v18 }
 0x1cb   : > { %2561 = vmatprep.subr.bf16.mxu0 %v2771_v1 }
 0x1cc   : > { %v996_v19 = vpop.permute.xlu1 %995  ;;  %v1044_v21 = vpop.permute.xlu0 %1043 }
 0x1cd   : > { %v1001_v20 = vsel %vm900_vm2, %v996_v19, 0  ;;  %v1049_v22 = vsel %vm900_vm2, %v1044_v21, 0 }
 0x1ce   : > { %2556 = vmatpush3.bf16.xpose.msra.mxu1 %v1001_v20 }
 0x1cf   : > { %2567 = vmatprep.subr.bf16.mxu1 %v2771_v1 }
 0x1d1   : > { %2552 = vmatmul.mubr.msk.bf16.vlgmr.msra.gmra.mxu0 %vm900_vm2, %v2963_v13 }
 0x1d2   : > { %2562 = vmatpush3.bf16.xpose.msra.mxu0 %v1049_v22  ;;  %2563 = vmatprep.mubr.msk.bf16.mxu0 %vm2772_vm0, %v2771_v1 }
 0x1d3   : > { %2573 = vmatprep.subr.bf16.mxu0 %v2771_v1 }
 0x1d5   : > { %2558 = vmatmul.mubr.msk.bf16.vlgmr.msra.gmra.mxu1 %vm900_vm2, %v2967_v15 }
 0x1d6   : > { %2569 = vmatprep.mubr.msk.bf16.mxu1 %vm2772_vm0, %v2771_v1 }
 0x1d9   : > { %2564 = vmatmul.mubr.msk.bf16.vlgmr.msra.gmra.mxu0 %vm900_vm2, %v2961_v12 }
 0x1da   : > { %2575 = vmatprep.mubr.msk.bf16.mxu0 %vm2772_vm0, %v2771_v1 }
 0x222   : > { %v941_v26 = vpop.f32.mrf.mxu1 }
 0x223   : > { %v1091_v27 = vmul.f32 0.35355338, %v941_v26 }
 0x224   : > { %v2547_v28 = vpop.f32.mrf.mxu1 }
 0x225   : > { %v1095_v29 = vadd.f32 %v1091_v27, %v884_v25 }
 0x226   : > { %v944_v30 = vpop.f32.mrf.mxu1 }
 0x227   : > { %v1099_v31 = vsel %vm900_vm2, %v1095_v29, -inf }
 0x228   : > { %1100 = vmax.xlane.f32.xlu1 %v1099_v31  ;;  %v2548_v32 = vpop.f32.mrf.mxu1 }
 0x291   : > { %v989_v33 = vpop.f32.mrf.mxu0 }
 0x292   : > { %v1092_v34 = vmul.f32 0.35355338, %v989_v33 }
 0x293   : > { %v2553_v35 = vpop.f32.mrf.mxu0 }
 0x294   : > { %v1096_v36 = vadd.f32 %v1092_v34, %v884_v25 }
 0x295   : > { %v992_v37 = vpop.f32.mrf.mxu0  ;;  %v1037_v38 = vpop.f32.mrf.mxu1 }
 0x296   : > { %v1093_v39 = vmul.f32 0.35355338, %v1037_v38  ;;  %v1102_v40 = vsel %vm900_vm2, %v1096_v36, -inf }
 0x297   : > { %1103 = vmax.xlane.f32.xlu0 %v1102_v40  ;;  %v2554_v41 = vpop.f32.mrf.mxu0  ;;  %v2559_v42 = vpop.f32.mrf.mxu1  ;;  %v2711_v40 = vld [vmem:[%s3312_s28 + $0x8] sm:$0xff]  }
 0x298   : > { %v1097_v43 = vadd.f32 %v1093_v39, %v884_v25  ;;  %v2712_v41 = vld [vmem:[%s3312_s28] sm:$0xff]  }
 0x299   : > { %v1040_v44 = vpop.f32.mrf.mxu1  ;;  %v1085_v45 = vpop.f32.mrf.mxu0 }
 0x29a   : > { %v1094_v46 = vmul.f32 0.35355338, %v1085_v45  ;;  %v1105_v47 = vsel %vm900_vm2, %v1097_v43, -inf }
 0x29b   : > { %v2565_v48 = vpop.f32.mrf.mxu0  ;;  %1106 = vmax.xlane.f32.xlu0 %v1105_v47  ;;  %v2560_v49 = vpop.f32.mrf.mxu1 }
 0x29c   : > { %v1098_v50 = vadd.f32 %v1094_v46, %v884_v25 }
 0x29d   : > { %v1088_v51 = vpop.f32.mrf.mxu0 }
 0x29e   : > { %v1108_v52 = vsel %vm900_vm2, %v1098_v50, -inf }
 0x29f   : > { %v2566_v53 = vpop.f32.mrf.mxu0  ;;  %1109 = vmax.xlane.f32.xlu1 %v1108_v52 }
 0x2b0   : > { %1196 = vrot.lane.b32.xlu1 %v2963_v13, %s2777_s8 }
 0x2b1   : > { %1147 = vrot.lane.b32.xlu0 %v2951_v9, %s2777_s8  ;;  %v1101_v54 = vpop.xlane.xlu1 %1100 }
 0x2b2   : > { %v1111_v55 = vsub.f32 %v1095_v29, %v1101_v54 }
 0x2b4   : > { %v1115_v56 = vmul.f32 1.442695, %v1111_v55 }
 0x2b6   : > { %2725 = vpow2.f32 %v1115_v56 }
 0x2c3   : > { %v2726_v57 = vpop.eup %2725 }
 0x2c4   : > { %v1123_v58 = vsel %vm900_vm2, %v2726_v57, 0.0 }
 0x2d0   : > { %1124 = vadd.xlane.f32.xlu0 %v1123_v58 }
 0x320   : > { %v1104_v59 = vpop.xlane.xlu0 %1103 }
 0x321   : > { %v1112_v60 = vsub.f32 %v1096_v36, %v1104_v59 }
 0x323   : > { %v1117_v61 = vmul.f32 1.442695, %v1112_v60 }
 0x324   : > { %v1107_v62 = vpop.xlane.xlu0 %1106 }
 0x325   : > { %2727 = vpow2.f32 %v1117_v61  ;;  %v1113_v63 = vsub.f32 %v1097_v43, %v1107_v62  ;;  %v2437_v61 = vld [vmem:[%s3313_s5] ss:$0 sm:$0xff]  ;;  %s3319_s5 = smov 8  }
 0x327   : > { %v1119_v0 = vmul.f32 1.442695, %v1113_v63 }
 0x328   : > { %v1110_v2 = vpop.xlane.xlu1 %1109  ;;  %v1148_v4 = vpop.permute.xlu0 %1147 }
 0x329   : > { %2729 = vpow2.f32 %v1119_v0  ;;  %v1114_v5 = vsub.f32 %v1098_v50, %v1110_v2  ;;  %v1154_v6 = vsel %vm1152_vm3, %v1148_v4, 0 }
 0x32a   : > { %2568 = vmatpush3.bf16.msra.mxu1 %v1154_v6 }
 0x32b   : > { %v1121_v7 = vmul.f32 1.442695, %v1114_v5  ;;  %2579 = vmatprep.subr.bf16.mxu1 %v2771_v1 }
 0x32c   : > { %v1197_v8 = vpop.permute.xlu1 %1196 }
 0x32d   : > { %2731 = vpow2.f32 %v1121_v7  ;;  %v1202_v9 = vsel %vm1152_vm3, %v1197_v8, 0 }
 0x32e   : > { %2574 = vmatpush3.bf16.msra.mxu0 %v1202_v9 }
 0x32f   : > { %2585 = vmatprep.subr.bf16.mxu0 %v2771_v1 }
 0x332   : > { %v2728_v10 = vpop.eup %2727 }
 0x333   : > { %v1126_v11 = vsel %vm900_vm2, %v2728_v10, 0.0 }
 0x334   : > { %1127 = vadd.xlane.f32.xlu1 %v1126_v11 }
 0x336   : > { %v2730_v13 = vpop.eup %2729 }
 0x337   : > { %v1129_v14 = vsel %vm900_vm2, %v2730_v13, 0.0 }
 0x338   : > { %1130 = vadd.xlane.f32.xlu0 %v1129_v14 }
 0x33a   : > { %v2732_v16 = vpop.eup %2731 }
 0x33b   : > { %v1132_v17 = vsel %vm900_vm2, %v2732_v16, 0.0 }
 0x33c   : > { %1133 = vadd.xlane.f32.xlu1 %v1132_v17  ;;  %v2716_v17 = vld [vmem:[%s3272_s11] sm:$0xff]  }
 0x34d   : > { %1244 = vrot.lane.b32.xlu1 %v2967_v15, %s2777_s8 }
 0x34e   : > { %1292 = vrot.lane.b32.xlu0 %v2961_v12, %s2777_s8  ;;  %s3291_s8 = smov 16  }
 0x359   : > { %v1125_v18 = vpop.xlane.xlu0 %1124 }
 0x35a   : > { %2733 = vrcp.f32 %v1125_v18 }
 0x367   : > { %v2734_v19 = vpop.eup %2733 }
 0x368   : > { %v1139_v20 = vmul.f32 %v2734_v19, %v2726_v57 }
 0x36a   : > { %v1143_v21 = vpack.c.bf16 %v1139_v20, %v1139_v20 }
 0x36c   : > { %2570 = vmatmul.mubr.msk.bf16.vlgmr.msra.gmra.mxu1 %vm900_vm2, %v1143_v21 }
 0x36d   : > { %2581 = vmatprep.mubr.msk.bf16.mxu1 %vm2772_vm0, %v2771_v1 }
 0x3bd   : > { %v1128_v22 = vpop.xlane.xlu1 %1127 }
 0x3be   : > { %2735 = vrcp.f32 %v1128_v22 }
 0x3c1   : > { %v1131_v23 = vpop.xlane.xlu0 %1130 }
 0x3c2   : > { %2737 = vrcp.f32 %v1131_v23 }
 0x3c5   : > { %v1134_v24 = vpop.xlane.xlu1 %1133  ;;  %v1293_v27 = vpop.permute.xlu0 %1292 }
 0x3c6   : > { %2739 = vrcp.f32 %v1134_v24  ;;  %v1298_v30 = vsel %vm1152_vm3, %v1293_v27, 0  ;;  %v2442_v24 = vld [vmem:[%s3271_s10] ss:$0 sm:$0xff] }
 0x3c9   : > { %v1245_v15 = vpop.permute.xlu1 %1244 }
 0x3ca   : > { %v1250_v25 = vsel %vm1152_vm3, %v1245_v15, 0 }
 0x3cb   : > { %v2736_v12 = vpop.eup %2735  ;;  %2580 = vmatpush3.bf16.msra.mxu1 %v1250_v25 }
 0x3cc   : > { %v1140_v26 = vmul.f32 %v2736_v12, %v2728_v10  ;;  %2591 = vmatprep.subr.bf16.mxu1 %v2771_v1 }
 0x3ce   : > { %v1144_v28 = vpack.c.bf16 %v1140_v26, %v1140_v26  ;;  %v2447_v26 = vld [vmem:[%s3275_s14] ss:$0 sm:$0xff] }
 0x3cf   : > { %v2738_v29 = vpop.eup %2737 }
 0x3d0   : > { %2576 = vmatmul.mubr.msk.bf16.vlgmr.msra.gmra.mxu0 %vm900_vm2, %v1144_v28  ;;  %v1141_v31 = vmul.f32 %v2738_v29, %v2730_v13  ;;  %v2713_v13 = vld [vmem:[%s3274_s13 + $0x8] sm:$0xff]  }
 0x3d1   : > { %2586 = vmatpush3.bf16.msra.mxu0 %v1298_v30  ;;  %2587 = vmatprep.mubr.msk.bf16.mxu0 %vm2772_vm0, %v2771_v1 }
 0x3d2   : > { %v1145_v32 = vpack.c.bf16 %v1141_v31, %v1141_v31  ;;  %2599 = vmatprep.subr.bf16.mxu0 %v2771_v1 }
 0x3d3   : > { %v2740_v33 = vpop.eup %2739 }
 0x3d4   : > { %2582 = vmatmul.mubr.msk.bf16.vlgmr.msra.gmra.mxu1 %vm900_vm2, %v1145_v32  ;;  %v1142_v34 = vmul.f32 %v2740_v33, %v2732_v16  ;;  %v2715_v16 = vld [vmem:[%s3272_s11 + $0x8] sm:$0xff]  }
 0x3d5   : > { %2595 = vmatprep.mubr.msk.bf16.mxu1 %vm2772_vm0, %v2771_v1  ;;  %2592 = vmatpush3.bf16.msra.mxu1 %v2711_v40 }
 0x3d6   : > { %v1146_v35 = vpack.c.bf16 %v1142_v34, %v1142_v34  ;;  %2593 = vmatprep.subr.bf16.mxu1 %v2771_v1 }
 0x3d8   : > { %2588 = vmatmul.mubr.msk.bf16.vlgmr.msra.gmra.mxu0 %vm900_vm2, %v1146_v35 }
 0x3d9   : > { %2603 = vmatprep.mubr.msk.bf16.mxu0 %vm2772_vm0, %v2771_v1  ;;  %2594 = vmatpush3.bf16.msra.mxu1 %v2712_v41 }
 0x3da   : > { %2607 = vmatprep.subr.bf16.mxu1 %v2771_v1  ;;  %2600 = vmatpush3.bf16.msra.mxu0 %v2715_v16 }
 0x3db   : > { %2601 = vmatprep.subr.bf16.mxu0 %v2771_v1 }
 0x3de   : > { %2602 = vmatpush3.bf16.msra.mxu0 %v2716_v17 }
 0x3df   : > { %2615 = vmatprep.subr.bf16.mxu0 %v2771_v1 }
 0x42c   : > { %v1190_v36 = vpop.f32.mrf.mxu1 }
 0x42e   : > { %v2571_v37 = vpop.f32.mrf.mxu1 }
 0x430   : > { %v1193_v38 = vpop.f32.mrf.mxu1 }
 0x432   : > { %v2572_v39 = vpop.f32.mrf.mxu1 }
 0x490   : > { %v1238_v42 = vpop.f32.mrf.mxu0 }
 0x491   : > { %1341 = vrot.lane.b32.xlu1 %v1238_v42, %s3292_s0  ;;  %s3315_s0 = sld [smem:[#allocation11_spill]] }
 0x492   : > { %v2577_v43 = vpop.f32.mrf.mxu0 }
 0x494   : > { %v1241_v44 = vpop.f32.mrf.mxu0  ;;  %v1286_v45 = vpop.f32.mrf.mxu1 }
 0x495   : > { %1345 = vrot.lane.b32.xlu0 %v1286_v45, %s3291_s8  ;;  %s3318_s8 = smov 96  }
 0x496   : > { %v2578_v46 = vpop.f32.mrf.mxu0  ;;  %v2583_v47 = vpop.f32.mrf.mxu1 }
 0x497   : > { %v2441_v22 = vld [vmem:[%s3315_s0] ss:$0 sm:$0xff] }
 0x498   : > { %v1289_v48 = vpop.f32.mrf.mxu1  ;;  %v1334_v49 = vpop.f32.mrf.mxu0 }
 0x499   : > { %1349 = vrot.lane.b32.xlu1 %v1334_v49, %s3290_s27  ;;  %s2422_s27 = sshll.u32 %s3324_s2, 2 }
 0x49a   : > { %v2584_v50 = vpop.f32.mrf.mxu1  ;;  %v2589_v51 = vpop.f32.mrf.mxu0  ;;  %s794_s6 = scalar_lea.vmem %s3314_s3, %s2422_s27  ;;  %s3317_s3 = sld [smem:[#allocation6_spill]] }
 0x49b   : > { %v807_v14 = vld [vmem:[%s794_s6] sm:$0xf]  ;;  %s3320_s6 = smov 16   ;;  %s3322_s27 = sshll.u32 %s3324_s2, 3 }
 0x49c   : > { %v1337_v52 = vpop.f32.mrf.mxu0 }
 0x49e   : > { %v2590_v53 = vpop.f32.mrf.mxu0 }
 0x4a0   : > { %s800_s0 = scalar_lea.vmem %s3317_s3, %s3324_s2 }
 0x4a1   : > { %v2455_v51 = vld [vmem:[%s800_s0] ss:$0 sm:$0xff] }
 0x503   : > { %v1342_v54 = vpop.permute.xlu1 %1341 }
 0x504   : > { %v1352_v56 = vsel %vm900_vm2, %v1190_v36, %v1342_v54  ;;  %v2443_v36 = vld [vmem:[%s3273_s12] ss:$0 sm:$0xff] }
 0x507   : > { %v1346_v55 = vpop.permute.xlu0 %1345 }
 0x508   : > { %v1354_v57 = vsel %vm1353_vm4, %v1352_v56, %v1346_v55 }
 0x50b   : > { %v1350_v58 = vpop.permute.xlu1 %1349 }
 0x50c   : > { %v1356_v59 = vsel %vm1355_vm5, %v1354_v57, %v1350_v58 }
 0x50d   : > { %v1357_v60 = vpack.c.bf16 %v1356_v59, %v1356_v59 }
 0x50f   : > { %2596 = vmatmul.mubr.msk.bf16.vlgmr.msra.gmra.mxu1 %vm832_vm1, %v1357_v60 }
 0x510   : > { %2611 = vmatprep.mubr.msk.bf16.mxu1 %vm2772_vm0, %v2771_v1  ;;  %2608 = vmatpush3.bf16.msra.mxu1 %v2713_v13 }
 0x511   : > { %2609 = vmatprep.subr.bf16.mxu1 %v2771_v1 }
 0x5cf   : > { %v1413_v62 = vpop.f32.mrf.mxu1 }
 0x5d0   : > { %v1414_v63 = vadd.f32 %v2437_v61, %v1413_v62 }
 0x5d1   : > { %v2597_v0 = vpop.f32.mrf.mxu1 }
 0x5d2   : > { %v1419_v2 = vadd.f32 %v1414_v63, %v2941_v3  ;;  %v2714_v3 = vld [vmem:[%s3274_s13] sm:$0xff]  }
 0x5d3   : > { %v1416_v4 = vpop.f32.mrf.mxu1  ;;  %2610 = vmatpush3.bf16.msra.mxu1 %v2714_v3 }
 0x5d4   : > { %v1422_v5 = vsel %vm832_vm1, %v1419_v2, 0.0  ;;  %2621 = vmatprep.subr.bf16.mxu1 %v2771_v1 }
 0x5d5   : > { %1423 = vadd.xlane.f32.xlu0 %v1422_v5  ;;  %v2598_v6 = vpop.f32.mrf.mxu1 }
 0x5d6   : > { %2612 = vmatmul.mubr.msk.bf16.vlgmr.msra.gmra.mxu1 %vm832_vm1, %v807_v14 }
 0x5d7   : > { %2623 = vmatprep.mubr.msk.bf16.mxu1 %vm2772_vm0, %v2771_v1 }
 0x65e   : > { %v1424_v7 = vpop.xlane.xlu0 %1423 }
 0x65f   : > { %v1426_v8 = vmul.f32 0.03125, %v1424_v7 }
 0x661   : > { %v1427_v9 = vsub.f32 %v1419_v2, %v1426_v8 }
 0x663   : > { %v1428_v10 = vmul.f32 %v1427_v9, %v1427_v9 }
 0x665   : > { %v1429_v11 = vsel %vm832_vm1, %v1428_v10, 0.0 }
 0x666   : > { %1430 = vadd.xlane.f32.xlu1 %v1429_v11 }
 0x696   : > { %v1577_v27 = vpop.f32.mrf.mxu1 }
 0x697   : > { %v1578_v28 = vadd.f32 %v2447_v26, %v1577_v27 }
 0x698   : > { %v2613_v29 = vpop.f32.mrf.mxu1 }
 0x699   : > { %v3102_v30 = vpack.c.bf16 %v1578_v28, %v1578_v28 }
 0x69a   : > { %v1580_v31 = vpop.f32.mrf.mxu1 }
 0x69b   : > { %1601 = vrot.lane.b32.xlu1 %v3102_v30, %s2776_s26  ;;  %1599 = vrot.lane.b32.xlu0 %v3102_v30, %s2774_s30  ;;  %v1609_v32 = vsel %vm900_vm2, %v3102_v30, 0 }
 0x69c   : > { %v2614_v33 = vpop.f32.mrf.mxu1 }
 0x69f   : > { %1603 = vrot.lane.b32.xlu1 %v3102_v30, %s3316_s1 }
 0x6ef   : > { %v1431_v18 = vpop.xlane.xlu1 %1430 }
 0x6f0   : > { %v1432_v19 = vmul.f32 0.03125, %v1431_v18 }
 0x6f2   : > { %v1433_v20 = vadd.f32 1e-05, %v1432_v19 }
 0x6f4   : > { %2741 = vrsqrt.f32 %v1433_v20 }
 0x701   : > { %v2742_v21 = vpop.eup %2741 }
 0x702   : > { %v1435_v23 = vmul.f32 %v2742_v21, %v1427_v9 }
 0x704   : > { %v1442_v15 = vmul.f32 %v2441_v22, %v1435_v23 }
 0x706   : > { %v3092_v25 = vadd.f32 %v2442_v24, %v1442_v15 }
 0x708   : > { %v1450_v12 = vpack.c.bf16 %v3092_v25, %v3092_v25 }
 0x70a   : > { %2604 = vmatmul.mubr.msk.bf16.vlgmr.msra.gmra.mxu0 %vm832_vm1, %v1450_v12 }
 0x70b   : > { %2617 = vmatprep.mubr.msk.bf16.mxu0 %vm2772_vm0, %v2771_v1  ;;  %2616 = vmatpush3.bf16.xpose.msra.mxu0 %v1609_v32 }
 0x70c   : > { %2627 = vmatprep.subr.bf16.mxu0 %v2771_v1 }
 0x70d   : > { %v3113_v34 = vpop.permute.xlu0 %1599  ;;  %v3121_v41 = vpop.permute.xlu1 %1601 }
 0x70e   : > { %v1655_v35 = vsel %vm900_vm2, %v3113_v34, 0  ;;  %v1701_v43 = vsel %vm900_vm2, %v3121_v41, 0 }
 0x70f   : > { %2622 = vmatpush3.bf16.xpose.msra.mxu1 %v1655_v35 }
 0x710   : > { %2633 = vmatprep.subr.bf16.mxu1 %v2771_v1 }
 0x711   : > { %v3132_v45 = vpop.permute.xlu1 %1603 }
 0x712   : > { %v1747_v47 = vsel %vm900_vm2, %v3132_v45, 0 }
 0x7ca   : > { %v1511_v37 = vpop.f32.mrf.mxu0 }
 0x7cb   : > { %v1512_v38 = vadd.f32 %v2443_v36, %v1511_v37 }
 0x7cc   : > { %v2605_v39 = vpop.f32.mrf.mxu0 }
 0x7cd   : > { %v1589_v40 = vpack.c.bf16 %v1512_v38, %v1512_v38 }
 0x7ce   : > { %v1514_v42 = vpop.f32.mrf.mxu0 }
 0x7cf   : > { %1595 = vrot.lane.b32.xlu1 %v1589_v40, %s3316_s1  ;;  %1591 = vrot.lane.b32.xlu0 %v1589_v40, %s2774_s30  ;;  %s3321_s30 = smov 24   ;;  %s804_s1 = scalar_lea.vmem %s3286_s25, %s3322_s27 }
 0x7d0   : > { %2618 = vmatmul.mubr.msk.bf16.vlgmr.msra.gmra.mxu0 %vm900_vm2, %v1589_v40  ;;  %v2606_v44 = vpop.f32.mrf.mxu0 }
 0x7d1   : > { %2628 = vmatpush3.bf16.xpose.msra.mxu0 %v1701_v43  ;;  %2629 = vmatprep.mubr.msk.bf16.mxu0 %vm2772_vm0, %v2771_v1 }
 0x7d2   : > { %2639 = vmatprep.subr.bf16.mxu0 %v2771_v1 }
 0x7d3   : > { %1593 = vrot.lane.b32.xlu0 %v1589_v40, %s2776_s26 }
 0x841   : > { %v1592_v46 = vpop.permute.xlu0 %1591  ;;  %v1596_v49 = vpop.permute.xlu1 %1595 }
 0x842   : > { %2624 = vmatmul.mubr.msk.bf16.vlgmr.msra.gmra.mxu1 %vm900_vm2, %v1592_v46 }
 0x843   : > { %2634 = vmatpush3.bf16.xpose.msra.mxu1 %v1747_v47  ;;  %2635 = vmatprep.mubr.msk.bf16.mxu1 %vm2772_vm0, %v2771_v1 }
 0x844   : > { %2645 = vmatprep.subr.bf16.mxu1 %v2771_v1 }
 0x845   : > { %v1594_v48 = vpop.permute.xlu0 %1593 }
 0x846   : > { %2630 = vmatmul.mubr.msk.bf16.vlgmr.msra.gmra.mxu0 %vm900_vm2, %v1594_v48 }
 0x847   : > { %2641 = vmatprep.mubr.msk.bf16.mxu0 %vm2772_vm0, %v2771_v1 }
 0x84a   : > { %2636 = vmatmul.mubr.msk.bf16.vlgmr.msra.gmra.mxu1 %vm900_vm2, %v1596_v49 }
 0x84b   : > { %2647 = vmatprep.mubr.msk.bf16.mxu1 %vm2772_vm0, %v2771_v1 }
 0x890   : > { %v1645_v50 = vpop.f32.mrf.mxu0 }
 0x891   : > { %v1789_v52 = vmul.f32 0.35355338, %v1645_v50 }
 0x892   : > { %v2619_v53 = vpop.f32.mrf.mxu0 }
 0x893   : > { %v1799_v54 = vadd.f32 %v2455_v51, %v1789_v52 }
 0x894   : > { %v1648_v55 = vpop.f32.mrf.mxu0 }
 0x895   : > { %v1803_v56 = vsel %vm900_vm2, %v1799_v54, -inf }
 0x896   : > { %1804 = vmax.xlane.f32.xlu0 %v1803_v56  ;;  %v2620_v57 = vpop.f32.mrf.mxu0 }
 0x902   : > { %v1691_v58 = vpop.f32.mrf.mxu1 }
 0x903   : > { %v1790_v59 = vmul.f32 0.35355338, %v1691_v58 }
 0x904   : > { %v2625_v60 = vpop.f32.mrf.mxu1 }
 0x905   : > { %v1800_v61 = vadd.f32 %v2455_v51, %v1790_v59 }
 0x906   : > { %v1694_v62 = vpop.f32.mrf.mxu1  ;;  %v1737_v63 = vpop.f32.mrf.mxu0 }
 0x907   : > { %v1791_v0 = vmul.f32 0.35355338, %v1737_v63  ;;  %v1806_v2 = vsel %vm900_vm2, %v1800_v61, -inf }
 0x908   : > { %v2631_v4 = vpop.f32.mrf.mxu0  ;;  %1807 = vmax.xlane.f32.xlu1 %v1806_v2  ;;  %v2626_v5 = vpop.f32.mrf.mxu1  ;;  %v2717_v2 = vld [vmem:[%s3276_s15 + $0x8] sm:$0xff]  }
 0x909   : > { %v1801_v6 = vadd.f32 %v2455_v51, %v1791_v0  ;;  %v2718_v4 = vld [vmem:[%s3276_s15] sm:$0xff]  }
 0x90a   : > { %v1740_v7 = vpop.f32.mrf.mxu0  ;;  %v1783_v8 = vpop.f32.mrf.mxu1 }
 0x90b   : > { %v1792_v9 = vmul.f32 0.35355338, %v1783_v8  ;;  %v1809_v10 = vsel %vm900_vm2, %v1801_v6, -inf }
 0x90c   : > { %1810 = vmax.xlane.f32.xlu0 %v1809_v10  ;;  %v2632_v11 = vpop.f32.mrf.mxu0  ;;  %v2637_v13 = vpop.f32.mrf.mxu1 }
 0x90d   : > { %v1802_v3 = vadd.f32 %v2455_v51, %v1792_v9 }
 0x90e   : > { %v1786_v14 = vpop.f32.mrf.mxu1 }
 0x90f   : > { %v1812_v16 = vsel %vm900_vm2, %v1802_v3, -inf }
 0x910   : > { %1813 = vmax.xlane.f32.xlu0 %v1812_v16  ;;  %v2638_v17 = vpop.f32.mrf.mxu1 }
 0x919   : > { %1851 = vrot.lane.b32.xlu1 %v3102_v30, %s3318_s8 }
 0x91f   : > { %v1805_v18 = vpop.xlane.xlu0 %1804 }
 0x920   : > { %v1815_v19 = vsub.f32 %v1799_v54, %v1805_v18 }
 0x922   : > { %v1819_v20 = vmul.f32 1.442695, %v1815_v19 }
 0x924   : > { %2743 = vpow2.f32 %v1819_v20 }
 0x931   : > { %v2744_v21 = vpop.eup %2743 }
 0x932   : > { %v1827_v22 = vsel %vm900_vm2, %v2744_v21, 0.0 }
 0x93d   : > { %1828 = vadd.xlane.f32.xlu1 %v1827_v22 }
 0x991   : > { %v1808_v23 = vpop.xlane.xlu1 %1807 }
 0x992   : > { %v1816_v24 = vsub.f32 %v1800_v61, %v1808_v23 }
 0x994   : > { %v1821_v15 = vmul.f32 1.442695, %v1816_v24 }
 0x995   : > { %v1811_v12 = vpop.xlane.xlu0 %1810  ;;  %v1852_v26 = vpop.permute.xlu1 %1851 }
 0x996   : > { %2745 = vpow2.f32 %v1821_v15  ;;  %v1817_v27 = vsub.f32 %v1801_v6, %v1811_v12  ;;  %v1857_v28 = vsel %vm1152_vm3, %v1852_v26, 0  ;;  %v2460_v15 = vld [vmem:[%s3277_s16] ss:$0 sm:$0xff] }
 0x997   : > { %2640 = vmatpush3.bf16.msra.mxu0 %v1857_v28 }
 0x998   : > { %v1823_v29 = vmul.f32 1.442695, %v1817_v27  ;;  %2651 = vmatprep.subr.bf16.mxu0 %v2771_v1 }
 0x999   : > { %v1814_v30 = vpop.xlane.xlu0 %1813 }
 0x99a   : > { %2747 = vpow2.f32 %v1823_v29  ;;  %v1818_v31 = vsub.f32 %v1802_v3, %v1814_v30 }
 0x99c   : > { %v1825_v32 = vmul.f32 1.442695, %v1818_v31 }
 0x99e   : > { %2749 = vpow2.f32 %v1825_v32 }
 0x9a3   : > { %v2746_v33 = vpop.eup %2745 }
 0x9a4   : > { %v1830_v35 = vsel %vm900_vm2, %v2746_v33, 0.0 }
 0x9a5   : > { %1831 = vadd.xlane.f32.xlu0 %v1830_v35 }
 0x9a7   : > { %v2748_v36 = vpop.eup %2747 }
 0x9a8   : > { %v1833_v37 = vsel %vm900_vm2, %v2748_v36, 0.0 }
 0x9a9   : > { %1834 = vadd.xlane.f32.xlu1 %v1833_v37 }
 0x9ab   : > { %v2750_v38 = vpop.eup %2749 }
 0x9ac   : > { %v1836_v39 = vsel %vm900_vm2, %v2750_v38, 0.0 }
 0x9ad   : > { %1837 = vadd.xlane.f32.xlu0 %v1836_v39  ;;  %v2721_v39 = vld [vmem:[%s3282_s21 + $0x18] sm:$0xff]  }
 0x9ba   : > { %1947 = vrot.lane.b32.xlu1 %v3121_v41, %s3318_s8 }
 0x9be   : > { %1995 = vrot.lane.b32.xlu1 %v3132_v45, %s3318_s8 }
 0x9c3   : > { %1899 = vrot.lane.b32.xlu0 %v3113_v34, %s3318_s8 }
 0x9c6   : > { %v1829_v40 = vpop.xlane.xlu1 %1828 }
 0x9c7   : > { %2751 = vrcp.f32 %v1829_v40  ;;  %v2722_v40 = vld [vmem:[%s3282_s21 + $0x10] sm:$0xff]  }
 0x9d4   : > { %v2752_v42 = vpop.eup %2751 }
 0x9d5   : > { %v1843_v43 = vmul.f32 %v2752_v42, %v2744_v21 }
 0x9d7   : > { %v1847_v44 = vpack.c.bf16 %v1843_v43, %v1843_v43 }
 0x9d9   : > { %2642 = vmatmul.mubr.msk.bf16.vlgmr.msra.gmra.mxu0 %vm900_vm2, %v1847_v44 }
 0x9da   : > { %2653 = vmatprep.mubr.msk.bf16.mxu0 %vm2772_vm0, %v2771_v1 }
 0xa2e   : > { %v1832_v46 = vpop.xlane.xlu0 %1831 }
 0xa2f   : > { %2753 = vrcp.f32 %v1832_v46 }
 0xa32   : > { %v1835_v47 = vpop.xlane.xlu1 %1834 }
 0xa33   : > { %2755 = vrcp.f32 %v1835_v47  ;;  %v2464_v47 = vld [vmem:[%s3278_s17] ss:$0 sm:$0xff] }
 0xa36   : > { %v1948_v41 = vpop.permute.xlu1 %1947  ;;  %v1838_v48 = vpop.xlane.xlu0 %1837 }
 0xa37   : > { %v1953_v45 = vsel %vm1152_vm3, %v1948_v41, 0  ;;  %2757 = vrcp.f32 %v1838_v48  ;;  %v2465_v48 = vld [vmem:[%s3279_s18] ss:$0 sm:$0xff] }
 0xa38   : > { %2652 = vmatpush3.bf16.msra.mxu0 %v1953_v45 }
 0xa39   : > { %2663 = vmatprep.subr.bf16.mxu0 %v2771_v1 }
 0xa3a   : > { %v1900_v34 = vpop.permute.xlu0 %1899  ;;  %v1996_v52 = vpop.permute.xlu1 %1995 }
 0xa3b   : > { %v1905_v49 = vsel %vm1152_vm3, %v1900_v34, 0  ;;  %v2001_v55 = vsel %vm1152_vm3, %v1996_v52, 0  ;;  %v2466_v52 = vld [vmem:[%s3281_s20] ss:$0 sm:$0xff] }
 0xa3c   : > { %v2754_v50 = vpop.eup %2753  ;;  %2646 = vmatpush3.bf16.msra.mxu1 %v1905_v49 }
 0xa3d   : > { %2657 = vmatprep.subr.bf16.mxu1 %v2771_v1  ;;  %v1844_v51 = vmul.f32 %v2754_v50, %v2746_v33  ;;  %v2723_v50 = vld [vmem:[%s3282_s21 + $0x8] sm:$0xff]  }
 0xa3f   : > { %v1848_v53 = vpack.c.bf16 %v1844_v51, %v1844_v51  ;;  %v2724_v51 = vld [vmem:[%s3282_s21] sm:$0xff]  }
 0xa40   : > { %v2756_v54 = vpop.eup %2755 }
 0xa41   : > { %2648 = vmatmul.mubr.msk.bf16.vlgmr.msra.gmra.mxu1 %vm900_vm2, %v1848_v53  ;;  %v1845_v56 = vmul.f32 %v2756_v54, %v2748_v36 }
 0xa42   : > { %2658 = vmatpush3.bf16.msra.mxu1 %v2001_v55  ;;  %2659 = vmatprep.mubr.msk.bf16.mxu1 %vm2772_vm0, %v2771_v1 }
 0xa43   : > { %v1849_v57 = vpack.c.bf16 %v1845_v56, %v1845_v56  ;;  %2671 = vmatprep.subr.bf16.mxu1 %v2771_v1 }
 0xa44   : > { %v2758_v58 = vpop.eup %2757 }
 0xa45   : > { %2654 = vmatmul.mubr.msk.bf16.vlgmr.msra.gmra.mxu0 %vm900_vm2, %v1849_v57  ;;  %v1846_v59 = vmul.f32 %v2758_v58, %v2750_v38  ;;  %v2719_v38 = vld [vmem:[%s3280_s19 + $0x8] sm:$0xff]  }
 0xa46   : > { %2667 = vmatprep.mubr.msk.bf16.mxu0 %vm2772_vm0, %v2771_v1  ;;  %2664 = vmatpush3.bf16.msra.mxu0 %v2717_v2 }
 0xa47   : > { %v1850_v60 = vpack.c.bf16 %v1846_v59, %v1846_v59  ;;  %2665 = vmatprep.subr.bf16.mxu0 %v2771_v1 }
 0xa49   : > { %2660 = vmatmul.mubr.msk.bf16.vlgmr.msra.gmra.mxu1 %vm900_vm2, %v1850_v60 }
 0xa4a   : > { %2675 = vmatprep.mubr.msk.bf16.mxu1 %vm2772_vm0, %v2771_v1  ;;  %2666 = vmatpush3.bf16.msra.mxu0 %v2718_v4 }
 0xa4b   : > { %2679 = vmatprep.subr.bf16.mxu0 %v2771_v1  ;;  %2672 = vmatpush3.bf16.msra.mxu1 %v2719_v38 }
 0xa4c   : > { %2673 = vmatprep.subr.bf16.mxu1 %v2771_v1 }
 0xa99   : > { %v1893_v61 = vpop.f32.mrf.mxu0 }
 0xa9b   : > { %v2643_v62 = vpop.f32.mrf.mxu0 }
 0xa9d   : > { %v1896_v63 = vpop.f32.mrf.mxu0 }
 0xa9f   : > { %v2644_v0 = vpop.f32.mrf.mxu0 }
 0xb01   : > { %v1941_v5 = vpop.f32.mrf.mxu1 }
 0xb02   : > { %2044 = vrot.lane.b32.xlu0 %v1941_v5, %s3319_s5 }
 0xb03   : > { %v2649_v6 = vpop.f32.mrf.mxu1 }
 0xb05   : > { %v1944_v7 = vpop.f32.mrf.mxu1  ;;  %v1989_v8 = vpop.f32.mrf.mxu0 }
 0xb06   : > { %2048 = vrot.lane.b32.xlu1 %v1989_v8, %s3320_s6 }
 0xb07   : > { %v2650_v9 = vpop.f32.mrf.mxu1  ;;  %v2655_v10 = vpop.f32.mrf.mxu0 }
 0xb09   : > { %v1992_v11 = vpop.f32.mrf.mxu0  ;;  %v2037_v13 = vpop.f32.mrf.mxu1 }
 0xb0a   : > { %2052 = vrot.lane.b32.xlu0 %v2037_v13, %s3321_s30 }
 0xb0b   : > { %v2656_v3 = vpop.f32.mrf.mxu0  ;;  %v2661_v14 = vpop.f32.mrf.mxu1 }
 0xb0c   : > { %v2476_v14 = vld [vmem:[%s3284_s23] ss:$0 sm:$0xff] }
 0xb0d   : > { %v2040_v16 = vpop.f32.mrf.mxu1 }
 0xb0f   : > { %v2662_v17 = vpop.f32.mrf.mxu1 }
 0xb10   : > { %v2477_v17 = vld [vmem:[%s3285_s24] ss:$0 sm:$0xff] }
 0xb74   : > { %v2045_v18 = vpop.permute.xlu0 %2044 }
 0xb75   : > { %v2055_v20 = vsel %vm900_vm2, %v1893_v61, %v2045_v18 }
 0xb78   : > { %v2049_v19 = vpop.permute.xlu1 %2048 }
 0xb79   : > { %v2056_v21 = vsel %vm1353_vm4, %v2055_v20, %v2049_v19 }
 0xb7c   : > { %v2053_v22 = vpop.permute.xlu0 %2052 }
 0xb7d   : > { %v2057_v23 = vsel %vm1355_vm5, %v2056_v21, %v2053_v22 }
 0xb7e   : > { %v2058_v24 = vpack.c.bf16 %v2057_v23, %v2057_v23 }
 0xb80   : > { %2668 = vmatmul.mubr.msk.bf16.vlgmr.msra.gmra.mxu0 %vm832_vm1, %v2058_v24 }
 0xb81   : > { %2687 = vmatprep.mubr.msk.bf16.mxu0 %vm2772_vm0, %v2771_v1  ;;  %2680 = vmatpush3.bf16.msra.mxu0 %v2721_v39 }
 0xb82   : > { %2681 = vmatprep.subr.bf16.mxu0 %v2771_v1 }
 0xb85   : > { %2682 = vmatpush3.bf16.msra.mxu0 %v2722_v40 }
 0xb86   : > { %2683 = vmatprep.subr.bf16.mxu0 %v2771_v1 }
 0xb89   : > { %2684 = vmatpush3.bf16.msra.mxu0 %v2723_v50 }
 0xb8a   : > { %2685 = vmatprep.subr.bf16.mxu0 %v2771_v1  ;;  %v2470_v1 = vld [vmem:[%s3283_s22] ss:$0 sm:$0xff] }
 0xb8d   : > { %2686 = vmatpush3.bf16.msra.mxu0 %v2724_v51 }
 0xc40   : > { %v2114_v12 = vpop.f32.mrf.mxu0 }
 0xc41   : > { %v2115_v26 = vadd.f32 %v2460_v15, %v2114_v12 }
 0xc42   : > { %v2669_v27 = vpop.f32.mrf.mxu0 }
 0xc43   : > { %v2120_v28 = vadd.f32 %v2115_v26, %v3092_v25  ;;  %v2720_v25 = vld [vmem:[%s3280_s19] sm:$0xff]  }
 0xc44   : > { %v2117_v29 = vpop.f32.mrf.mxu0  ;;  %2674 = vmatpush3.bf16.msra.mxu1 %v2720_v25 }
 0xc45   : > { %v2123_v30 = vsel %vm832_vm1, %v2120_v28, 0.0 }
 0xc46   : > { %2124 = vadd.xlane.f32.xlu1 %v2123_v30  ;;  %v2670_v31 = vpop.f32.mrf.mxu0 }
 0xccf   : > { %v2125_v32 = vpop.xlane.xlu1 %2124 }
 0xcd0   : > { %v2126_v33 = vmul.f32 0.03125, %v2125_v32 }
 0xcd2   : > { %v2127_v35 = vsub.f32 %v2120_v28, %v2126_v33 }
 0xcd4   : > { %v2128_v36 = vmul.f32 %v2127_v35, %v2127_v35 }
 0xcd6   : > { %v2129_v37 = vsel %vm832_vm1, %v2128_v36, 0.0 }
 0xcd7   : > { %2130 = vadd.xlane.f32.xlu0 %v2129_v37 }
 0xd60   : > { %v2131_v42 = vpop.xlane.xlu0 %2130 }
 0xd61   : > { %v2132_v43 = vmul.f32 0.03125, %v2131_v42 }
 0xd63   : > { %v2133_v44 = vadd.f32 1e-05, %v2132_v43 }
 0xd65   : > { %2759 = vrsqrt.f32 %v2133_v44 }
 0xd72   : > { %v2760_v46 = vpop.eup %2759 }
 0xd73   : > { %v2135_v41 = vmul.f32 %v2760_v46, %v2127_v35 }
 0xd75   : > { %v2142_v45 = vmul.f32 %v2464_v47, %v2135_v41 }
 0xd77   : > { %v2149_v34 = vadd.f32 %v2465_v48, %v2142_v45 }
 0xd79   : > { %v2164_v49 = vpack.c.bf16 %v2149_v34, %v2149_v34 }
 0xd7b   : > { %2676 = vmatmul.mubr.msk.bf16.vlgmr.msra.gmra.mxu1 %vm832_vm1, %v2164_v49 }
 0xe3b   : > { %v2220_v53 = vpop.f32.mrf.mxu1 }
 0xe3c   : > { %v2221_v54 = vadd.f32 %v2466_v52, %v2220_v53 }
 0xe3d   : > { %v2677_v55 = vpop.f32.mrf.mxu1 }
 0xe3e   : > { %v2226_v56 = vmax.f32 %v2221_v54, 0.0 }
 0xe3f   : > { %v2223_v57 = vpop.f32.mrf.mxu1 }
 0xe40   : > { %v2227_v58 = vpack.c.bf16 %v2226_v56, %v2226_v56 }
 0xe41   : > { %v2678_v59 = vpop.f32.mrf.mxu1 }
 0xe42   : > { %2688 = vmatmul.mubr.msk.bf16.vlgmr.msra.gmra.mxu0 %vm2258_vm6, %v2227_v58 }
 0xf02   : > { %v2296_v60 = vpop.f32.mrf.mxu0 }
 0xf03   : > { %v2297_v61 = vadd.f32 %v2470_v1, %v2296_v60 }
 0xf04   : > { %v2689_v62 = vpop.f32.mrf.mxu0 }
 0xf05   : > { %v2302_v63 = vadd.f32 %v2297_v61, %v2149_v34 }
 0xf06   : > { %v2299_v0 = vpop.f32.mrf.mxu0 }
 0xf07   : > { %v2305_v2 = vsel %vm832_vm1, %v2302_v63, 0.0 }
 0xf08   : > { %2306 = vadd.xlane.f32.xlu0 %v2305_v2  ;;  %v2690_v4 = vpop.f32.mrf.mxu0 }
 0xf91   : > { %v2307_v5 = vpop.xlane.xlu0 %2306 }
 0xf92   : > { %v2308_v6 = vmul.f32 0.03125, %v2307_v5 }
 0xf94   : > { %v2309_v7 = vsub.f32 %v2302_v63, %v2308_v6 }
 0xf96   : > { %v2310_v8 = vmul.f32 %v2309_v7, %v2309_v7 }
 0xf98   : > { %v2311_v9 = vsel %vm832_vm1, %v2310_v8, 0.0 }
 0xf99   : > { %2312 = vadd.xlane.f32.xlu1 %v2311_v9 }
0x1022   : > { %v2313_v10 = vpop.xlane.xlu1 %2312 }
0x1023   : > { %v2314_v11 = vmul.f32 0.03125, %v2313_v10 }
0x1025   : > { %v2315_v13 = vadd.f32 1e-05, %v2314_v11 }
0x1027   : > { %2761 = vrsqrt.f32 %v2315_v13 }
0x1034   : > { %v2762_v3 = vpop.eup %2761 }
0x1035   : > { %v2317_v16 = vmul.f32 %v2762_v3, %v2309_v7 }
0x1037   : > { %v2324_v18 = vmul.f32 %v2476_v14, %v2317_v16 }
0x1039   : > { %v2331_v19 = vadd.f32 %v2477_v17, %v2324_v18 }
0x103b   : > { %2332 = vst.msk [vmem:[%s804_s1] sm:$0xff] %vm832_vm1, %v2331_v19 }
0x103c PF: > { %s35_s29 = sadd.s32 1, %s2769_s29  }
0x103d   : > { %p32_p4 = scmp.ge.s32.totalorder %s35_s29, 4  }
0x103f   :  { %34 = sbr.rel (!%p32_p4) target bundleno = 11 (0xb), region = 159 }

// kernel: seq2seq_transformer_forward.8
= control target key start
LH: loop header
LB: loop body
LE: loop exit
PB: predicated region body
PF: predicated region fallthrough
CT: control target
= control target key end

     0   :  { %s3349_s0 = inlined_call_operand.vmem [shape: f32[2,8,32], index: 0, kind: input, shape index: {}]   ;;  %s3350_s1 = inlined_call_operand.vmem [shape: bf16[2,8,32], index: 1, kind: input, shape index: {}]   ;;  %s3351_s2 = inlined_call_operand.vmem [shape: f32[8,8], index: 2, kind: input, shape index: {}]   ;;  %s3352_s3 = inlined_call_operand.vmem [shape: f32[2,1,8], index: 3, kind: input, shape index: {}]   ;;  %s3353_s4 = inlined_call_operand.vmem [shape: f32[2,1,8], index: 4, kind: input, shape index: {}]   ;;  %s3354_s5 = inlined_call_operand.vmem [shape: bf16[32,96], index: 5, kind: input, shape index: {}]   ;;  %s3355_s6 = inlined_call_operand.vmem [shape: f32[1,96], index: 6, kind: input, shape index: {}]   ;;  %s3356_s7 = inlined_call_operand.vmem [shape: bf16[32,32], index: 7, kind: input, shape index: {}]   ;;  %s3357_s8 = inlined_call_operand.vmem [shape: f32[1,32], index: 8, kind: input, shape index: {}]   ;;  %s3358_s9 = inlined_call_operand.vmem [shape: f32[1,32], index: 9, kind: input, shape index: {}]   ;;  %s3359_s10 = inlined_call_operand.vmem [shape: f32[1,32], index: 10, kind: input, shape index: {}]   ;;  %s3360_s11 = inlined_call_operand.vmem [shape: bf16[32,32], index: 11, kind: input, shape index: {}]   ;;  %s3361_s12 = inlined_call_operand.vmem [shape: f32[1,32], index: 12, kind: input, shape index: {}]   ;;  %s3362_s13 = inlined_call_operand.vmem [shape: bf16[32,64], index: 13, kind: input, shape index: {}]   ;;  %s3363_s14 = inlined_call_operand.vmem [shape: f32[1,64], index: 14, kind: input, shape index: {}]   ;;  %s3364_s15 = inlined_call_operand.vmem [shape: bf16[32,32], index: 15, kind: input, shape index: {}]   ;;  %s3365_s16 = inlined_call_operand.vmem [shape: f32[1,32], index: 16, kind: input, shape index: {}]   ;;  %s3366_s17 = inlined_call_operand.vmem [shape: f32[1,32], index: 17, kind: input, shape index: {}]   ;;  %s3367_s18 = inlined_call_operand.vmem [shape: f32[1,32], index: 18, kind: input, shape index: {}]   ;;  %s3368_s19 = inlined_call_operand.vmem [shape: bf16[32,64], index: 19, kind: input, shape index: {}]   ;;  %s3369_s20 = inlined_call_operand.vmem [shape: f32[1,64], index: 20, kind: input, shape index: {}]   ;;  %s3370_s21 = inlined_call_operand.vmem [shape: bf16[64,32], index: 21, kind: input, shape index: {}]   ;;  %s3371_s22 = inlined_call_operand.vmem [shape: f32[1,32], index: 22, kind: input, shape index: {}]   ;;  %s3372_s23 = inlined_call_operand.vmem [shape: f32[1,32], index: 23, kind: input, shape index: {}]   ;;  %s3373_s24 = inlined_call_operand.hbm [shape: f32[1,32], index: 24, kind: input, shape index: {}]   ;;  %s3374_s25 = inlined_call_operand.vmem [shape: f32[2,8,32], index: 25, kind: output, shape index: {}]  }
   0x1   :  { %3385 = sst [smem:[#allocation5_spill]] %s3349_s0 }
   0x2   :  { %3386 = sst [smem:[#allocation6_spill]] %s3350_s1 }
   0x3   :  { %3387 = sst [smem:[#allocation7_spill]] %s3351_s2 }
   0x4   :  { %3388 = sst [smem:[#allocation8_spill]] %s3352_s3 }
   0x5   :  { %3389 = sst [smem:[#allocation9_spill]] %s3353_s4 }
   0x6   :  { %3390 = sst [smem:[#allocation10_spill]] %s3354_s5 }
   0x7   :  { %3391 = sst [smem:[#allocation11_spill]] %s3355_s6 }
   0x8   :  { %3392 = sst [smem:[#allocation12_spill]] %s3356_s7 }
   0x9   :  { %3393 = sst [smem:[#allocation13_spill]] %s3357_s8 }
   0xa   :  { %3394 = sst [smem:[#allocation14_spill]] %s3358_s9 }
   0xb   :  { %30 = vsyncpa [#allocation3], 0  ;;  %s2980_s29 = smov 0  }
   0xc LB: > { %s2986_s2 = sadd.s32 4294967295, %s2837_s29   ;;  %p2443_p0 = scmp.ge.s32.totalorder %s2837_s29, 1  ;;  %s2837_s29 = sphi %s2980_s29, %s36_s29  }
   0xd   : > { %p612_p1 = scmp.lt.s32.totalorder %s2837_s29, 3  ;;  %p2726_p3 = scmp.eq.s32.totalorder %s2986_s2, 0 }
   0xe   : > { %s2839_s30 = smov [#allocation2]  }
   0xf   : > { %p2990_p2 = pnand %p2443_p0, %p612_p1  ;;  %s685_s7 = sshll.u32 %s2839_s30, 4  ;;  %s686_s7 = int_to_ptr.vmem [resolvable:$true] %s685_s7 }
  0x10   : > { %s2812_s3 = scalar_lea.vmem %s686_s7, 16  ;;  %s2819_s26 = scalar_lea.vmem %s686_s7, 32 }
  0x11   : > { %p2722_p4 = pneg %p2990_p2  ;;  %p2813_p7 = scmp.ne.s32.totalorder %s686_s7, %s2812_s3 }
  0x12   : > { %p2820_p10 = scmp.lt.s32.totalorder %s686_s7, %s686_s7  ;;  %p2821_p11 = scmp.lt.s32.totalorder %s2819_s26, %s2812_s3 }
  0x13   : > { %p2723_p5 = pnand %p2726_p3, %p2722_p4 }
  0x14   : > { %p2822_p12 = por %p2821_p11, %p2820_p10 }
  0x15   : > { %p2803_p6 = pneg %p2723_p5 }
  0x17   : > { %p2815_p8 = pnand %p2813_p7, %p2803_p6 }
  0x19   : > { %p2816_p9 = pneg %p2815_p8 }
  0x1b   : > { %p2823_p13 = pnand %p2822_p12, %p2816_p9 }
  0x1d   : > { %2826 = shalt.err (!%p2823_p13)
}
  0x1e   : > { %2725 = dma.hbm_to_vmem [thread:$0]  (!%p2723_p5), %s3373_s24, 16, %s686_s7, [#allocation3]  }
  0x1f   : > { %724 = sbr.rel (%p2990_p2) target bundleno = 4178 (0x1052), region = 120 }
  0x24   : > { %2832 = dma.done.wait (%p2726_p3), [#allocation3], 16  }
  0x25   : > { %2834 = vsyncadd (%p2726_p3), [#allocation3], 4294967280  ;;  %p800_p0 = scmp.lt.s32.totalorder %s2986_s2, 1  ;;  %v2840_v0 = vmov 0.0   ;;  %vm2841_vm0 = vmmov 0   ;;  %s3396_s9 = sld [smem:[#allocation5_spill]] }
  0x26   : > { %2562 = vmatprep.subr.bf16.mxu1 %v2840_v0  ;;  %2566 = vmatprep.mubr.msk.bf16.mxu1 %vm2841_vm0, %v2840_v0  ;;  %s3397_s30 = sld [smem:[#allocation10_spill]]  ;;  %vm845_vm1 = vcmask 261120   ;;  %s3383_s4 = smov 104   ;;  %vm913_vm2 = vcmask 64512   ;;  %vm1165_vm3 = vcmask 1043456   ;;  %vm1366_vm4 = vcmask 130048  }
  0x27   : > { %s3413_s2 = smov (!%p800_p0, %s2986_s2), 1  ;;  %2576 = vmatprep.subr.bf16.mxu0 %v2840_v0  ;;  %2578 = vmatprep.mubr.msk.bf16.mxu0 %vm2841_vm0, %v2840_v0  ;;  %s3398_s8 = sld [smem:[#allocation11_spill]]  ;;  %vm1368_vm5 = vcmask 195584   ;;  %vm2271_vm6 = vcmask 523264  }
  0x28   : > { %s3377_s27 = sshll.u32 %s3413_s2, 3  ;;  %s2843_s28 = smov 120  }
  0x29   : > { %s3399_s7 = sld [smem:[#allocation8_spill]]  ;;  %s2846_s0 = smov 64  }
  0x2a   : > { %s3378_s6 = smov 24   ;;  %s3402_s1 = sld [smem:[#allocation13_spill]] }
  0x2b   : > { %s803_s5 = scalar_lea.vmem %s3396_s9, %s3377_s27  ;;  %s3381_s9 = smov 96  }
  0x2c   : > { %v2747_v1 = vld [vmem:[%s3397_s30 + $0x8] sm:$0xff]   ;;  %v2748_v2 = vld [vmem:[%s3397_s30] sm:$0xff]   ;;  %s3405_s27 = smov 104  }
  0x2d   : > { %2563 = vmatpush3.bf16.msra.mxu1 %v2747_v1  ;;  %v3030_v3 = vld [vmem:[%s803_s5] sm:$0xff]  ;;  %s2845_s5 = smov 112  }
  0x2e   : > { %2564 = vmatprep.subr.bf16.mxu1 %v2840_v0  ;;  %v821_v4 = vpack.c.bf16 %v3030_v3, %v3030_v3  ;;  %v2451_v5 = vld [vmem:[%s3398_s8] ss:$0 sm:$0xff]  ;;  %s3400_s8 = sld [smem:[#allocation7_spill]] }
  0x2f   : > { %s810_s3 = scalar_lea.vmem %s3399_s7, %s3413_s2 }
  0x30   : > { %v2455_v24 = vld [vmem:[%s810_s3] ss:$0 sm:$0xff]  ;;  %s3401_s3 = sld [smem:[#allocation12_spill]] }
  0x31   : > { %2565 = vmatpush3.bf16.msra.mxu1 %v2748_v2 }
  0x32   : > { %2570 = vmatprep.subr.bf16.mxu1 %v2840_v0 }
  0x34   : > { %2567 = vmatmul.mubr.msk.bf16.vlgmr.msra.gmra.mxu1 %vm845_vm1, %v821_v4  ;;  %v889_v23 = vld [vmem:[%s3400_s8] sm:$0xff]  ;;  %s3380_s8 = smov 8  }
  0x35   : > { %2572 = vmatprep.mubr.msk.bf16.mxu1 %vm2841_vm0, %v2840_v0  ;;  %v897_v25 = vadd.f32 %v2455_v24, %v889_v23 }
  0xf4   : > { %v883_v6 = vpop.f32.mrf.mxu1 }
  0xf5   : > { %v884_v7 = vadd.f32 %v2451_v5, %v883_v6 }
  0xf6   : > { %v2568_v8 = vpop.f32.mrf.mxu1 }
  0xf7   : > { %v3042_v9 = vpack.c.bf16 %v884_v7, %v884_v7 }
  0xf8   : > { %v886_v10 = vpop.f32.mrf.mxu1 }
  0xf9   : > { %909 = vrot.lane.b32.xlu1 %v3042_v9, %s3383_s4  ;;  %905 = vrot.lane.b32.xlu0 %v3042_v9, %s2843_s28 }
  0xfa   : > { %v2569_v11 = vpop.f32.mrf.mxu1 }
  0xfd   : > { %911 = vrot.lane.b32.xlu1 %v3042_v9, %s3381_s9  ;;  %907 = vrot.lane.b32.xlu0 %v3042_v9, %s2845_s5 }
 0x16b   : > { %v3052_v12 = vpop.permute.xlu1 %909  ;;  %v3054_v13 = vpop.permute.xlu0 %905 }
 0x16c   : > { %960 = vrot.lane.b32.xlu0 %v3054_v13, %s3381_s9 }
 0x16f   : > { %v912_v14 = vpop.permute.xlu1 %911  ;;  %v3058_v15 = vpop.permute.xlu0 %907 }
 0x170   : > { %v918_v16 = vsel %vm913_vm2, %v912_v14, 0  ;;  %1056 = vrot.lane.b32.xlu0 %v3052_v12, %s3381_s9  ;;  %1008 = vrot.lane.b32.xlu1 %v3058_v15, %s3381_s9  ;;  %s3403_s9 = sld [smem:[#allocation6_spill]] }
 0x171   : > { %2571 = vmatpush3.bf16.xpose.msra.mxu1 %v918_v16 }
 0x172   : > { %2582 = vmatprep.subr.bf16.mxu1 %v2840_v0 }
 0x178   : > { %2573 = vmatmul.mubr.msk.bf16.vlgmr.msra.gmra.mxu1 %vm913_vm2, %v3042_v9 }
 0x179   : > { %2584 = vmatprep.mubr.msk.bf16.mxu1 %vm2841_vm0, %v2840_v0 }
 0x1de   : > { %v961_v17 = vpop.permute.xlu0 %960 }
 0x1df   : > { %v966_v18 = vsel %vm913_vm2, %v961_v17, 0 }
 0x1e0   : > { %2577 = vmatpush3.bf16.xpose.msra.mxu0 %v966_v18 }
 0x1e1   : > { %2588 = vmatprep.subr.bf16.mxu0 %v2840_v0 }
 0x1e2   : > { %v1009_v19 = vpop.permute.xlu1 %1008  ;;  %v1057_v21 = vpop.permute.xlu0 %1056 }
 0x1e3   : > { %v1014_v20 = vsel %vm913_vm2, %v1009_v19, 0  ;;  %v1062_v22 = vsel %vm913_vm2, %v1057_v21, 0 }
 0x1e4   : > { %2583 = vmatpush3.bf16.xpose.msra.mxu1 %v1014_v20 }
 0x1e5   : > { %2594 = vmatprep.subr.bf16.mxu1 %v2840_v0 }
 0x1e7   : > { %2579 = vmatmul.mubr.msk.bf16.vlgmr.msra.gmra.mxu0 %vm913_vm2, %v3054_v13 }
 0x1e8   : > { %2589 = vmatpush3.bf16.xpose.msra.mxu0 %v1062_v22  ;;  %2590 = vmatprep.mubr.msk.bf16.mxu0 %vm2841_vm0, %v2840_v0 }
 0x1e9   : > { %2600 = vmatprep.subr.bf16.mxu0 %v2840_v0 }
 0x1eb   : > { %2585 = vmatmul.mubr.msk.bf16.vlgmr.msra.gmra.mxu1 %vm913_vm2, %v3058_v15 }
 0x1ec   : > { %2596 = vmatprep.mubr.msk.bf16.mxu1 %vm2841_vm0, %v2840_v0 }
 0x1ef   : > { %2591 = vmatmul.mubr.msk.bf16.vlgmr.msra.gmra.mxu0 %vm913_vm2, %v3052_v12 }
 0x1f0   : > { %2602 = vmatprep.mubr.msk.bf16.mxu0 %vm2841_vm0, %v2840_v0 }
 0x238   : > { %v954_v26 = vpop.f32.mrf.mxu1 }
 0x239   : > { %v1104_v27 = vmul.f32 0.35355338, %v954_v26 }
 0x23a   : > { %v2574_v28 = vpop.f32.mrf.mxu1 }
 0x23b   : > { %v1108_v29 = vadd.f32 %v1104_v27, %v897_v25 }
 0x23c   : > { %v957_v30 = vpop.f32.mrf.mxu1 }
 0x23d   : > { %v1112_v31 = vsel %vm913_vm2, %v1108_v29, -inf }
 0x23e   : > { %1113 = vmax.xlane.f32.xlu1 %v1112_v31  ;;  %v2575_v32 = vpop.f32.mrf.mxu1 }
 0x2a7   : > { %v1002_v33 = vpop.f32.mrf.mxu0 }
 0x2a8   : > { %v1105_v34 = vmul.f32 0.35355338, %v1002_v33 }
 0x2a9   : > { %v2580_v35 = vpop.f32.mrf.mxu0 }
 0x2aa   : > { %v1109_v36 = vadd.f32 %v1105_v34, %v897_v25 }
 0x2ab   : > { %v1005_v37 = vpop.f32.mrf.mxu0  ;;  %v1050_v38 = vpop.f32.mrf.mxu1 }
 0x2ac   : > { %v1106_v39 = vmul.f32 0.35355338, %v1050_v38  ;;  %v1115_v40 = vsel %vm913_vm2, %v1109_v36, -inf }
 0x2ad   : > { %1116 = vmax.xlane.f32.xlu0 %v1115_v40  ;;  %v2581_v41 = vpop.f32.mrf.mxu0  ;;  %v2586_v42 = vpop.f32.mrf.mxu1  ;;  %v2749_v40 = vld [vmem:[%s3401_s3 + $0x8] sm:$0xff]  }
 0x2ae   : > { %v1110_v43 = vadd.f32 %v1106_v39, %v897_v25  ;;  %v2750_v41 = vld [vmem:[%s3401_s3] sm:$0xff]  }
 0x2af   : > { %v1053_v44 = vpop.f32.mrf.mxu1  ;;  %v1098_v45 = vpop.f32.mrf.mxu0 }
 0x2b0   : > { %v1107_v46 = vmul.f32 0.35355338, %v1098_v45  ;;  %v1118_v47 = vsel %vm913_vm2, %v1110_v43, -inf }
 0x2b1   : > { %v2592_v48 = vpop.f32.mrf.mxu0  ;;  %1119 = vmax.xlane.f32.xlu0 %v1118_v47  ;;  %v2587_v49 = vpop.f32.mrf.mxu1 }
 0x2b2   : > { %v1111_v50 = vadd.f32 %v1107_v46, %v897_v25 }
 0x2b3   : > { %v1101_v51 = vpop.f32.mrf.mxu0 }
 0x2b4   : > { %v1121_v52 = vsel %vm913_vm2, %v1111_v50, -inf }
 0x2b5   : > { %v2593_v53 = vpop.f32.mrf.mxu0  ;;  %1122 = vmax.xlane.f32.xlu1 %v1121_v52 }
 0x2c6   : > { %1209 = vrot.lane.b32.xlu1 %v3054_v13, %s2846_s0 }
 0x2c7   : > { %1160 = vrot.lane.b32.xlu0 %v3042_v9, %s2846_s0  ;;  %v1114_v54 = vpop.xlane.xlu1 %1113 }
 0x2c8   : > { %v1124_v55 = vsub.f32 %v1108_v29, %v1114_v54 }
 0x2ca   : > { %v1128_v56 = vmul.f32 1.442695, %v1124_v55 }
 0x2cc   : > { %2763 = vpow2.f32 %v1128_v56 }
 0x2d9   : > { %v2764_v57 = vpop.eup %2763 }
 0x2da   : > { %v1136_v58 = vsel %vm913_vm2, %v2764_v57, 0.0 }
 0x2e6   : > { %1137 = vadd.xlane.f32.xlu0 %v1136_v58 }
 0x336   : > { %v1117_v59 = vpop.xlane.xlu0 %1116 }
 0x337   : > { %v1125_v60 = vsub.f32 %v1109_v36, %v1117_v59 }
 0x339   : > { %v1130_v61 = vmul.f32 1.442695, %v1125_v60 }
 0x33a   : > { %v1120_v62 = vpop.xlane.xlu0 %1119 }
 0x33b   : > { %2765 = vpow2.f32 %v1130_v61  ;;  %v1126_v63 = vsub.f32 %v1110_v43, %v1120_v62  ;;  %v2464_v61 = vld [vmem:[%s3402_s1] ss:$0 sm:$0xff]  ;;  %s3408_s1 = smov 8  }
 0x33d   : > { %v1132_v1 = vmul.f32 1.442695, %v1126_v63 }
 0x33e   : > { %v1123_v2 = vpop.xlane.xlu1 %1122  ;;  %v1161_v4 = vpop.permute.xlu0 %1160 }
 0x33f   : > { %2767 = vpow2.f32 %v1132_v1  ;;  %v1127_v5 = vsub.f32 %v1111_v50, %v1123_v2  ;;  %v1167_v6 = vsel %vm1165_vm3, %v1161_v4, 0 }
 0x340   : > { %2595 = vmatpush3.bf16.msra.mxu1 %v1167_v6 }
 0x341   : > { %v1134_v7 = vmul.f32 1.442695, %v1127_v5  ;;  %2606 = vmatprep.subr.bf16.mxu1 %v2840_v0 }
 0x342   : > { %v1210_v8 = vpop.permute.xlu1 %1209 }
 0x343   : > { %2769 = vpow2.f32 %v1134_v7  ;;  %v1215_v9 = vsel %vm1165_vm3, %v1210_v8, 0 }
 0x344   : > { %2601 = vmatpush3.bf16.msra.mxu0 %v1215_v9 }
 0x345   : > { %2612 = vmatprep.subr.bf16.mxu0 %v2840_v0 }
 0x348   : > { %v2766_v10 = vpop.eup %2765 }
 0x349   : > { %v1139_v11 = vsel %vm913_vm2, %v2766_v10, 0.0 }
 0x34a   : > { %1140 = vadd.xlane.f32.xlu1 %v1139_v11 }
 0x34c   : > { %v2768_v13 = vpop.eup %2767 }
 0x34d   : > { %v1142_v14 = vsel %vm913_vm2, %v2768_v13, 0.0 }
 0x34e   : > { %1143 = vadd.xlane.f32.xlu0 %v1142_v14 }
 0x350   : > { %v2770_v16 = vpop.eup %2769 }
 0x351   : > { %v1145_v17 = vsel %vm913_vm2, %v2770_v16, 0.0 }
 0x352   : > { %1146 = vadd.xlane.f32.xlu1 %v1145_v17  ;;  %v2754_v17 = vld [vmem:[%s3360_s11] sm:$0xff]  }
 0x363   : > { %1257 = vrot.lane.b32.xlu1 %v3058_v15, %s2846_s0 }
 0x364   : > { %1305 = vrot.lane.b32.xlu0 %v3052_v12, %s2846_s0  ;;  %s3379_s0 = smov 16  }
 0x36f   : > { %v1138_v18 = vpop.xlane.xlu0 %1137 }
 0x370   : > { %2771 = vrcp.f32 %v1138_v18 }
 0x37d   : > { %v2772_v19 = vpop.eup %2771 }
 0x37e   : > { %v1152_v20 = vmul.f32 %v2772_v19, %v2764_v57 }
 0x380   : > { %v1156_v21 = vpack.c.bf16 %v1152_v20, %v1152_v20 }
 0x382   : > { %2597 = vmatmul.mubr.msk.bf16.vlgmr.msra.gmra.mxu1 %vm913_vm2, %v1156_v21 }
 0x383   : > { %2608 = vmatprep.mubr.msk.bf16.mxu1 %vm2841_vm0, %v2840_v0 }
 0x3d3   : > { %v1141_v22 = vpop.xlane.xlu1 %1140 }
 0x3d4   : > { %2773 = vrcp.f32 %v1141_v22 }
 0x3d7   : > { %v1144_v23 = vpop.xlane.xlu0 %1143 }
 0x3d8   : > { %2775 = vrcp.f32 %v1144_v23 }
 0x3db   : > { %v1147_v24 = vpop.xlane.xlu1 %1146  ;;  %v1306_v27 = vpop.permute.xlu0 %1305 }
 0x3dc   : > { %2777 = vrcp.f32 %v1147_v24  ;;  %v1311_v30 = vsel %vm1165_vm3, %v1306_v27, 0  ;;  %v2469_v24 = vld [vmem:[%s3359_s10] ss:$0 sm:$0xff] }
 0x3df   : > { %v1258_v15 = vpop.permute.xlu1 %1257 }
 0x3e0   : > { %v1263_v25 = vsel %vm1165_vm3, %v1258_v15, 0 }
 0x3e1   : > { %v2774_v12 = vpop.eup %2773  ;;  %2607 = vmatpush3.bf16.msra.mxu1 %v1263_v25 }
 0x3e2   : > { %v1153_v26 = vmul.f32 %v2774_v12, %v2766_v10  ;;  %2618 = vmatprep.subr.bf16.mxu1 %v2840_v0 }
 0x3e4   : > { %v1157_v28 = vpack.c.bf16 %v1153_v26, %v1153_v26  ;;  %v2474_v26 = vld [vmem:[%s3363_s14] ss:$0 sm:$0xff] }
 0x3e5   : > { %v2776_v29 = vpop.eup %2775 }
 0x3e6   : > { %2603 = vmatmul.mubr.msk.bf16.vlgmr.msra.gmra.mxu0 %vm913_vm2, %v1157_v28  ;;  %v1154_v31 = vmul.f32 %v2776_v29, %v2768_v13  ;;  %v2751_v13 = vld [vmem:[%s3362_s13 + $0x8] sm:$0xff]  }
 0x3e7   : > { %2613 = vmatpush3.bf16.msra.mxu0 %v1311_v30  ;;  %2614 = vmatprep.mubr.msk.bf16.mxu0 %vm2841_vm0, %v2840_v0 }
 0x3e8   : > { %v1158_v32 = vpack.c.bf16 %v1154_v31, %v1154_v31  ;;  %2626 = vmatprep.subr.bf16.mxu0 %v2840_v0 }
 0x3e9   : > { %v2778_v33 = vpop.eup %2777 }
 0x3ea   : > { %2609 = vmatmul.mubr.msk.bf16.vlgmr.msra.gmra.mxu1 %vm913_vm2, %v1158_v32  ;;  %v1155_v34 = vmul.f32 %v2778_v33, %v2770_v16  ;;  %v2753_v16 = vld [vmem:[%s3360_s11 + $0x8] sm:$0xff]  }
 0x3eb   : > { %2622 = vmatprep.mubr.msk.bf16.mxu1 %vm2841_vm0, %v2840_v0  ;;  %2619 = vmatpush3.bf16.msra.mxu1 %v2749_v40 }
 0x3ec   : > { %v1159_v35 = vpack.c.bf16 %v1155_v34, %v1155_v34  ;;  %2620 = vmatprep.subr.bf16.mxu1 %v2840_v0 }
 0x3ee   : > { %2615 = vmatmul.mubr.msk.bf16.vlgmr.msra.gmra.mxu0 %vm913_vm2, %v1159_v35 }
 0x3ef   : > { %2630 = vmatprep.mubr.msk.bf16.mxu0 %vm2841_vm0, %v2840_v0  ;;  %2621 = vmatpush3.bf16.msra.mxu1 %v2750_v41 }
 0x3f0   : > { %2634 = vmatprep.subr.bf16.mxu1 %v2840_v0  ;;  %2627 = vmatpush3.bf16.msra.mxu0 %v2753_v16 }
 0x3f1   : > { %2628 = vmatprep.subr.bf16.mxu0 %v2840_v0 }
 0x3f4   : > { %2629 = vmatpush3.bf16.msra.mxu0 %v2754_v17 }
 0x3f5   : > { %2642 = vmatprep.subr.bf16.mxu0 %v2840_v0 }
 0x442   : > { %v1203_v36 = vpop.f32.mrf.mxu1 }
 0x444   : > { %v2598_v37 = vpop.f32.mrf.mxu1 }
 0x446   : > { %v1206_v38 = vpop.f32.mrf.mxu1 }
 0x448   : > { %v2599_v39 = vpop.f32.mrf.mxu1 }
 0x4a6   : > { %v1251_v42 = vpop.f32.mrf.mxu0 }
 0x4a7   : > { %1354 = vrot.lane.b32.xlu1 %v1251_v42, %s3380_s8  ;;  %s3404_s8 = sld [smem:[#allocation14_spill]] }
 0x4a8   : > { %v2604_v43 = vpop.f32.mrf.mxu0 }
 0x4aa   : > { %v1254_v44 = vpop.f32.mrf.mxu0  ;;  %v1299_v45 = vpop.f32.mrf.mxu1 }
 0x4ab   : > { %1358 = vrot.lane.b32.xlu0 %v1299_v45, %s3379_s0  ;;  %s3407_s0 = smov 96  }
 0x4ac   : > { %v2605_v46 = vpop.f32.mrf.mxu0  ;;  %v2610_v47 = vpop.f32.mrf.mxu1 }
 0x4ad   : > { %v2468_v22 = vld [vmem:[%s3404_s8] ss:$0 sm:$0xff] }
 0x4ae   : > { %v1302_v48 = vpop.f32.mrf.mxu1  ;;  %v1347_v49 = vpop.f32.mrf.mxu0 }
 0x4af   : > { %1362 = vrot.lane.b32.xlu1 %v1347_v49, %s3378_s6  ;;  %s2449_s6 = sshll.u32 %s3413_s2, 2 }
 0x4b0   : > { %v2611_v50 = vpop.f32.mrf.mxu1  ;;  %v2616_v51 = vpop.f32.mrf.mxu0  ;;  %s807_s4 = scalar_lea.vmem %s3403_s9, %s2449_s6  ;;  %s3406_s9 = sld [smem:[#allocation9_spill]] }
 0x4b1   : > { %v820_v14 = vld [vmem:[%s807_s4] sm:$0xf]  ;;  %s3409_s4 = smov 16  }
 0x4b2   : > { %v1350_v52 = vpop.f32.mrf.mxu0 }
 0x4b4   : > { %v2617_v53 = vpop.f32.mrf.mxu0 }
 0x4b6   : > { %s813_s8 = scalar_lea.vmem %s3406_s9, %s3413_s2 }
 0x4b7   : > { %v2482_v51 = vld [vmem:[%s813_s8] ss:$0 sm:$0xff]  ;;  %s3411_s8 = sshll.u32 %s3413_s2, 3 }
 0x4b8   : > { %s817_s7 = scalar_lea.vmem %s3374_s25, %s3411_s8 }
 0x519   : > { %v1355_v54 = vpop.permute.xlu1 %1354 }
 0x51a   : > { %v1365_v56 = vsel %vm913_vm2, %v1203_v36, %v1355_v54  ;;  %v2470_v36 = vld [vmem:[%s3361_s12] ss:$0 sm:$0xff] }
 0x51d   : > { %v1359_v55 = vpop.permute.xlu0 %1358 }
 0x51e   : > { %v1367_v57 = vsel %vm1366_vm4, %v1365_v56, %v1359_v55 }
 0x521   : > { %v1363_v58 = vpop.permute.xlu1 %1362 }
 0x522   : > { %v1369_v59 = vsel %vm1368_vm5, %v1367_v57, %v1363_v58 }
 0x523   : > { %v1370_v60 = vpack.c.bf16 %v1369_v59, %v1369_v59 }
 0x525   : > { %2623 = vmatmul.mubr.msk.bf16.vlgmr.msra.gmra.mxu1 %vm845_vm1, %v1370_v60 }
 0x526   : > { %2638 = vmatprep.mubr.msk.bf16.mxu1 %vm2841_vm0, %v2840_v0  ;;  %2635 = vmatpush3.bf16.msra.mxu1 %v2751_v13 }
 0x527   : > { %2636 = vmatprep.subr.bf16.mxu1 %v2840_v0 }
 0x5e5   : > { %v1426_v62 = vpop.f32.mrf.mxu1 }
 0x5e6   : > { %v1427_v63 = vadd.f32 %v2464_v61, %v1426_v62 }
 0x5e7   : > { %v2624_v1 = vpop.f32.mrf.mxu1 }
 0x5e8   : > { %v1432_v2 = vadd.f32 %v1427_v63, %v3030_v3  ;;  %v2752_v3 = vld [vmem:[%s3362_s13] sm:$0xff]  }
 0x5e9   : > { %v1429_v4 = vpop.f32.mrf.mxu1  ;;  %2637 = vmatpush3.bf16.msra.mxu1 %v2752_v3 }
 0x5ea   : > { %v1435_v5 = vsel %vm845_vm1, %v1432_v2, 0.0  ;;  %2648 = vmatprep.subr.bf16.mxu1 %v2840_v0 }
 0x5eb   : > { %1436 = vadd.xlane.f32.xlu0 %v1435_v5  ;;  %v2625_v6 = vpop.f32.mrf.mxu1 }
 0x5ec   : > { %2639 = vmatmul.mubr.msk.bf16.vlgmr.msra.gmra.mxu1 %vm845_vm1, %v820_v14 }
 0x5ed   : > { %2650 = vmatprep.mubr.msk.bf16.mxu1 %vm2841_vm0, %v2840_v0 }
 0x674   : > { %v1437_v7 = vpop.xlane.xlu0 %1436 }
 0x675   : > { %v1439_v8 = vmul.f32 0.03125, %v1437_v7 }
 0x677   : > { %v1440_v9 = vsub.f32 %v1432_v2, %v1439_v8 }
 0x679   : > { %v1441_v10 = vmul.f32 %v1440_v9, %v1440_v9 }
 0x67b   : > { %v1442_v11 = vsel %vm845_vm1, %v1441_v10, 0.0 }
 0x67c   : > { %1443 = vadd.xlane.f32.xlu1 %v1442_v11 }
 0x6ac   : > { %v1590_v27 = vpop.f32.mrf.mxu1 }
 0x6ad   : > { %v1591_v28 = vadd.f32 %v2474_v26, %v1590_v27 }
 0x6ae   : > { %v2640_v29 = vpop.f32.mrf.mxu1 }
 0x6af   : > { %v3193_v30 = vpack.c.bf16 %v1591_v28, %v1591_v28 }
 0x6b0   : > { %v1593_v31 = vpop.f32.mrf.mxu1 }
 0x6b1   : > { %1614 = vrot.lane.b32.xlu1 %v3193_v30, %s2845_s5  ;;  %1612 = vrot.lane.b32.xlu0 %v3193_v30, %s2843_s28  ;;  %v1622_v32 = vsel %vm913_vm2, %v3193_v30, 0 }
 0x6b2   : > { %v2641_v33 = vpop.f32.mrf.mxu1 }
 0x6b5   : > { %1616 = vrot.lane.b32.xlu1 %v3193_v30, %s3405_s27 }
 0x705   : > { %v1444_v18 = vpop.xlane.xlu1 %1443 }
 0x706   : > { %v1445_v19 = vmul.f32 0.03125, %v1444_v18 }
 0x708   : > { %v1446_v20 = vadd.f32 1e-05, %v1445_v19 }
 0x70a   : > { %2779 = vrsqrt.f32 %v1446_v20 }
 0x717   : > { %v2780_v21 = vpop.eup %2779 }
 0x718   : > { %v1448_v23 = vmul.f32 %v2780_v21, %v1440_v9 }
 0x71a   : > { %v1455_v15 = vmul.f32 %v2468_v22, %v1448_v23 }
 0x71c   : > { %v3183_v25 = vadd.f32 %v2469_v24, %v1455_v15 }
 0x71e   : > { %v1463_v12 = vpack.c.bf16 %v3183_v25, %v3183_v25 }
 0x720   : > { %2631 = vmatmul.mubr.msk.bf16.vlgmr.msra.gmra.mxu0 %vm845_vm1, %v1463_v12 }
 0x721   : > { %2644 = vmatprep.mubr.msk.bf16.mxu0 %vm2841_vm0, %v2840_v0  ;;  %2643 = vmatpush3.bf16.xpose.msra.mxu0 %v1622_v32 }
 0x722   : > { %2654 = vmatprep.subr.bf16.mxu0 %v2840_v0 }
 0x723   : > { %v3204_v34 = vpop.permute.xlu0 %1612  ;;  %v3212_v41 = vpop.permute.xlu1 %1614 }
 0x724   : > { %v1668_v35 = vsel %vm913_vm2, %v3204_v34, 0  ;;  %v1714_v43 = vsel %vm913_vm2, %v3212_v41, 0 }
 0x725   : > { %2649 = vmatpush3.bf16.xpose.msra.mxu1 %v1668_v35 }
 0x726   : > { %2660 = vmatprep.subr.bf16.mxu1 %v2840_v0 }
 0x727   : > { %v3223_v45 = vpop.permute.xlu1 %1616 }
 0x728   : > { %v1760_v47 = vsel %vm913_vm2, %v3223_v45, 0 }
 0x7e0   : > { %v1524_v37 = vpop.f32.mrf.mxu0 }
 0x7e1   : > { %v1525_v38 = vadd.f32 %v2470_v36, %v1524_v37 }
 0x7e2   : > { %v2632_v39 = vpop.f32.mrf.mxu0 }
 0x7e3   : > { %v1602_v40 = vpack.c.bf16 %v1525_v38, %v1525_v38 }
 0x7e4   : > { %v1527_v42 = vpop.f32.mrf.mxu0 }
 0x7e5   : > { %1608 = vrot.lane.b32.xlu1 %v1602_v40, %s3405_s27  ;;  %1604 = vrot.lane.b32.xlu0 %v1602_v40, %s2843_s28  ;;  %s3410_s28 = smov 24  }
 0x7e6   : > { %2645 = vmatmul.mubr.msk.bf16.vlgmr.msra.gmra.mxu0 %vm913_vm2, %v1602_v40  ;;  %v2633_v44 = vpop.f32.mrf.mxu0 }
 0x7e7   : > { %2655 = vmatpush3.bf16.xpose.msra.mxu0 %v1714_v43  ;;  %2656 = vmatprep.mubr.msk.bf16.mxu0 %vm2841_vm0, %v2840_v0 }
 0x7e8   : > { %2666 = vmatprep.subr.bf16.mxu0 %v2840_v0 }
 0x7e9   : > { %1606 = vrot.lane.b32.xlu0 %v1602_v40, %s2845_s5 }
 0x857   : > { %v1605_v46 = vpop.permute.xlu0 %1604  ;;  %v1609_v49 = vpop.permute.xlu1 %1608 }
 0x858   : > { %2651 = vmatmul.mubr.msk.bf16.vlgmr.msra.gmra.mxu1 %vm913_vm2, %v1605_v46 }
 0x859   : > { %2661 = vmatpush3.bf16.xpose.msra.mxu1 %v1760_v47  ;;  %2662 = vmatprep.mubr.msk.bf16.mxu1 %vm2841_vm0, %v2840_v0 }
 0x85a   : > { %2672 = vmatprep.subr.bf16.mxu1 %v2840_v0 }
 0x85b   : > { %v1607_v48 = vpop.permute.xlu0 %1606 }
 0x85c   : > { %2657 = vmatmul.mubr.msk.bf16.vlgmr.msra.gmra.mxu0 %vm913_vm2, %v1607_v48 }
 0x85d   : > { %2668 = vmatprep.mubr.msk.bf16.mxu0 %vm2841_vm0, %v2840_v0 }
 0x860   : > { %2663 = vmatmul.mubr.msk.bf16.vlgmr.msra.gmra.mxu1 %vm913_vm2, %v1609_v49 }
 0x861   : > { %2674 = vmatprep.mubr.msk.bf16.mxu1 %vm2841_vm0, %v2840_v0 }
 0x8a6   : > { %v1658_v50 = vpop.f32.mrf.mxu0 }
 0x8a7   : > { %v1802_v52 = vmul.f32 0.35355338, %v1658_v50 }
 0x8a8   : > { %v2646_v53 = vpop.f32.mrf.mxu0 }
 0x8a9   : > { %v1812_v54 = vadd.f32 %v2482_v51, %v1802_v52 }
 0x8aa   : > { %v1661_v55 = vpop.f32.mrf.mxu0 }
 0x8ab   : > { %v1816_v56 = vsel %vm913_vm2, %v1812_v54, -inf }
 0x8ac   : > { %1817 = vmax.xlane.f32.xlu0 %v1816_v56  ;;  %v2647_v57 = vpop.f32.mrf.mxu0 }
 0x918   : > { %v1704_v58 = vpop.f32.mrf.mxu1 }
 0x919   : > { %v1803_v59 = vmul.f32 0.35355338, %v1704_v58 }
 0x91a   : > { %v2652_v60 = vpop.f32.mrf.mxu1 }
 0x91b   : > { %v1813_v61 = vadd.f32 %v2482_v51, %v1803_v59 }
 0x91c   : > { %v1707_v62 = vpop.f32.mrf.mxu1  ;;  %v1750_v63 = vpop.f32.mrf.mxu0 }
 0x91d   : > { %v1804_v1 = vmul.f32 0.35355338, %v1750_v63  ;;  %v1819_v2 = vsel %vm913_vm2, %v1813_v61, -inf }
 0x91e   : > { %v2658_v4 = vpop.f32.mrf.mxu0  ;;  %1820 = vmax.xlane.f32.xlu1 %v1819_v2  ;;  %v2653_v5 = vpop.f32.mrf.mxu1  ;;  %v2755_v2 = vld [vmem:[%s3364_s15 + $0x8] sm:$0xff]  }
 0x91f   : > { %v1814_v6 = vadd.f32 %v2482_v51, %v1804_v1  ;;  %v2756_v4 = vld [vmem:[%s3364_s15] sm:$0xff]  }
 0x920   : > { %v1753_v7 = vpop.f32.mrf.mxu0  ;;  %v1796_v8 = vpop.f32.mrf.mxu1 }
 0x921   : > { %v1805_v9 = vmul.f32 0.35355338, %v1796_v8  ;;  %v1822_v10 = vsel %vm913_vm2, %v1814_v6, -inf }
 0x922   : > { %1823 = vmax.xlane.f32.xlu0 %v1822_v10  ;;  %v2659_v11 = vpop.f32.mrf.mxu0  ;;  %v2664_v13 = vpop.f32.mrf.mxu1 }
 0x923   : > { %v1815_v3 = vadd.f32 %v2482_v51, %v1805_v9 }
 0x924   : > { %v1799_v14 = vpop.f32.mrf.mxu1 }
 0x925   : > { %v1825_v16 = vsel %vm913_vm2, %v1815_v3, -inf }
 0x926   : > { %1826 = vmax.xlane.f32.xlu0 %v1825_v16  ;;  %v2665_v17 = vpop.f32.mrf.mxu1 }
 0x92f   : > { %1864 = vrot.lane.b32.xlu1 %v3193_v30, %s3407_s0 }
 0x935   : > { %v1818_v18 = vpop.xlane.xlu0 %1817 }
 0x936   : > { %v1828_v19 = vsub.f32 %v1812_v54, %v1818_v18 }
 0x938   : > { %v1832_v20 = vmul.f32 1.442695, %v1828_v19 }
 0x93a   : > { %2781 = vpow2.f32 %v1832_v20 }
 0x947   : > { %v2782_v21 = vpop.eup %2781 }
 0x948   : > { %v1840_v22 = vsel %vm913_vm2, %v2782_v21, 0.0 }
 0x953   : > { %1841 = vadd.xlane.f32.xlu1 %v1840_v22 }
 0x9a7   : > { %v1821_v23 = vpop.xlane.xlu1 %1820 }
 0x9a8   : > { %v1829_v24 = vsub.f32 %v1813_v61, %v1821_v23 }
 0x9aa   : > { %v1834_v15 = vmul.f32 1.442695, %v1829_v24 }
 0x9ab   : > { %v1824_v12 = vpop.xlane.xlu0 %1823  ;;  %v1865_v26 = vpop.permute.xlu1 %1864 }
 0x9ac   : > { %2783 = vpow2.f32 %v1834_v15  ;;  %v1830_v27 = vsub.f32 %v1814_v6, %v1824_v12  ;;  %v1870_v28 = vsel %vm1165_vm3, %v1865_v26, 0  ;;  %v2487_v15 = vld [vmem:[%s3365_s16] ss:$0 sm:$0xff] }
 0x9ad   : > { %2667 = vmatpush3.bf16.msra.mxu0 %v1870_v28 }
 0x9ae   : > { %v1836_v29 = vmul.f32 1.442695, %v1830_v27  ;;  %2678 = vmatprep.subr.bf16.mxu0 %v2840_v0 }
 0x9af   : > { %v1827_v30 = vpop.xlane.xlu0 %1826 }
 0x9b0   : > { %2785 = vpow2.f32 %v1836_v29  ;;  %v1831_v31 = vsub.f32 %v1815_v3, %v1827_v30 }
 0x9b2   : > { %v1838_v32 = vmul.f32 1.442695, %v1831_v31 }
 0x9b4   : > { %2787 = vpow2.f32 %v1838_v32 }
 0x9b9   : > { %v2784_v33 = vpop.eup %2783 }
 0x9ba   : > { %v1843_v35 = vsel %vm913_vm2, %v2784_v33, 0.0 }
 0x9bb   : > { %1844 = vadd.xlane.f32.xlu0 %v1843_v35 }
 0x9bd   : > { %v2786_v36 = vpop.eup %2785 }
 0x9be   : > { %v1846_v37 = vsel %vm913_vm2, %v2786_v36, 0.0 }
 0x9bf   : > { %1847 = vadd.xlane.f32.xlu1 %v1846_v37 }
 0x9c1   : > { %v2788_v38 = vpop.eup %2787 }
 0x9c2   : > { %v1849_v39 = vsel %vm913_vm2, %v2788_v38, 0.0 }
 0x9c3   : > { %1850 = vadd.xlane.f32.xlu0 %v1849_v39  ;;  %v2759_v39 = vld [vmem:[%s3370_s21 + $0x18] sm:$0xff]  }
 0x9d0   : > { %1960 = vrot.lane.b32.xlu1 %v3212_v41, %s3407_s0 }
 0x9d4   : > { %2008 = vrot.lane.b32.xlu1 %v3223_v45, %s3407_s0 }
 0x9d9   : > { %1912 = vrot.lane.b32.xlu0 %v3204_v34, %s3407_s0 }
 0x9dc   : > { %v1842_v40 = vpop.xlane.xlu1 %1841 }
 0x9dd   : > { %2789 = vrcp.f32 %v1842_v40  ;;  %v2760_v40 = vld [vmem:[%s3370_s21 + $0x10] sm:$0xff]  }
 0x9ea   : > { %v2790_v42 = vpop.eup %2789 }
 0x9eb   : > { %v1856_v43 = vmul.f32 %v2790_v42, %v2782_v21 }
 0x9ed   : > { %v1860_v44 = vpack.c.bf16 %v1856_v43, %v1856_v43 }
 0x9ef   : > { %2669 = vmatmul.mubr.msk.bf16.vlgmr.msra.gmra.mxu0 %vm913_vm2, %v1860_v44 }
 0x9f0   : > { %2680 = vmatprep.mubr.msk.bf16.mxu0 %vm2841_vm0, %v2840_v0 }
 0xa44   : > { %v1845_v46 = vpop.xlane.xlu0 %1844 }
 0xa45   : > { %2791 = vrcp.f32 %v1845_v46 }
 0xa48   : > { %v1848_v47 = vpop.xlane.xlu1 %1847 }
 0xa49   : > { %2793 = vrcp.f32 %v1848_v47  ;;  %v2491_v47 = vld [vmem:[%s3366_s17] ss:$0 sm:$0xff] }
 0xa4c   : > { %v1961_v41 = vpop.permute.xlu1 %1960  ;;  %v1851_v48 = vpop.xlane.xlu0 %1850 }
 0xa4d   : > { %v1966_v45 = vsel %vm1165_vm3, %v1961_v41, 0  ;;  %2795 = vrcp.f32 %v1851_v48  ;;  %v2492_v48 = vld [vmem:[%s3367_s18] ss:$0 sm:$0xff] }
 0xa4e   : > { %2679 = vmatpush3.bf16.msra.mxu0 %v1966_v45 }
 0xa4f   : > { %2690 = vmatprep.subr.bf16.mxu0 %v2840_v0 }
 0xa50   : > { %v1913_v34 = vpop.permute.xlu0 %1912  ;;  %v2009_v52 = vpop.permute.xlu1 %2008 }
 0xa51   : > { %v1918_v49 = vsel %vm1165_vm3, %v1913_v34, 0  ;;  %v2014_v55 = vsel %vm1165_vm3, %v2009_v52, 0  ;;  %v2493_v52 = vld [vmem:[%s3369_s20] ss:$0 sm:$0xff] }
 0xa52   : > { %v2792_v50 = vpop.eup %2791  ;;  %2673 = vmatpush3.bf16.msra.mxu1 %v1918_v49 }
 0xa53   : > { %2684 = vmatprep.subr.bf16.mxu1 %v2840_v0  ;;  %v1857_v51 = vmul.f32 %v2792_v50, %v2784_v33  ;;  %v2761_v50 = vld [vmem:[%s3370_s21 + $0x8] sm:$0xff]  }
 0xa55   : > { %v1861_v53 = vpack.c.bf16 %v1857_v51, %v1857_v51  ;;  %v2762_v51 = vld [vmem:[%s3370_s21] sm:$0xff]  }
 0xa56   : > { %v2794_v54 = vpop.eup %2793 }
 0xa57   : > { %2675 = vmatmul.mubr.msk.bf16.vlgmr.msra.gmra.mxu1 %vm913_vm2, %v1861_v53  ;;  %v1858_v56 = vmul.f32 %v2794_v54, %v2786_v36 }
 0xa58   : > { %2685 = vmatpush3.bf16.msra.mxu1 %v2014_v55  ;;  %2686 = vmatprep.mubr.msk.bf16.mxu1 %vm2841_vm0, %v2840_v0 }
 0xa59   : > { %v1862_v57 = vpack.c.bf16 %v1858_v56, %v1858_v56  ;;  %2698 = vmatprep.subr.bf16.mxu1 %v2840_v0 }
 0xa5a   : > { %v2796_v58 = vpop.eup %2795 }
 0xa5b   : > { %2681 = vmatmul.mubr.msk.bf16.vlgmr.msra.gmra.mxu0 %vm913_vm2, %v1862_v57  ;;  %v1859_v59 = vmul.f32 %v2796_v58, %v2788_v38  ;;  %v2757_v38 = vld [vmem:[%s3368_s19 + $0x8] sm:$0xff]  }
 0xa5c   : > { %2694 = vmatprep.mubr.msk.bf16.mxu0 %vm2841_vm0, %v2840_v0  ;;  %2691 = vmatpush3.bf16.msra.mxu0 %v2755_v2 }
 0xa5d   : > { %v1863_v60 = vpack.c.bf16 %v1859_v59, %v1859_v59  ;;  %2692 = vmatprep.subr.bf16.mxu0 %v2840_v0 }
 0xa5f   : > { %2687 = vmatmul.mubr.msk.bf16.vlgmr.msra.gmra.mxu1 %vm913_vm2, %v1863_v60 }
 0xa60   : > { %2702 = vmatprep.mubr.msk.bf16.mxu1 %vm2841_vm0, %v2840_v0  ;;  %2693 = vmatpush3.bf16.msra.mxu0 %v2756_v4 }
 0xa61   : > { %2706 = vmatprep.subr.bf16.mxu0 %v2840_v0  ;;  %2699 = vmatpush3.bf16.msra.mxu1 %v2757_v38 }
 0xa62   : > { %2700 = vmatprep.subr.bf16.mxu1 %v2840_v0 }
 0xaaf   : > { %v1906_v61 = vpop.f32.mrf.mxu0 }
 0xab1   : > { %v2670_v62 = vpop.f32.mrf.mxu0 }
 0xab3   : > { %v1909_v63 = vpop.f32.mrf.mxu0 }
 0xab5   : > { %v2671_v1 = vpop.f32.mrf.mxu0 }
 0xb17   : > { %v1954_v5 = vpop.f32.mrf.mxu1 }
 0xb18   : > { %2057 = vrot.lane.b32.xlu0 %v1954_v5, %s3408_s1 }
 0xb19   : > { %v2676_v6 = vpop.f32.mrf.mxu1 }
 0xb1b   : > { %v1957_v7 = vpop.f32.mrf.mxu1  ;;  %v2002_v8 = vpop.f32.mrf.mxu0 }
 0xb1c   : > { %2061 = vrot.lane.b32.xlu1 %v2002_v8, %s3409_s4 }
 0xb1d   : > { %v2677_v9 = vpop.f32.mrf.mxu1  ;;  %v2682_v10 = vpop.f32.mrf.mxu0 }
 0xb1f   : > { %v2005_v11 = vpop.f32.mrf.mxu0  ;;  %v2050_v13 = vpop.f32.mrf.mxu1 }
 0xb20   : > { %2065 = vrot.lane.b32.xlu0 %v2050_v13, %s3410_s28 }
 0xb21   : > { %v2683_v3 = vpop.f32.mrf.mxu0  ;;  %v2688_v14 = vpop.f32.mrf.mxu1 }
 0xb22   : > { %v2503_v14 = vld [vmem:[%s3372_s23] ss:$0 sm:$0xff] }
 0xb23   : > { %v2053_v16 = vpop.f32.mrf.mxu1 }
 0xb25   : > { %v2689_v17 = vpop.f32.mrf.mxu1 }
 0xb26   : > { %v2504_v17 = vld [vmem:[#allocation2] ss:$0 sm:$0xff] }
 0xb8a   : > { %v2058_v18 = vpop.permute.xlu0 %2057 }
 0xb8b   : > { %v2068_v20 = vsel %vm913_vm2, %v1906_v61, %v2058_v18 }
 0xb8e   : > { %v2062_v19 = vpop.permute.xlu1 %2061 }
 0xb8f   : > { %v2069_v21 = vsel %vm1366_vm4, %v2068_v20, %v2062_v19 }
 0xb92   : > { %v2066_v22 = vpop.permute.xlu0 %2065 }
 0xb93   : > { %v2070_v23 = vsel %vm1368_vm5, %v2069_v21, %v2066_v22 }
 0xb94   : > { %v2071_v24 = vpack.c.bf16 %v2070_v23, %v2070_v23 }
 0xb96   : > { %2695 = vmatmul.mubr.msk.bf16.vlgmr.msra.gmra.mxu0 %vm845_vm1, %v2071_v24 }
 0xb97   : > { %2714 = vmatprep.mubr.msk.bf16.mxu0 %vm2841_vm0, %v2840_v0  ;;  %2707 = vmatpush3.bf16.msra.mxu0 %v2759_v39 }
 0xb98   : > { %2708 = vmatprep.subr.bf16.mxu0 %v2840_v0 }
 0xb9b   : > { %2709 = vmatpush3.bf16.msra.mxu0 %v2760_v40 }
 0xb9c   : > { %2710 = vmatprep.subr.bf16.mxu0 %v2840_v0 }
 0xb9f   : > { %2711 = vmatpush3.bf16.msra.mxu0 %v2761_v50 }
 0xba0   : > { %2712 = vmatprep.subr.bf16.mxu0 %v2840_v0  ;;  %v2497_v0 = vld [vmem:[%s3371_s22] ss:$0 sm:$0xff] }
 0xba3   : > { %2713 = vmatpush3.bf16.msra.mxu0 %v2762_v51 }
 0xc56   : > { %v2127_v12 = vpop.f32.mrf.mxu0 }
 0xc57   : > { %v2128_v26 = vadd.f32 %v2487_v15, %v2127_v12 }
 0xc58   : > { %v2696_v27 = vpop.f32.mrf.mxu0 }
 0xc59   : > { %v2133_v28 = vadd.f32 %v2128_v26, %v3183_v25  ;;  %v2758_v25 = vld [vmem:[%s3368_s19] sm:$0xff]  }
 0xc5a   : > { %v2130_v29 = vpop.f32.mrf.mxu0  ;;  %2701 = vmatpush3.bf16.msra.mxu1 %v2758_v25 }
 0xc5b   : > { %v2136_v30 = vsel %vm845_vm1, %v2133_v28, 0.0 }
 0xc5c   : > { %2137 = vadd.xlane.f32.xlu1 %v2136_v30  ;;  %v2697_v31 = vpop.f32.mrf.mxu0 }
 0xce5   : > { %v2138_v32 = vpop.xlane.xlu1 %2137 }
 0xce6   : > { %v2139_v33 = vmul.f32 0.03125, %v2138_v32 }
 0xce8   : > { %v2140_v35 = vsub.f32 %v2133_v28, %v2139_v33 }
 0xcea   : > { %v2141_v36 = vmul.f32 %v2140_v35, %v2140_v35 }
 0xcec   : > { %v2142_v37 = vsel %vm845_vm1, %v2141_v36, 0.0 }
 0xced   : > { %2143 = vadd.xlane.f32.xlu0 %v2142_v37 }
 0xd76   : > { %v2144_v42 = vpop.xlane.xlu0 %2143 }
 0xd77   : > { %v2145_v43 = vmul.f32 0.03125, %v2144_v42 }
 0xd79   : > { %v2146_v44 = vadd.f32 1e-05, %v2145_v43 }
 0xd7b   : > { %2797 = vrsqrt.f32 %v2146_v44 }
 0xd88   : > { %v2798_v46 = vpop.eup %2797 }
 0xd89   : > { %v2148_v41 = vmul.f32 %v2798_v46, %v2140_v35 }
 0xd8b   : > { %v2155_v45 = vmul.f32 %v2491_v47, %v2148_v41 }
 0xd8d   : > { %v2162_v34 = vadd.f32 %v2492_v48, %v2155_v45 }
 0xd8f   : > { %v2177_v49 = vpack.c.bf16 %v2162_v34, %v2162_v34 }
 0xd91   : > { %2703 = vmatmul.mubr.msk.bf16.vlgmr.msra.gmra.mxu1 %vm845_vm1, %v2177_v49 }
 0xe51   : > { %v2233_v53 = vpop.f32.mrf.mxu1 }
 0xe52   : > { %v2234_v54 = vadd.f32 %v2493_v52, %v2233_v53 }
 0xe53   : > { %v2704_v55 = vpop.f32.mrf.mxu1 }
 0xe54   : > { %v2239_v56 = vmax.f32 %v2234_v54, 0.0 }
 0xe55   : > { %v2236_v57 = vpop.f32.mrf.mxu1 }
 0xe56   : > { %v2240_v58 = vpack.c.bf16 %v2239_v56, %v2239_v56 }
 0xe57   : > { %v2705_v59 = vpop.f32.mrf.mxu1 }
 0xe58   : > { %2715 = vmatmul.mubr.msk.bf16.vlgmr.msra.gmra.mxu0 %vm2271_vm6, %v2240_v58 }
 0xf18   : > { %v2309_v60 = vpop.f32.mrf.mxu0 }
 0xf19   : > { %v2310_v61 = vadd.f32 %v2497_v0, %v2309_v60 }
 0xf1a   : > { %v2716_v62 = vpop.f32.mrf.mxu0 }
 0xf1b   : > { %v2315_v63 = vadd.f32 %v2310_v61, %v2162_v34 }
 0xf1c   : > { %v2312_v1 = vpop.f32.mrf.mxu0 }
 0xf1d   : > { %v2318_v2 = vsel %vm845_vm1, %v2315_v63, 0.0 }
 0xf1e   : > { %2319 = vadd.xlane.f32.xlu0 %v2318_v2  ;;  %v2717_v4 = vpop.f32.mrf.mxu0 }
 0xfa7   : > { %v2320_v5 = vpop.xlane.xlu0 %2319 }
 0xfa8   : > { %v2321_v6 = vmul.f32 0.03125, %v2320_v5 }
 0xfaa   : > { %v2322_v7 = vsub.f32 %v2315_v63, %v2321_v6 }
 0xfac   : > { %v2323_v8 = vmul.f32 %v2322_v7, %v2322_v7 }
 0xfae   : > { %v2324_v9 = vsel %vm845_vm1, %v2323_v8, 0.0 }
 0xfaf   : > { %2325 = vadd.xlane.f32.xlu1 %v2324_v9 }
0x1038   : > { %v2326_v10 = vpop.xlane.xlu1 %2325 }
0x1039   : > { %v2327_v11 = vmul.f32 0.03125, %v2326_v10 }
0x103b   : > { %v2328_v13 = vadd.f32 1e-05, %v2327_v11 }
0x103d   : > { %2799 = vrsqrt.f32 %v2328_v13 }
0x104a   : > { %v2800_v3 = vpop.eup %2799 }
0x104b   : > { %v2330_v16 = vmul.f32 %v2800_v3, %v2322_v7 }
0x104d   : > { %v2337_v18 = vmul.f32 %v2503_v14, %v2330_v16 }
0x104f   : > { %v2344_v19 = vadd.f32 %v2504_v17, %v2337_v18 }
0x1051   : > { %2345 = vst.msk [vmem:[%s817_s7] sm:$0xff] %vm845_vm1, %v2344_v19 }
0x1052 PF: > { %s36_s29 = sadd.s32 1, %s2837_s29  }
0x1053   : > { %p33_p1 = scmp.ge.s32.totalorder %s36_s29, 4  }
0x1055   :  { %35 = sbr.rel (!%p33_p1) target bundleno = 12 (0xc), region = 164 }
0x105a   :  { %2365 = vsyncpa [#allocation3], 1 }
0x105b   :  { %2367 = vsyncpa [#allocation3 + $0x1], 1 }

// kernel: seq2seq_transformer_forward.9
= control target key start
LH: loop header
LB: loop body
LE: loop exit
PB: predicated region body
PF: predicated region fallthrough
CT: control target
= control target key end

     0   :  { %vm25_vm0 = vcmask 261120   ;;  %v169_v14 = vmov 0.0   ;;  %vm170_vm1 = vmmov 0   ;;  %vm137_vm2 = vcmask 490496   ;;  %s233_s0 = inlined_call_operand.vmem [shape: f32[16,32], index: 0, kind: input, shape index: {}]   ;;  %s234_s3 = inlined_call_operand.vmem [shape: bf16[32,60], index: 3, kind: input, shape index: {}]   ;;  %s235_s1 = inlined_call_operand.vmem [shape: f32[1,32], index: 1, kind: input, shape index: {}]   ;;  %s236_s2 = inlined_call_operand.vmem [shape: f32[1,32], index: 2, kind: input, shape index: {}]   ;;  %s237_s4 = inlined_call_operand.vmem [shape: f32[1,60], index: 4, kind: input, shape index: {}]   ;;  %s238_s5 = inlined_call_operand.vmem [shape: f32[16,60], index: 5, kind: output, shape index: {}]  }
   0x1   :  { %v21_v0 = vld [vmem:[%s233_s0] sm:$0xff]  ;;  %v22_v1 = vld [vmem:[%s233_s0 + $0x8] sm:$0xff]  ;;  %153 = vmatprep.subr.bf16.mxu0 %v169_v14  ;;  %157 = vmatprep.mubr.msk.bf16.mxu0 %vm170_vm1, %v169_v14 }
   0x2   :  { %v26_v2 = vsel %vm25_vm0, %v21_v0, 0.0  ;;  %v29_v3 = vsel %vm25_vm0, %v22_v1, 0.0  ;;  %v163_v15 = vld [vmem:[%s234_s3 + $0x8] sm:$0xff]   ;;  %v164_v16 = vld [vmem:[%s234_s3] sm:$0xff]  }
   0x3   :  { %27 = vadd.xlane.f32.xlu0 %v26_v2  ;;  %154 = vmatpush3.bf16.msra.mxu0 %v163_v15  ;;  %v144_v25 = vld [vmem:[%s235_s1] ss:$0 sm:$0xff] }
   0x4   :  { %155 = vmatprep.subr.bf16.mxu0 %v169_v14  ;;  %v145_v29 = vld [vmem:[%s236_s2] ss:$0 sm:$0xff] }
   0x5   :  { %v146_v34 = vld [vmem:[%s237_s4] ss:$0 sm:$0xff] }
   0x7   :  { %30 = vadd.xlane.f32.xlu0 %v29_v3  ;;  %156 = vmatpush3.bf16.msra.mxu0 %v164_v16 }
  0x8c   :  { %v28_v4 = vpop.xlane.xlu0 %27 }
  0x8d   :  { %v33_v5 = vmul.f32 0.03125, %v28_v4 }
  0x8f   :  { %v35_v6 = vsub.f32 %v21_v0, %v33_v5 }
  0x90   :  { %v31_v7 = vpop.xlane.xlu0 %30 }
  0x91   :  { %v34_v8 = vmul.f32 0.03125, %v31_v7  ;;  %v37_v9 = vmul.f32 %v35_v6, %v35_v6 }
  0x93   :  { %v36_v10 = vsub.f32 %v22_v1, %v34_v8  ;;  %v39_v11 = vsel %vm25_vm0, %v37_v9, 0.0 }
  0x94   :  { %40 = vadd.xlane.f32.xlu1 %v39_v11 }
  0x95   :  { %v38_v12 = vmul.f32 %v36_v10, %v36_v10 }
  0x97   :  { %v42_v13 = vsel %vm25_vm0, %v38_v12, 0.0 }
  0x98   :  { %43 = vadd.xlane.f32.xlu1 %v42_v13 }
 0x11d   :  { %v41_v17 = vpop.xlane.xlu1 %40 }
 0x11e   :  { %v45_v18 = vmul.f32 0.03125, %v41_v17 }
 0x120   :  { %v47_v19 = vadd.f32 1e-05, %v45_v18 }
 0x121   :  { %v44_v20 = vpop.xlane.xlu1 %43 }
 0x122   :  { %165 = vrsqrt.f32 %v47_v19  ;;  %v46_v21 = vmul.f32 0.03125, %v44_v20 }
 0x124   :  { %v48_v22 = vadd.f32 1e-05, %v46_v21 }
 0x126   :  { %167 = vrsqrt.f32 %v48_v22 }
 0x12f   :  { %v166_v23 = vpop.eup %165 }
 0x130   :  { %v51_v24 = vmul.f32 %v166_v23, %v35_v6 }
 0x132   :  { %v59_v28 = vmul.f32 %v144_v25, %v51_v24 }
 0x133   :  { %v168_v26 = vpop.eup %167 }
 0x134   :  { %v52_v27 = vmul.f32 %v168_v26, %v36_v10  ;;  %v67_v31 = vadd.f32 %v145_v29, %v59_v28 }
 0x136   :  { %v60_v30 = vmul.f32 %v144_v25, %v52_v27 }
 0x138   :  { %v68_v32 = vadd.f32 %v145_v29, %v60_v30 }
 0x13a   :  { %v69_v33 = vpack.c.bf16 %v68_v32, %v67_v31 }
 0x13c   :  { %158 = vmatmul.mubr.msk.bf16.vlgmr.msra.gmra.mxu0 %vm25_vm0, %v69_v33 }
 0x1fc   :  { %v130_v35 = vpop.f32.mrf.mxu0 }
 0x1fd   :  { %v131_v36 = vadd.f32 %v146_v34, %v130_v35 }
 0x1fe   :  { %v159_v37 = vpop.f32.mrf.mxu0 }
 0x1ff   :  { %138 = vst.msk [vmem:[%s238_s5] sm:$0xff] %vm137_vm2, %v131_v36 }
 0x200   :  { %v133_v38 = vpop.f32.mrf.mxu0 }
 0x201   :  { %v134_v39 = vadd.f32 %v146_v34, %v133_v38 }
 0x202   :  { %v160_v40 = vpop.f32.mrf.mxu0 }
 0x203   :  { %139 = vst.msk [vmem:[%s238_s5 + $0x8] sm:$0xff] %vm137_vm2, %v134_v39 }

</bundles_post_ra>
